<compile_context>
chip_gen: v5e
topology: v5e:2x2
jax: 0.10.0
libtpu: 0.0.40
codegen_flags: <defaults>
</compile_context>

<pallas_src>
import jax
import jax.numpy as jnp
import numpy as np
from jax.experimental import pallas as pl
from jax.experimental.pallas import tpu as pltpu


# ------------------------------ fused kernel ------------------------------ #
def fused_forward_kernel(
    xa_ref, za_ref, xe_ref,
    aw11_ref, ab11_ref, aw12_ref, ab12_ref, aw2_ref, ab2_ref,
    aw3h_ref, aw3z_ref, ab3_ref,
    ew_ref, eb_ref, cw0_ref, cw1_ref,
    adapt_ref, embed_ref, logp_ref,
):
    f32, bf16 = jnp.float32, jnp.bfloat16

    # ------------------------------ AdaptNet ------------------------------ #
    xa = xa_ref[...]                                            # (BT, 512) f32
    z1 = jnp.maximum(
        jnp.dot(za_ref[...].astype(bf16), aw11_ref[...],
                preferred_element_type=f32) + ab11_ref[...], 0.0)   # (BT,128)
    z2 = jnp.maximum(
        jnp.dot(z1.astype(bf16), aw12_ref[...],
                preferred_element_type=f32) + ab12_ref[...], 0.0)   # (BT,128) pad cols 0
    h = jnp.maximum(
        jnp.dot(xa.astype(bf16), aw2_ref[...],
                preferred_element_type=f32) + ab2_ref[...], 0.0)    # (BT,128)
    # cat([h, z2], 1) @ W3 == h @ W3[:128] + z2 @ W3[128:] (split at init)
    adapt_ref[...] = (
        jnp.dot(h.astype(bf16), aw3h_ref[...], preferred_element_type=f32)
        + jnp.dot(z2.astype(bf16), aw3z_ref[...], preferred_element_type=f32)
        + ab3_ref[...] + xa)                                        # (BT,512)

    # ---------------------------- EmbeddingNet ---------------------------- #
    # fc11 -> fc12 -> view(B,-1,240).sum(dim=1) is affine, folded at init into
    # one lane-dense bf16 matmul:  (BT, Kp) @ (Kp, 256) + bias.
    embed = (jnp.dot(xe_ref[...].astype(bf16), ew_ref[...],
                     preferred_element_type=f32) + eb_ref[...])     # (BT,256)
    embed_ref[...] = embed

    # ------------------------------- FCLayer ------------------------------ #
    # N=2 logits: VPU broadcast-mul + lane reduce (no wasted MXU push),
    # f32 log-softmax, lane-dense (BT,128) store (sliced to 2 in wrapper).
    l0 = jnp.sum(embed * cw0_ref[...], axis=-1, keepdims=True)      # (BT,1)
    l1 = jnp.sum(embed * cw1_ref[...], axis=-1, keepdims=True)      # (BT,1)
    m = jnp.maximum(l0, l1)
    lse = m + jnp.log(jnp.exp(l0 - m) + jnp.exp(l1 - m))
    p0 = jnp.broadcast_to(l0 - lse, logp_ref.shape)
    p1 = jnp.broadcast_to(l1 - lse, logp_ref.shape)
    lane = jax.lax.broadcasted_iota(jnp.int32, logp_ref.shape, 1)
    logp_ref[...] = jnp.where(lane == 0, p0, jnp.where(lane == 1, p1, 0.0))


# ------------------------------ parameters -------------------------------- #
def _linear(key, fan_in, fan_out, bias=True):
    kw, kb = jax.random.split(key)
    bound = 1.0 / (fan_in ** 0.5)
    w = jax.random.uniform(kw, (fan_in, fan_out), jnp.float32, -bound, bound)
    if not bias:
        return w, None
    b = jax.random.uniform(kb, (1, fan_out), jnp.float32, -bound, bound)
    return w, b


def _pad_to(x, shape):
    return jnp.pad(x, [(0, t - s) for s, t in zip(x.shape, shape)])


def _make_msel(S, c_dim, d_dim, d_pad):
    """msel[s, c, (c_dim*s + c) % d_dim] = 1: exact placement of emb row s
    under view(B, -1, d_dim).sum(dim=1)."""
    m = np.zeros((S, c_dim, d_pad), np.float32)
    for s in range(S):
        for c in range(c_dim):
            m[s, c, (c_dim * s + c) % d_dim] = 1.0
    return jnp.asarray(m)


class TrainProcess:
    """Pallas port of the submodules of TrainProcess (single fused kernel).

    # TODO(synk): the reference TrainProcess.forward only rewrites a model
    # state_dict via undefined globals (dict_model, w_new, model_new) and has
    # no tensor compute; the submodule forward passes are fused into the
    # single Pallas kernel above instead.
    """

    S_SUP = 15          # support size
    D_EMB = 16 * 15     # 240
    BATCH_TILE = 16     # bf16-sublane-friendly batch tile

    def __init__(self, key):
        ks = jax.random.split(key, 9)
        bf16 = jnp.bfloat16

        # ------------------------------ AdaptNet --------------------------- #
        w11, b11 = _linear(ks[0], 64 * 2, 128)
        w12, b12 = _linear(ks[1], 128, 64)
        w2, b2 = _linear(ks[2], 16 * 15 * 2, 128)
        w3, b3 = _linear(ks[3], 128 + 64, 16 * 15 * 2)
        self.aw11 = w11.astype(bf16)                         # (128, 128)
        self.ab11 = b11
        self.aw12 = _pad_to(w12, (128, 128)).astype(bf16)    # out 64 -> 128
        self.ab12 = _pad_to(b12, (1, 128))
        self.aw2 = _pad_to(w2, (512, 128)).astype(bf16)      # in 480 -> 512
        self.ab2 = b2
        self.aw3h = _pad_to(w3[:128], (128, 512)).astype(bf16)
        self.aw3z = _pad_to(w3[128:], (128, 512)).astype(bf16)  # pad rows are 0
        self.ab3 = _pad_to(b3, (1, 512))

        # ---------------------------- EmbeddingNet ------------------------- #
        ew11, eb11 = _linear(ks[4], 16 * 15, 128)
        ew12, eb12 = _linear(ks[5], 128, 64)
        # TODO(synk): fc21/fc22 feed the attention branch of the reference,
        # which is shape-invalid ((B,1,1,64) @ (B,S',240,1)) and whose softmax
        # over a size-1 axis is identically 1 (att_score == 1), so the output
        # reduces to x.view(B,-1,240).sum(dim=1); params kept but unused.
        self.ew21, self.eb21 = _linear(ks[6], 16 * 15, 128)
        self.ew22, self.eb22 = _linear(ks[7], 128, 64)

        S, D = self.S_SUP, self.D_EMB
        assert (S * 64) % D == 0, "EmbeddingNet view requires S*64 % 240 == 0"
        msel = _make_msel(S=S, c_dim=64, d_dim=D, d_pad=256)  # (S, 64, 256)
        # EmbeddingNet is affine: fold fc11 @ fc12 @ placement into ONE weight.
        #   out[b] = sum_s x[b,s,:] @ (ew11 @ ew12 @ msel[s]) + bias
        #          = x[b].reshape(S*D) @ Wbig + bias
        w1112 = ew11 @ ew12                                   # (240, 64) f32
        wbig = jnp.einsum('dc,scn->sdn', w1112, msel).reshape(S * D, 256)
        self.kfold = S * D                                    # 3600
        self.kfold_p = -(-self.kfold // 128) * 128            # 3712 (lane-dense K)
        self.ew = _pad_to(wbig, (self.kfold_p, 256)).astype(bf16)
        self.eb = (eb11 @ ew12 + eb12) @ msel.sum(axis=0)     # (1, 256) f32

        # ------------------------------ FCLayer ---------------------------- #
        cw, _ = _linear(ks[8], 16 * 1 * 15, 2, bias=False)    # (240, 2)
        self.cw0 = _pad_to(cw[:, 0:1].T, (1, 256))            # f32, VPU path
        self.cw1 = _pad_to(cw[:, 1:2].T, (1, 256))

        # raw f32 params kept only for the pure-JAX reference check
        self._raw = (w11, b11, w12, b12, w2, b2, w3, b3,
                     ew11, eb11, ew12, eb12, cw)

        self._forward = jax.jit(self._forward_impl)

    # ------------------------------ forward -------------------------------- #
    def _forward_impl(self, x_adapt, z_adapt, x_embed):
        B, da = x_adapt.shape
        Be, S, D = x_embed.shape
        assert da == 480 and Be == B and (S, D) == (self.S_SUP, self.D_EMB)

        BT = self.BATCH_TILE
        Bp = -(-B // BT) * BT                                 # pad batch to tile
        Kp = self.kfold_p

        xa_p = _pad_to(x_adapt, (Bp, 512))
        za_p = _pad_to(z_adapt, (Bp, 128))
        xe_p = _pad_to(x_embed.reshape(B, S * D), (Bp, Kp))   # contiguous reshape

        bmap = lambda i: (i, 0)        # batch-tiled operands
        cmap = lambda i: (0, 0)        # weights: constant block -> VMEM-resident

        grid_spec = pltpu.PrefetchScalarGridSpec(
            num_scalar_prefetch=0,
            grid=(Bp // BT,),
            in_specs=[
                pl.BlockSpec((BT, 512), bmap),     # x_adapt
                pl.BlockSpec((BT, 128), bmap),     # z_adapt
                pl.BlockSpec((BT, Kp), bmap),      # x_embed (flattened, folded K)
                pl.BlockSpec((128, 128), cmap),    # aw11
                pl.BlockSpec((1, 128), cmap),      # ab11
                pl.BlockSpec((128, 128), cmap),    # aw12
                pl.BlockSpec((1, 128), cmap),      # ab12
                pl.BlockSpec((512, 128), cmap),    # aw2
                pl.BlockSpec((1, 128), cmap),      # ab2
                pl.BlockSpec((128, 512), cmap),    # aw3h
                pl.BlockSpec((128, 512), cmap),    # aw3z
                pl.BlockSpec((1, 512), cmap),      # ab3
                pl.BlockSpec((Kp, 256), cmap),     # folded embedding weight
                pl.BlockSpec((1, 256), cmap),      # folded embedding bias
                pl.BlockSpec((1, 256), cmap),      # classifier col 0
                pl.BlockSpec((1, 256), cmap),      # classifier col 1
            ],
            out_specs=(
                pl.BlockSpec((BT, 512), bmap),
                pl.BlockSpec((BT, 256), bmap),
                pl.BlockSpec((BT, 128), bmap),
            ),
        )

        adapt_p, embed_p, logp_p = pl.pallas_call(
            fused_forward_kernel,
            out_shape=(
                jax.ShapeDtypeStruct((Bp, 512), jnp.float32),
                jax.ShapeDtypeStruct((Bp, 256), jnp.float32),
                jax.ShapeDtypeStruct((Bp, 128), jnp.float32),
            ),
            grid_spec=grid_spec,
            compiler_params=pltpu.CompilerParams(
                dimension_semantics=("parallel",)),
        )(xa_p, za_p, xe_p,
          self.aw11, self.ab11, self.aw12, self.ab12, self.aw2, self.ab2,
          self.aw3h, self.aw3z, self.ab3,
          self.ew, self.eb, self.cw0, self.cw1)

        return adapt_p[:B, :480], embed_p[:B, :240], logp_p[:B, :2]

    def forward(self, x_adapt, z_adapt, x_embed):
        return self._forward(x_adapt, z_adapt, x_embed)

    __call__ = forward

    # pure-JAX f32 reference of the same (pruned) forward semantics
    def reference_forward(self, x_adapt, z_adapt, x_embed):
        (w11, b11, w12, b12, w2, b2, w3, b3,
         ew11, eb11, ew12, eb12, cw) = self._raw
        z1 = jax.nn.relu(z_adapt @ w11 + b11)
        z2 = jax.nn.relu(z1 @ w12 + b12)
        h = jax.nn.relu(x_adapt @ w2 + b2)
        adapt = jnp.concatenate([h, z2], axis=1) @ w3 + b3 + x_adapt
        B, S, D = x_embed.shape
        e = x_embed.reshape(B * S, D) @ ew11 + eb11
        e = e @ ew12 + eb12
        embed = e.reshape(B, -1, D).sum(axis=1)
        logp = jax.nn.log_softmax(embed @ cw, axis=1)
        return adapt, embed, logp


if __name__ == "__main__":
    key = jax.random.PRNGKey(0)
    pkey, k1, k2, k3 = jax.random.split(key, 4)
    model = TrainProcess(pkey)

    B = 2
    x_adapt = jax.random.normal(k1, (B, 16 * 15 * 2), jnp.float32)   # (2, 480)
    z_adapt = jax.random.normal(k2, (B, 64 * 2), jnp.float32)        # (2, 128)
    x_embed = jax.random.normal(k3, (B, 15, 16 * 15), jnp.float32)   # (2, 15, 240)

    adapt_out, embed_out, log_probs = model(x_adapt, z_adapt, x_embed)
    jax.block_until_ready((adapt_out, embed_out, log_probs))

    assert adapt_out.shape == (B, 480)
    assert embed_out.shape == (B, 240)
    assert log_probs.shape == (B, 2)

    # loose-tolerance check vs a pure-JAX reference (bf16 matmul operands)
    ra, re, rl = model.reference_forward(x_adapt, z_adapt, x_embed)
    assert float(jnp.max(jnp.abs(adapt_out - ra))) < 0.2
    assert float(jnp.max(jnp.abs(embed_out - re))) < 0.2
    assert float(jnp.max(jnp.abs(log_probs - rl))) < 0.2

    print("KERNEL_OK")
</pallas_src>

<mosaic_0001>
module attributes {stable_mosaic.version = 11 : i64} {
  func.func @fused_forward_kernel(%arg0: i32, %arg1: memref<16x512xf32, #tpu.memory_space<vmem>>, %arg2: memref<16x128xf32, #tpu.memory_space<vmem>>, %arg3: memref<16x3712xf32, #tpu.memory_space<vmem>>, %arg4: memref<128x128xbf16, #tpu.memory_space<vmem>>, %arg5: memref<1x128xf32, #tpu.memory_space<vmem>>, %arg6: memref<128x128xbf16, #tpu.memory_space<vmem>>, %arg7: memref<1x128xf32, #tpu.memory_space<vmem>>, %arg8: memref<512x128xbf16, #tpu.memory_space<vmem>>, %arg9: memref<1x128xf32, #tpu.memory_space<vmem>>, %arg10: memref<128x512xbf16, #tpu.memory_space<vmem>>, %arg11: memref<128x512xbf16, #tpu.memory_space<vmem>>, %arg12: memref<1x512xf32, #tpu.memory_space<vmem>>, %arg13: memref<3712x256xbf16, #tpu.memory_space<vmem>>, %arg14: memref<1x256xf32, #tpu.memory_space<vmem>>, %arg15: memref<1x256xf32, #tpu.memory_space<vmem>>, %arg16: memref<1x256xf32, #tpu.memory_space<vmem>>, %arg17: memref<16x512xf32, #tpu.memory_space<vmem>>, %arg18: memref<16x256xf32, #tpu.memory_space<vmem>>, %arg19: memref<16x128xf32, #tpu.memory_space<vmem>>) attributes {dimension_semantics = [#tpu.dimension_semantics<parallel>], iteration_bounds = array<i64: 1>, scalar_prefetch = 0 : i64, scratch_operands = 0 : i64, tpu.core_type = #tpu.core_type<tc>, window_params = [{transform_indices = @transform_0, window_bounds = array<i64: 16, 512>}, {transform_indices = @transform_1, window_bounds = array<i64: 16, 128>}, {transform_indices = @transform_2, window_bounds = array<i64: 16, 3712>}, {pipeline_mode = #tpu.pipeline_mode<synchronous>, transform_indices = @transform_3, window_bounds = array<i64: 128, 128>}, {pipeline_mode = #tpu.pipeline_mode<synchronous>, transform_indices = @transform_4, window_bounds = array<i64: 1, 128>}, {pipeline_mode = #tpu.pipeline_mode<synchronous>, transform_indices = @transform_5, window_bounds = array<i64: 128, 128>}, {pipeline_mode = #tpu.pipeline_mode<synchronous>, transform_indices = @transform_6, window_bounds = array<i64: 1, 128>}, {pipeline_mode = #tpu.pipeline_mode<synchronous>, transform_indices = @transform_7, window_bounds = array<i64: 512, 128>}, {pipeline_mode = #tpu.pipeline_mode<synchronous>, transform_indices = @transform_8, window_bounds = array<i64: 1, 128>}, {pipeline_mode = #tpu.pipeline_mode<synchronous>, transform_indices = @transform_9, window_bounds = array<i64: 128, 512>}, {pipeline_mode = #tpu.pipeline_mode<synchronous>, transform_indices = @transform_10, window_bounds = array<i64: 128, 512>}, {pipeline_mode = #tpu.pipeline_mode<synchronous>, transform_indices = @transform_11, window_bounds = array<i64: 1, 512>}, {pipeline_mode = #tpu.pipeline_mode<synchronous>, transform_indices = @transform_12, window_bounds = array<i64: 3712, 256>}, {pipeline_mode = #tpu.pipeline_mode<synchronous>, transform_indices = @transform_13, window_bounds = array<i64: 1, 256>}, {pipeline_mode = #tpu.pipeline_mode<synchronous>, transform_indices = @transform_14, window_bounds = array<i64: 1, 256>}, {pipeline_mode = #tpu.pipeline_mode<synchronous>, transform_indices = @transform_15, window_bounds = array<i64: 1, 256>}, {transform_indices = @transform_16, window_bounds = array<i64: 16, 512>}, {transform_indices = @transform_17, window_bounds = array<i64: 16, 256>}, {transform_indices = @transform_18, window_bounds = array<i64: 16, 128>}]} {
    %c0 = arith.constant 0 : index
    %c0_0 = arith.constant 0 : index
    %0 = vector.load %arg1[%c0, %c0_0] : memref<16x512xf32, #tpu.memory_space<vmem>>, vector<16x512xf32>
    %c0_1 = arith.constant 0 : index
    %c0_2 = arith.constant 0 : index
    %1 = vector.load %arg2[%c0_1, %c0_2] : memref<16x128xf32, #tpu.memory_space<vmem>>, vector<16x128xf32>
    %2 = arith.truncf %1 : vector<16x128xf32> to vector<16x128xbf16>
    %c0_3 = arith.constant 0 : index
    %c0_4 = arith.constant 0 : index
    %3 = vector.load %arg4[%c0_3, %c0_4] : memref<128x128xbf16, #tpu.memory_space<vmem>>, vector<128x128xbf16>
    %cst = arith.constant dense<0.000000e+00> : vector<16x128xf32>
    %4 = tpu.matmul %2, %3, %cst {dimension_numbers = #tpu.dot_dimension_numbers<[1], [0], [0], [1], [0, 0, 1, 1], [], []>} : vector<16x128xbf16>, vector<128x128xbf16>, vector<16x128xf32> -> vector<16x128xf32>
    %c0_5 = arith.constant 0 : index
    %c0_6 = arith.constant 0 : index
    %5 = vector.load %arg5[%c0_5, %c0_6] : memref<1x128xf32, #tpu.memory_space<vmem>>, vector<1x128xf32>
    %6 = vector.broadcast %5 : vector<1x128xf32> to vector<16x128xf32>
    %7 = arith.addf %4, %6 : vector<16x128xf32>
    %cst_7 = arith.constant 0.000000e+00 : f32
    %8 = vector.broadcast %cst_7 : f32 to vector<16x128xf32>
    %9 = arith.maximumf %7, %8 : vector<16x128xf32>
    %10 = arith.truncf %9 : vector<16x128xf32> to vector<16x128xbf16>
    %c0_8 = arith.constant 0 : index
    %c0_9 = arith.constant 0 : index
    %11 = vector.load %arg6[%c0_8, %c0_9] : memref<128x128xbf16, #tpu.memory_space<vmem>>, vector<128x128xbf16>
    %cst_10 = arith.constant dense<0.000000e+00> : vector<16x128xf32>
    %12 = tpu.matmul %10, %11, %cst_10 {dimension_numbers = #tpu.dot_dimension_numbers<[1], [0], [0], [1], [0, 0, 1, 1], [], []>} : vector<16x128xbf16>, vector<128x128xbf16>, vector<16x128xf32> -> vector<16x128xf32>
    %c0_11 = arith.constant 0 : index
    %c0_12 = arith.constant 0 : index
    %13 = vector.load %arg7[%c0_11, %c0_12] : memref<1x128xf32, #tpu.memory_space<vmem>>, vector<1x128xf32>
    %14 = vector.broadcast %13 : vector<1x128xf32> to vector<16x128xf32>
    %15 = arith.addf %12, %14 : vector<16x128xf32>
    %cst_13 = arith.constant 0.000000e+00 : f32
    %16 = vector.broadcast %cst_13 : f32 to vector<16x128xf32>
    %17 = arith.maximumf %15, %16 : vector<16x128xf32>
    %18 = arith.truncf %0 : vector<16x512xf32> to vector<16x512xbf16>
    %c0_14 = arith.constant 0 : index
    %c0_15 = arith.constant 0 : index
    %19 = vector.load %arg8[%c0_14, %c0_15] : memref<512x128xbf16, #tpu.memory_space<vmem>>, vector<512x128xbf16>
    %cst_16 = arith.constant dense<0.000000e+00> : vector<16x128xf32>
    %20 = tpu.matmul %18, %19, %cst_16 {dimension_numbers = #tpu.dot_dimension_numbers<[1], [0], [0], [1], [0, 0, 1, 1], [], []>} : vector<16x512xbf16>, vector<512x128xbf16>, vector<16x128xf32> -> vector<16x128xf32>
    %c0_17 = arith.constant 0 : index
    %c0_18 = arith.constant 0 : index
    %21 = vector.load %arg9[%c0_17, %c0_18] : memref<1x128xf32, #tpu.memory_space<vmem>>, vector<1x128xf32>
    %22 = vector.broadcast %21 : vector<1x128xf32> to vector<16x128xf32>
    %23 = arith.addf %20, %22 : vector<16x128xf32>
    %cst_19 = arith.constant 0.000000e+00 : f32
    %24 = vector.broadcast %cst_19 : f32 to vector<16x128xf32>
    %25 = arith.maximumf %23, %24 : vector<16x128xf32>
    %26 = arith.truncf %25 : vector<16x128xf32> to vector<16x128xbf16>
    %c0_20 = arith.constant 0 : index
    %c0_21 = arith.constant 0 : index
    %27 = vector.load %arg10[%c0_20, %c0_21] : memref<128x512xbf16, #tpu.memory_space<vmem>>, vector<128x512xbf16>
    %cst_22 = arith.constant dense<0.000000e+00> : vector<16x512xf32>
    %28 = tpu.matmul %26, %27, %cst_22 {dimension_numbers = #tpu.dot_dimension_numbers<[1], [0], [0], [1], [0, 0, 1, 1], [], []>} : vector<16x128xbf16>, vector<128x512xbf16>, vector<16x512xf32> -> vector<16x512xf32>
    %29 = arith.truncf %17 : vector<16x128xf32> to vector<16x128xbf16>
    %c0_23 = arith.constant 0 : index
    %c0_24 = arith.constant 0 : index
    %30 = vector.load %arg11[%c0_23, %c0_24] : memref<128x512xbf16, #tpu.memory_space<vmem>>, vector<128x512xbf16>
    %cst_25 = arith.constant dense<0.000000e+00> : vector<16x512xf32>
    %31 = tpu.matmul %29, %30, %cst_25 {dimension_numbers = #tpu.dot_dimension_numbers<[1], [0], [0], [1], [0, 0, 1, 1], [], []>} : vector<16x128xbf16>, vector<128x512xbf16>, vector<16x512xf32> -> vector<16x512xf32>
    %32 = arith.addf %28, %31 : vector<16x512xf32>
    %c0_26 = arith.constant 0 : index
    %c0_27 = arith.constant 0 : index
    %33 = vector.load %arg12[%c0_26, %c0_27] : memref<1x512xf32, #tpu.memory_space<vmem>>, vector<1x512xf32>
    %34 = vector.broadcast %33 : vector<1x512xf32> to vector<16x512xf32>
    %35 = arith.addf %32, %34 : vector<16x512xf32>
    %36 = arith.addf %35, %0 : vector<16x512xf32>
    %c0_28 = arith.constant 0 : index
    %c0_29 = arith.constant 0 : index
    %37 = vector.load %arg17[%c0_28, %c0_29] : memref<16x512xf32, #tpu.memory_space<vmem>>, vector<16x512xf32>
    tpu.vector_store %arg17[%c0_28, %c0_29], %36 {strides = array<i32>} : memref<16x512xf32, #tpu.memory_space<vmem>>, vector<16x512xf32>,
    %c0_30 = arith.constant 0 : index
    %c0_31 = arith.constant 0 : index
    %38 = vector.load %arg3[%c0_30, %c0_31] : memref<16x3712xf32, #tpu.memory_space<vmem>>, vector<16x3712xf32>
    %39 = arith.truncf %38 : vector<16x3712xf32> to vector<16x3712xbf16>
    %c0_32 = arith.constant 0 : index
    %c0_33 = arith.constant 0 : index
    %40 = vector.load %arg13[%c0_32, %c0_33] : memref<3712x256xbf16, #tpu.memory_space<vmem>>, vector<3712x256xbf16>
    %cst_34 = arith.constant dense<0.000000e+00> : vector<16x256xf32>
    %41 = tpu.matmul %39, %40, %cst_34 {dimension_numbers = #tpu.dot_dimension_numbers<[1], [0], [0], [1], [0, 0, 1, 1], [], []>} : vector<16x3712xbf16>, vector<3712x256xbf16>, vector<16x256xf32> -> vector<16x256xf32>
    %c0_35 = arith.constant 0 : index
    %c0_36 = arith.constant 0 : index
    %42 = vector.load %arg14[%c0_35, %c0_36] : memref<1x256xf32, #tpu.memory_space<vmem>>, vector<1x256xf32>
    %43 = vector.broadcast %42 : vector<1x256xf32> to vector<16x256xf32>
    %44 = arith.addf %41, %43 : vector<16x256xf32>
    %c0_37 = arith.constant 0 : index
    %c0_38 = arith.constant 0 : index
    %45 = vector.load %arg18[%c0_37, %c0_38] : memref<16x256xf32, #tpu.memory_space<vmem>>, vector<16x256xf32>
    tpu.vector_store %arg18[%c0_37, %c0_38], %44 {strides = array<i32>} : memref<16x256xf32, #tpu.memory_space<vmem>>, vector<16x256xf32>,
    %c0_39 = arith.constant 0 : index
    %c0_40 = arith.constant 0 : index
    %46 = vector.load %arg15[%c0_39, %c0_40] : memref<1x256xf32, #tpu.memory_space<vmem>>, vector<1x256xf32>
    %47 = vector.broadcast %46 : vector<1x256xf32> to vector<16x256xf32>
    %48 = arith.mulf %44, %47 : vector<16x256xf32>
    %cst_41 = arith.constant dense<0.000000e+00> : vector<16xf32>
    %49 = vector.multi_reduction <add>, %48, %cst_41 [1] : vector<16x256xf32> to vector<16xf32>
    %50 = vector.shape_cast %49 : vector<16xf32> to vector<16x1xf32>
    %c0_42 = arith.constant 0 : index
    %c0_43 = arith.constant 0 : index
    %51 = vector.load %arg16[%c0_42, %c0_43] : memref<1x256xf32, #tpu.memory_space<vmem>>, vector<1x256xf32>
    %52 = vector.broadcast %51 : vector<1x256xf32> to vector<16x256xf32>
    %53 = arith.mulf %44, %52 : vector<16x256xf32>
    %cst_44 = arith.constant dense<0.000000e+00> : vector<16xf32>
    %54 = vector.multi_reduction <add>, %53, %cst_44 [1] : vector<16x256xf32> to vector<16xf32>
    %55 = vector.shape_cast %54 : vector<16xf32> to vector<16x1xf32>
    %56 = arith.maximumf %50, %55 : vector<16x1xf32>
    %57 = arith.subf %50, %56 : vector<16x1xf32>
    %58 = math.exp %57 : vector<16x1xf32>
    %59 = arith.subf %55, %56 : vector<16x1xf32>
    %60 = math.exp %59 : vector<16x1xf32>
    %61 = arith.addf %58, %60 : vector<16x1xf32>
    %62 = math.log %61 : vector<16x1xf32>
    %63 = arith.addf %56, %62 : vector<16x1xf32>
    %64 = arith.subf %50, %63 : vector<16x1xf32>
    %65 = vector.shape_cast %64 : vector<16x1xf32> to vector<16x1xf32>
    %66 = vector.broadcast %65 : vector<16x1xf32> to vector<16x128xf32>
    %67 = arith.subf %55, %63 : vector<16x1xf32>
    %68 = vector.shape_cast %67 : vector<16x1xf32> to vector<16x1xf32>
    %69 = vector.broadcast %68 : vector<16x1xf32> to vector<16x128xf32>
    %70 = tpu.iota {dimensions = array<i32: 1>} : vector<16x128xi32>
    %c0_i32 = arith.constant 0 : i32
    %71 = vector.broadcast %c0_i32 : i32 to vector<16x128xi32>
    %72 = arith.cmpi eq, %70, %71 : vector<16x128xi32>
    %c1_i32 = arith.constant 1 : i32
    %73 = vector.broadcast %c1_i32 : i32 to vector<16x128xi32>
    %74 = arith.cmpi eq, %70, %73 : vector<16x128xi32>
    %cst_45 = arith.constant 0.000000e+00 : f32
    %75 = vector.broadcast %cst_45 : f32 to vector<16x128xf32>
    %76 = arith.select %74, %69, %75 : vector<16x128xi1>, vector<16x128xf32>
    %77 = arith.select %72, %66, %76 : vector<16x128xi1>, vector<16x128xf32>
    %c0_46 = arith.constant 0 : index
    %c0_47 = arith.constant 0 : index
    %78 = vector.load %arg19[%c0_46, %c0_47] : memref<16x128xf32, #tpu.memory_space<vmem>>, vector<16x128xf32>
    tpu.vector_store %arg19[%c0_46, %c0_47], %77 {strides = array<i32>} : memref<16x128xf32, #tpu.memory_space<vmem>>, vector<16x128xf32>,
    return
  }
  func.func @transform_0(%arg0: i32) -> (i32, i32) {
    %c0_i32 = arith.constant 0 : i32
    %c0_i32_0 = arith.constant 0 : i32
    return %arg0, %c0_i32 : i32, i32
  }
  func.func @transform_1(%arg0: i32) -> (i32, i32) {
    %c0_i32 = arith.constant 0 : i32
    %c0_i32_0 = arith.constant 0 : i32
    return %arg0, %c0_i32 : i32, i32
  }
  func.func @transform_2(%arg0: i32) -> (i32, i32) {
    %c0_i32 = arith.constant 0 : i32
    %c0_i32_0 = arith.constant 0 : i32
    return %arg0, %c0_i32 : i32, i32
  }
  func.func @transform_3(%arg0: i32) -> (i32, i32) {
    %c0_i32 = arith.constant 0 : i32
    %c0_i32_0 = arith.constant 0 : i32
    %c0_i32_1 = arith.constant 0 : i32
    return %c0_i32, %c0_i32_0 : i32, i32
  }
  func.func @transform_4(%arg0: i32) -> (i32, i32) {
    %c0_i32 = arith.constant 0 : i32
    %c0_i32_0 = arith.constant 0 : i32
    %c0_i32_1 = arith.constant 0 : i32
    return %c0_i32, %c0_i32_0 : i32, i32
  }
  func.func @transform_5(%arg0: i32) -> (i32, i32) {
    %c0_i32 = arith.constant 0 : i32
    %c0_i32_0 = arith.constant 0 : i32
    %c0_i32_1 = arith.constant 0 : i32
    return %c0_i32, %c0_i32_0 : i32, i32
  }
  func.func @transform_6(%arg0: i32) -> (i32, i32) {
    %c0_i32 = arith.constant 0 : i32
    %c0_i32_0 = arith.constant 0 : i32
    %c0_i32_1 = arith.constant 0 : i32
    return %c0_i32, %c0_i32_0 : i32, i32
  }
  func.func @transform_7(%arg0: i32) -> (i32, i32) {
    %c0_i32 = arith.constant 0 : i32
    %c0_i32_0 = arith.constant 0 : i32
    %c0_i32_1 = arith.constant 0 : i32
    return %c0_i32, %c0_i32_0 : i32, i32
  }
  func.func @transform_8(%arg0: i32) -> (i32, i32) {
    %c0_i32 = arith.constant 0 : i32
    %c0_i32_0 = arith.constant 0 : i32
    %c0_i32_1 = arith.constant 0 : i32
    return %c0_i32, %c0_i32_0 : i32, i32
  }
  func.func @transform_9(%arg0: i32) -> (i32, i32) {
    %c0_i32 = arith.constant 0 : i32
    %c0_i32_0 = arith.constant 0 : i32
    %c0_i32_1 = arith.constant 0 : i32
    return %c0_i32, %c0_i32_0 : i32, i32
  }
  func.func @transform_10(%arg0: i32) -> (i32, i32) {
    %c0_i32 = arith.constant 0 : i32
    %c0_i32_0 = arith.constant 0 : i32
    %c0_i32_1 = arith.constant 0 : i32
    return %c0_i32, %c0_i32_0 : i32, i32
  }
  func.func @transform_11(%arg0: i32) -> (i32, i32) {
    %c0_i32 = arith.constant 0 : i32
    %c0_i32_0 = arith.constant 0 : i32
    %c0_i32_1 = arith.constant 0 : i32
    return %c0_i32, %c0_i32_0 : i32, i32
  }
  func.func @transform_12(%arg0: i32) -> (i32, i32) {
    %c0_i32 = arith.constant 0 : i32
    %c0_i32_0 = arith.constant 0 : i32
    %c0_i32_1 = arith.constant 0 : i32
    return %c0_i32, %c0_i32_0 : i32, i32
  }
  func.func @transform_13(%arg0: i32) -> (i32, i32) {
    %c0_i32 = arith.constant 0 : i32
    %c0_i32_0 = arith.constant 0 : i32
    %c0_i32_1 = arith.constant 0 : i32
    return %c0_i32, %c0_i32_0 : i32, i32
  }
  func.func @transform_14(%arg0: i32) -> (i32, i32) {
    %c0_i32 = arith.constant 0 : i32
    %c0_i32_0 = arith.constant 0 : i32
    %c0_i32_1 = arith.constant 0 : i32
    return %c0_i32, %c0_i32_0 : i32, i32
  }
  func.func @transform_15(%arg0: i32) -> (i32, i32) {
    %c0_i32 = arith.constant 0 : i32
    %c0_i32_0 = arith.constant 0 : i32
    %c0_i32_1 = arith.constant 0 : i32
    return %c0_i32, %c0_i32_0 : i32, i32
  }
  func.func @transform_16(%arg0: i32) -> (i32, i32) {
    %c0_i32 = arith.constant 0 : i32
    %c0_i32_0 = arith.constant 0 : i32
    return %arg0, %c0_i32 : i32, i32
  }
  func.func @transform_17(%arg0: i32) -> (i32, i32) {
    %c0_i32 = arith.constant 0 : i32
    %c0_i32_0 = arith.constant 0 : i32
    return %arg0, %c0_i32 : i32, i32
  }
  func.func @transform_18(%arg0: i32) -> (i32, i32) {
    %c0_i32 = arith.constant 0 : i32
    %c0_i32_0 = arith.constant 0 : i32
    return %arg0, %c0_i32 : i32, i32
  }
}

</mosaic_0001>

<bundles_post_ra>
// kernel: _forward_impl.1
= control target key start
LH: loop header
LB: loop body
LE: loop exit
PB: predicated region body
PF: predicated region fallthrough
CT: control target
= control target key end

     0   :  { %s9059_s0 = inlined_call_operand.vmem [shape: f32[16,512], index: 0, kind: input, shape index: {}]   ;;  %s9060_s1 = inlined_call_operand.vmem [shape: f32[16,128], index: 1, kind: input, shape index: {}]   ;;  %s9061_s2 = inlined_call_operand.vmem [shape: f32[16,3712], index: 2, kind: input, shape index: {}]   ;;  %s9062_s3 = inlined_call_operand.hbm [shape: bf16[128,128], index: 3, kind: input, shape index: {}]   ;;  %s9063_s4 = inlined_call_operand.hbm [shape: f32[1,128], index: 4, kind: input, shape index: {}]   ;;  %s9064_s5 = inlined_call_operand.hbm [shape: bf16[128,128], index: 5, kind: input, shape index: {}]   ;;  %s9065_s6 = inlined_call_operand.hbm [shape: f32[1,128], index: 6, kind: input, shape index: {}]   ;;  %s9066_s7 = inlined_call_operand.hbm [shape: bf16[512,128], index: 7, kind: input, shape index: {}]   ;;  %s9067_s8 = inlined_call_operand.hbm [shape: f32[1,128], index: 8, kind: input, shape index: {}]   ;;  %s9068_s9 = inlined_call_operand.hbm [shape: bf16[128,512], index: 9, kind: input, shape index: {}]   ;;  %s9069_s10 = inlined_call_operand.hbm [shape: bf16[128,512], index: 10, kind: input, shape index: {}]   ;;  %s9070_s11 = inlined_call_operand.hbm [shape: f32[1,512], index: 11, kind: input, shape index: {}]   ;;  %s9071_s12 = inlined_call_operand.hbm [shape: bf16[3712,256], index: 12, kind: input, shape index: {}]   ;;  %s9072_s13 = inlined_call_operand.hbm [shape: f32[1,256], index: 13, kind: input, shape index: {}]   ;;  %s9073_s14 = inlined_call_operand.hbm [shape: f32[1,256], index: 14, kind: input, shape index: {}]   ;;  %s9074_s15 = inlined_call_operand.hbm [shape: f32[1,256], index: 15, kind: input, shape index: {}]   ;;  %s9075_s16 = inlined_call_operand.vmem [shape: f32[16,512], index: 16, kind: output, shape index: {0}]   ;;  %s9076_s17 = inlined_call_operand.vmem [shape: f32[16,256], index: 17, kind: output, shape index: {1}]   ;;  %s9077_s18 = inlined_call_operand.vmem [shape: f32[16,128], index: 18, kind: output, shape index: {2}]  }
   0x1   :  { %9082 = sst [smem:[#allocation30_spill]] %s9059_s0 }
   0x2   :  { %9083 = sst [smem:[#allocation31_spill]] %s9060_s1 }
   0x3   :  { %9084 = sst [smem:[#allocation32_spill]] %s9061_s2 }
   0x4   :  { %24 = vsyncpa [#allocation3], 0 }
   0x5   :  { %25 = vsyncpa [#allocation5], 0 }
   0x6   :  { %26 = vsyncpa [#allocation8], 0 }
   0x7   :  { %27 = vsyncpa [#allocation11], 0 }
   0x8   :  { %28 = vsyncpa [#allocation14], 0 }
   0x9   :  { %29 = vsyncpa [#allocation17], 0  ;;  %s55_s29 = sshll.u32 %s9063_s4, 4  ;;  %s56_s29 = int_to_ptr.hbm [resolvable:$true] %s55_s29 }
   0xa   :  { %30 = vsyncpa [#allocation20], 0  ;;  %s8307_s30 = smov [#allocation4]   ;;  %s79_s20 = sshll.u32 %s9065_s6, 4  ;;  %s80_s20 = int_to_ptr.hbm [resolvable:$true] %s79_s20 }
   0xb   :  { %s57_s0 = sshll.u32 %s8307_s30, 4  ;;  %s8308_s21 = smov [#allocation7]   ;;  %s58_s0 = int_to_ptr.vmem [resolvable:$true] %s57_s0 }
   0xc   :  { %60 = dma.hbm_to_vmem [thread:$0]  %s56_s29, 16, %s58_s0, [#allocation5]  }
   0xd   :  { %s81_s22 = sshll.u32 %s8308_s21, 4  ;;  %s103_s24 = sshll.u32 %s9067_s8, 4  ;;  %s82_s22 = int_to_ptr.vmem [resolvable:$true] %s81_s22  ;;  %s104_s24 = int_to_ptr.hbm [resolvable:$true] %s103_s24 }
   0xe   :  { %84 = dma.hbm_to_vmem [thread:$0]  %s80_s20, 16, %s82_s22, [#allocation8]  }
   0xf   :  { %s8309_s4 = smov [#allocation10]   ;;  %s126_s28 = sshll.u32 %s9069_s10, 4  ;;  %s127_s28 = int_to_ptr.hbm [resolvable:$true] %s126_s28 }
  0x10   :  { %s105_s25 = sshll.u32 %s8309_s4, 4  ;;  %s8310_s6 = smov [#allocation13]   ;;  %s106_s25 = int_to_ptr.vmem [resolvable:$true] %s105_s25 }
  0x11   :  { %108 = dma.hbm_to_vmem [thread:$0]  %s104_s24, 16, %s106_s25, [#allocation11]  }
  0x12   :  { %s128_s29 = sshll.u32 %s8310_s6, 4  ;;  %s150_s19 = sshll.u32 %s9071_s12, 4  ;;  %s129_s29 = int_to_ptr.vmem [resolvable:$true] %s128_s29  ;;  %s151_s19 = int_to_ptr.hbm [resolvable:$true] %s150_s19 }
  0x13   :  { %s8311_s8 = smov 256   ;;  %s8312_s1 = smov 16  }
  0x14   :  { %134 = dma.hbm_to_vmem [thread:$0]  %s127_s28, 4096, %s129_s29, [#allocation14], %s8311_s8, %s8311_s8, %s8312_s1  }
  0x15   :  { %s8313_s20 = smov [#allocation16]   ;;  %s175_s2 = sshll.u32 %s9073_s14, 4  ;;  %s176_s2 = int_to_ptr.hbm [resolvable:$true] %s175_s2 }
  0x16   :  { %s152_s21 = sshll.u32 %s8313_s20, 4  ;;  %s8314_s23 = smov 128   ;;  %s153_s21 = int_to_ptr.vmem [resolvable:$true] %s152_s21 }
  0x17   :  { %s8315_s24 = smov 8   ;;  %s8316_s12 = smov [#allocation19]  }
  0x18   :  { %158 = dma.hbm_to_vmem [thread:$0]  %s151_s19, 59392, %s153_s21, [#allocation17], %s8314_s23, %s8314_s23, %s8315_s24  }
  0x19   :  { %s177_s4 = sshll.u32 %s8316_s12, 4  ;;  %s41_s27 = sshll.u32 %s9062_s3, 4  ;;  %s178_s4 = int_to_ptr.vmem [resolvable:$true] %s177_s4  ;;  %s42_s27 = int_to_ptr.hbm [resolvable:$true] %s41_s27 }
  0x1a   :  { %180 = dma.hbm_to_vmem [thread:$0]  %s176_s2, 32, %s178_s4, [#allocation20]  }
  0x1b   :  { %s8317_s28 = smov [#allocation2]   ;;  %s65_s14 = sshll.u32 %s9064_s5, 4  ;;  %s66_s14 = int_to_ptr.hbm [resolvable:$true] %s65_s14 }
  0x1c   :  { %s43_s6 = sshll.u32 %s8317_s28, 4  ;;  %s8318_s0 = smov 64   ;;  %s44_s6 = int_to_ptr.vmem [resolvable:$true] %s43_s6 }
  0x1d   :  { %s8319_s20 = smov 4   ;;  %s8320_s19 = smov [#allocation6]  }
  0x1e   :  { %49 = dma.hbm_to_vmem [thread:$0]  %s42_s27, 1024, %s44_s6, [#allocation3], %s8318_s0, %s8318_s0, %s8319_s20  }
  0x1f   :  { %s67_s21 = sshll.u32 %s8320_s19, 4  ;;  %s89_s3 = sshll.u32 %s9066_s7, 4  ;;  %s68_s21 = int_to_ptr.vmem [resolvable:$true] %s67_s21  ;;  %s90_s3 = int_to_ptr.hbm [resolvable:$true] %s89_s3 }
  0x20   :  { %73 = dma.hbm_to_vmem [thread:$0]  %s66_s14, 1024, %s68_s21, [#allocation5], %s8318_s0, %s8318_s0, %s8319_s20  }
  0x21   :  { %s113_s24 = sshll.u32 %s9068_s9, 4  ;;  %s8321_s12 = smov [#allocation9]   ;;  %s114_s24 = int_to_ptr.hbm [resolvable:$true] %s113_s24 }
  0x22   :  { %s91_s4 = sshll.u32 %s8321_s12, 4  ;;  %s8322_s5 = smov [#allocation12]   ;;  %s92_s4 = int_to_ptr.vmem [resolvable:$true] %s91_s4 }
  0x23   :  { %97 = dma.hbm_to_vmem [thread:$0]  %s90_s3, 4096, %s92_s4, [#allocation8], %s8318_s0, %s8318_s0, %s8319_s20  }
  0x24   :  { %s115_s25 = sshll.u32 %s8322_s5, 4  ;;  %s140_s28 = sshll.u32 %s9070_s11, 4  ;;  %s116_s25 = int_to_ptr.vmem [resolvable:$true] %s115_s25  ;;  %s141_s28 = int_to_ptr.hbm [resolvable:$true] %s140_s28 }
  0x25   :  { %121 = dma.hbm_to_vmem [thread:$0]  %s114_s24, 4096, %s116_s25, [#allocation11], %s8311_s8, %s8311_s8, %s8312_s1  }
  0x26   :  { %s164_s9 = sshll.u32 %s9072_s13, 4  ;;  %s8323_s29 = smov [#allocation15]   ;;  %s165_s9 = int_to_ptr.hbm [resolvable:$true] %s164_s9 }
  0x27   :  { %s142_s30 = sshll.u32 %s8323_s29, 4  ;;  %s8324_s14 = smov [#allocation18]   ;;  %s143_s30 = int_to_ptr.vmem [resolvable:$true] %s142_s30 }
  0x28   :  { %145 = dma.hbm_to_vmem [thread:$0]  %s141_s28, 64, %s143_s30, [#allocation14]  }
  0x29   :  { %s166_s0 = sshll.u32 %s8324_s14, 4  ;;  %s186_s11 = sshll.u32 %s9074_s15, 4  ;;  %s167_s0 = int_to_ptr.vmem [resolvable:$true] %s166_s0  ;;  %s187_s11 = int_to_ptr.hbm [resolvable:$true] %s186_s11 }
  0x2a   :  { %169 = dma.hbm_to_vmem [thread:$0]  %s165_s9, 32, %s167_s0, [#allocation17]  }
  0x2b   :  { %s8325_s21 = smov [#allocation21]  }
  0x2c   :  { %s188_s8 = sshll.u32 %s8325_s21, 4  ;;  %s189_s8 = int_to_ptr.vmem [resolvable:$true] %s188_s8 }
  0x2d   :  { %191 = dma.hbm_to_vmem [thread:$0]  %s187_s11, 32, %s189_s8, [#allocation20]  }
  0x2e   :  { %8293 = dma.done.wait [#allocation3], 1024  }
  0x2f   :  { %8294 = vsyncadd [#allocation3], 4294966272 }
  0x30   :  { %8295 = dma.done.wait [#allocation5], 1040  }
  0x31   :  { %8296 = vsyncadd [#allocation5], 4294966256 }
  0x32   :  { %8297 = dma.done.wait [#allocation8], 4112  }
  0x33   :  { %8298 = vsyncadd [#allocation8], 4294963184 }
  0x34   :  { %8299 = dma.done.wait [#allocation11], 4112  }
  0x35   :  { %8300 = vsyncadd [#allocation11], 4294963184 }
  0x36   :  { %8301 = dma.done.wait [#allocation14], 4160  }
  0x37   :  { %8302 = vsyncadd [#allocation14], 4294963136 }
  0x38   :  { %8303 = dma.done.wait [#allocation17], 59424  }
  0x39   :  { %8304 = vsyncadd [#allocation17], 4294907872 }
  0x3a   :  { %8305 = dma.done.wait [#allocation20], 64  }
  0x3b   :  { %8306 = vsyncadd [#allocation20], 4294967232  ;;  %v7369_v0 = vld [vmem:[#allocation2 + $0x38] sm:$0xff]  ;;  %v7368_v1 = vld [vmem:[#allocation2 + $0x30] sm:$0xff]  ;;  %s9085_s1 = sld [smem:[#allocation31_spill]] }
  0x3c   :  { %323 = vmatpush.bf16.msra.mxu0 %v7369_v0  ;;  %v7377_v2 = vld [vmem:[#allocation6 + $0x38] sm:$0xff]  ;;  %v7376_v3 = vld [vmem:[#allocation6 + $0x30] sm:$0xff]  ;;  %v7367_v6 = vld [vmem:[#allocation2 + $0x28] sm:$0xff]  ;;  %s9086_s23 = sld [smem:[#allocation30_spill]] }
  0x3d   :  { %408 = vmatpush.bf16.msra.mxu1 %v7377_v2  ;;  %v7385_v4 = vld [vmem:[#allocation9 + $0x38] sm:$0xff]  ;;  %v7384_v7 = vld [vmem:[#allocation9 + $0x30] sm:$0xff]  ;;  %v7375_v9 = vld [vmem:[#allocation6 + $0x28] sm:$0xff]  ;;  %s9087_s19 = sld [smem:[#allocation32_spill]] }
  0x3e   :  { %v7393_v5 = vld [vmem:[#allocation9 + $0x78] sm:$0xff]  ;;  %688 = vmatpush.bf16.msra.mxu2 %v7385_v4  ;;  %v7392_v8 = vld [vmem:[#allocation9 + $0x70] sm:$0xff]  ;;  %v7383_v11 = vld [vmem:[#allocation9 + $0x28] sm:$0xff] }
  0x3f   :  { %702 = vmatpush.bf16.msra.mxu3 %v7393_v5  ;;  %v7366_v10 = vld [vmem:[#allocation2 + $0x20] sm:$0xff]  ;;  %v7391_v12 = vld [vmem:[#allocation9 + $0x68] sm:$0xff]  ;;  %v7365_v14 = vld [vmem:[#allocation2 + $0x18] sm:$0xff] }
  0x40   :  { %324 = vmatpush.bf16.msra.mxu0 %v7368_v1  ;;  %v7374_v13 = vld [vmem:[#allocation6 + $0x20] sm:$0xff]  ;;  %v7373_v15 = vld [vmem:[#allocation6 + $0x18] sm:$0xff]  ;;  %v7364_v16 = vld [vmem:[#allocation2 + $0x10] sm:$0xff] }
  0x41   :  { %409 = vmatpush.bf16.msra.mxu1 %v7376_v3  ;;  %v7372_v17 = vld [vmem:[#allocation6 + $0x10] sm:$0xff]  ;;  %v7363_v18 = vld [vmem:[#allocation2 + $0x8] sm:$0xff]  ;;  %v7362_v20 = vld [vmem:[#allocation2] sm:$0xff] }
  0x42   :  { %689 = vmatpush.bf16.msra.mxu2 %v7384_v7  ;;  %v7371_v19 = vld [vmem:[#allocation6 + $0x8] sm:$0xff]  ;;  %v252_v21 = vld [vmem:[%s9085_s1] sm:$0xff]  ;;  %v7400_v29 = vld [vmem:[#allocation9 + $0xb0] sm:$0xff] }
  0x43   :  { %703 = vmatpush.bf16.msra.mxu3 %v7392_v8  ;;  %v253_v22 = vld [vmem:[%s9085_s1 + $0x8] sm:$0xff]  ;;  %v7401_v23 = vld [vmem:[#allocation9 + $0xb8] sm:$0xff]  ;;  %v7408_v31 = vld [vmem:[#allocation9 + $0xf0] sm:$0xff] }
  0x44   :  { %325 = vmatpush.bf16.msra.mxu0 %v7367_v6  ;;  %v254_v24 = vpack.c.bf16 %v253_v22, %v252_v21  ;;  %v7370_v25 = vld [vmem:[#allocation6] sm:$0xff]  ;;  %v7399_v33 = vld [vmem:[#allocation9 + $0xa8] sm:$0xff]  ;;  %v7380_v34 = vld [vmem:[#allocation9 + $0x10] sm:$0xff] }
  0x45   :  { %410 = vmatpush.bf16.msra.mxu1 %v7375_v9  ;;  %v7382_v26 = vld [vmem:[#allocation9 + $0x20] sm:$0xff]  ;;  %v7409_v27 = vld [vmem:[#allocation9 + $0xf8] sm:$0xff]  ;;  %v7407_v35 = vld [vmem:[#allocation9 + $0xe8] sm:$0xff] }
  0x46   :  { %690 = vmatpush.bf16.msra.mxu2 %v7383_v11  ;;  %v7390_v28 = vld [vmem:[#allocation9 + $0x60] sm:$0xff]  ;;  %v7381_v30 = vld [vmem:[#allocation9 + $0x18] sm:$0xff]  ;;  %v7388_v36 = vld [vmem:[#allocation9 + $0x50] sm:$0xff] }
  0x47   :  { %704 = vmatpush.bf16.msra.mxu3 %v7391_v12  ;;  %v7389_v32 = vld [vmem:[#allocation9 + $0x58] sm:$0xff]  ;;  %v7398_v37 = vld [vmem:[#allocation9 + $0xa0] sm:$0xff]  ;;  %v7379_v38 = vld [vmem:[#allocation9 + $0x8] sm:$0xff] }
  0x48   :  { %326 = vmatpush.bf16.msra.mxu0 %v7366_v10  ;;  %v7406_v39 = vld [vmem:[#allocation9 + $0xe0] sm:$0xff]  ;;  %v7387_v40 = vld [vmem:[#allocation9 + $0x48] sm:$0xff]  ;;  %v7397_v41 = vld [vmem:[#allocation9 + $0x98] sm:$0xff] }
  0x49   :  { %411 = vmatpush.bf16.msra.mxu1 %v7374_v13  ;;  %v7378_v42 = vld [vmem:[#allocation9] sm:$0xff]  ;;  %v7405_v43 = vld [vmem:[#allocation9 + $0xd8] sm:$0xff]  ;;  %v7396_v45 = vld [vmem:[#allocation9 + $0x90] sm:$0xff] }
  0x4a   :  { %691 = vmatpush.bf16.msra.mxu2 %v7382_v26  ;;  %v7386_v44 = vld [vmem:[#allocation9 + $0x40] sm:$0xff]  ;;  %v7404_v48 = vld [vmem:[#allocation9 + $0xd0] sm:$0xff]  ;;  %v7395_v53 = vld [vmem:[#allocation9 + $0x88] sm:$0xff] }
  0x4b   :  { %705 = vmatpush.bf16.msra.mxu3 %v7390_v28  ;;  %v244_v46 = vld [vmem:[%s9086_s23] sm:$0xff]  ;;  %v245_v49 = vld [vmem:[%s9086_s23 + $0x8] sm:$0xff]  ;;  %v246_v56 = vld [vmem:[%s9086_s23 + $0x10] sm:$0xff] }
  0x4c   :  { %327 = vmatpush.bf16.msra.mxu0 %v7365_v14  ;;  %v248_v47 = vld [vmem:[%s9086_s23 + $0x20] sm:$0xff]  ;;  %v249_v51 = vld [vmem:[%s9086_s23 + $0x28] sm:$0xff]  ;;  %v250_v57 = vld [vmem:[%s9086_s23 + $0x30] sm:$0xff] }
  0x4d   :  { %412 = vmatpush.bf16.msra.mxu1 %v7373_v15  ;;  %v424_v50 = vpack.c.bf16 %v248_v47, %v244_v46  ;;  %v425_v52 = vpack.c.bf16 %v249_v51, %v245_v49  ;;  %v7403_v54 = vld [vmem:[#allocation9 + $0xc8] sm:$0xff]  ;;  %v7394_v55 = vld [vmem:[#allocation9 + $0x80] sm:$0xff]  ;;  %v426_v59 = vpack.c.bf16 %v250_v57, %v246_v56  ;;  %v7472_v61 = vld [vmem:[#allocation13 + $0xec] sm:$0xf0] }
  0x4e   :  { %692 = vmatpush.bf16.msra.mxu2 %v7381_v30  ;;  %v7402_v58 = vld [vmem:[#allocation9 + $0xc0] sm:$0xff]  ;;  %v5366_v1 = vld [vmem:[#allocation13 + $0xf0] sm:$0xf0]  ;;  %v7468_v3 = vld [vmem:[#allocation13 + $0xcc] sm:$0xf0] }
  0x4f   :  { %706 = vmatpush.bf16.msra.mxu3 %v7389_v32  ;;  %v5364_v60 = vld [vmem:[#allocation13 + $0xe0] sm:$0xf]  ;;  %v7470_v62 = vld [vmem:[#allocation13 + $0xe4] sm:$0xf]  ;;  %v5350_v6 = vld [vmem:[#allocation13 + $0xd0] sm:$0xf0] }
  0x50   :  { %328 = vmatpush.bf16.msra.mxu0 %v7364_v16  ;;  %v5365_v0 = vor.u32 %v7472_v61, %v5364_v60  ;;  %v5348_v2 = vld [vmem:[#allocation13 + $0xc0] sm:$0xf]  ;;  %v5369_v4 = vor.u32 %v7470_v62, %v5366_v1  ;;  %v7466_v5 = vld [vmem:[#allocation13 + $0xc4] sm:$0xf]  ;;  %v7957_v7 = vld [vmem:[#allocation4] ss:$0 sm:$0xff] }
  0x51   :  { %413 = vmatpush.bf16.msra.mxu1 %v7372_v17  ;;  %v5349_v8 = vor.u32 %v7468_v3, %v5348_v2  ;;  %v5332_v9 = vld [vmem:[#allocation13 + $0xa0] sm:$0xf]  ;;  %v5353_v10 = vor.u32 %v7466_v5, %v5350_v6  ;;  %v7464_v11 = vld [vmem:[#allocation13 + $0xac] sm:$0xf0]  ;;  %v5372_v12 = vld [vmem:[#allocation13 + $0xe8] sm:$0xf] }
  0x52   :  { %693 = vmatpush.bf16.msra.mxu2 %v7380_v34  ;;  %v7473_v13 = vld [vmem:[#allocation13 + $0xf4] sm:$0xf0]  ;;  %v7462_v14 = vld [vmem:[#allocation13 + $0xa4] sm:$0xf]  ;;  %v5334_v15 = vld [vmem:[#allocation13 + $0xb0] sm:$0xf0]  ;;  %v5333_v17 = vor.u32 %v7464_v11, %v5332_v9 }
  0x53   :  { %707 = vmatpush.bf16.msra.mxu3 %v7388_v36  ;;  %v5373_v16 = vor.u32 %v7473_v13, %v5372_v12  ;;  %v5337_v21 = vor.u32 %v7462_v14, %v5334_v15  ;;  %v5316_v22 = vld [vmem:[#allocation13 + $0x80] sm:$0xf]  ;;  %v7458_v26 = vld [vmem:[#allocation13 + $0x84] sm:$0xf]  ;;  %v5340_v28 = vld [vmem:[#allocation13 + $0xa8] sm:$0xf] }
  0x54   :  { %329 = vmatpush.bf16.msra.mxu0 %v7363_v18  ;;  %v5356_v18 = vld [vmem:[#allocation13 + $0xc8] sm:$0xf]  ;;  %v7471_v30 = vld [vmem:[#allocation13 + $0xec] sm:$0xf]  ;;  %v7465_v32 = vld [vmem:[#allocation13 + $0xb4] sm:$0xf0] }
  0x55   :  { %414 = vmatpush.bf16.msra.mxu1 %v7371_v19  ;;  %v7469_v19 = vld [vmem:[#allocation13 + $0xd4] sm:$0xf0]  ;;  %v5300_v34 = vld [vmem:[#allocation13 + $0x60] sm:$0xf]  ;;  %v7467_v46 = vld [vmem:[#allocation13 + $0xcc] sm:$0xf] }
  0x56   :  { %694 = vmatpush.bf16.msra.mxu2 %v7379_v38  ;;  %v5358_v47 = vld [vmem:[#allocation13 + $0xd8] sm:$0xf0]  ;;  %v5284_v49 = vld [vmem:[#allocation13 + $0x40] sm:$0xf]  ;;  %v7450_v56 = vld [vmem:[#allocation13 + $0x44] sm:$0xf] }
  0x57   :  { %708 = vmatpush.bf16.msra.mxu3 %v7387_v40  ;;  %v5324_v40 = vld [vmem:[#allocation13 + $0x88] sm:$0xf]  ;;  %v5286_v57 = vld [vmem:[#allocation13 + $0x50] sm:$0xf0]  ;;  %v5268_v61 = vld [vmem:[#allocation13 + $0x20] sm:$0xf] }
  0x58   :  { %330 = vmatpush.bf16.msra.mxu0 %v7362_v20  ;;  %v5292_v1 = vld [vmem:[#allocation13 + $0x48] sm:$0xf]  ;;  %v7453_v2 = vld [vmem:[#allocation13 + $0x54] sm:$0xf0]  ;;  %v5270_v5 = vld [vmem:[#allocation13 + $0x30] sm:$0xf0] }
  0x59   :  { %415 = vmatpush.bf16.msra.mxu1 %v7370_v25  ;;  %v7459_v6 = vld [vmem:[#allocation13 + $0x8c] sm:$0xf]  ;;  %v251_v9 = vld [vmem:[%s9086_s23 + $0x38] sm:$0xff]  ;;  %v5252_v11 = vld [vmem:[#allocation13] sm:$0xf]  ;;  %v5293_v12 = vor.u32 %v7453_v2, %v5292_v1 }
  0x5a   :  { %695 = vmatpush.bf16.msra.mxu2 %v7378_v42  ;;  %v7454_v42 = vld [vmem:[#allocation13 + $0x64] sm:$0xf]  ;;  %v7444_v14 = vld [vmem:[#allocation13 + $0xc] sm:$0xf0]  ;;  %v5276_v15 = vld [vmem:[#allocation13 + $0x28] sm:$0xf] }
  0x5b   :  { %331 = vmatmul.bf16.vlgmr.msra.gmra.mxu0 %v254_v24  ;;  %709 = vmatpush.bf16.msra.mxu3 %v7386_v44  ;;  %v5357_v24 = vor.u32 %v7469_v19, %v5356_v18  ;;  %v7461_v44 = vld [vmem:[#allocation13 + $0x94] sm:$0xf0]  ;;  %v7442_v18 = vld [vmem:[#allocation13 + $0x4] sm:$0xf]  ;;  %v5254_v19 = vld [vmem:[#allocation13 + $0x10] sm:$0xf0] }
  0x5c   :  { %716 = vmatpush.bf16.msrb.mxu0 %v7401_v23  ;;  %v7460_v23 = vld [vmem:[#allocation13 + $0x8c] sm:$0xf0] }
  0x5d   :  { %730 = vmatpush.bf16.msrb.mxu1 %v7409_v27  ;;  %696 = vmatmul.bf16.vlgmr.msra.gmra.mxu2 %v424_v50  ;;  %v5318_v27 = vld [vmem:[#allocation13 + $0x90] sm:$0xf0]  ;;  %v5325_v50 = vor.u32 %v7461_v44, %v5324_v40  ;;  %v7436_v40 = vld [vmem:[#allocation12 + $0xcc] sm:$0xf0] }
  0x5e   :  { %710 = vmatmul.bf16.vlgmr.msra.gmra.mxu3 %v425_v52  ;;  %972 = vmatpush.bf16.msrb.mxu2 %v5365_v0  ;;  %v5321_v38 = vor.u32 %v7458_v26, %v5318_v27  ;;  %v7452_v52 = vld [vmem:[#allocation13 + $0x4c] sm:$0xf0]  ;;  %v5494_v26 = vld [vmem:[#allocation12 + $0xf0] sm:$0xf0] }
  0x5f   :  { %986 = vmatpush.bf16.msrb.mxu3 %v5369_v4  ;;  %v5285_v60 = vor.u32 %v7452_v52, %v5284_v49  ;;  %v7448_v0 = vld [vmem:[#allocation13 + $0x2c] sm:$0xf0]  ;;  %v7446_v4 = vld [vmem:[#allocation13 + $0x24] sm:$0xf]  ;;  %v5278_v49 = vld [vmem:[#allocation13 + $0x38] sm:$0xf0] }
  0x60   :  { %717 = vmatpush.bf16.msrb.mxu0 %v7400_v29  ;;  %v5273_v13 = vor.u32 %v7446_v4, %v5270_v5  ;;  %v7430_v52 = vld [vmem:[#allocation12 + $0xa4] sm:$0xf]  ;;  %v5484_v5 = vld [vmem:[#allocation12 + $0xc8] sm:$0xf] }
  0x61   :  { %731 = vmatpush.bf16.msrb.mxu1 %v7408_v31  ;;  %v5374_v31 = vld [vmem:[#allocation13 + $0xf8] sm:$0xf0] }
  0x62   :  { %973 = vmatpush.bf16.msrb.mxu2 %v5349_v8  ;;  %v247_v8 = vld [vmem:[%s9086_s23 + $0x18] sm:$0xff] }
  0x63   :  { %987 = vmatpush.bf16.msrb.mxu3 %v5353_v10  ;;  %v5269_v10 = vor.u32 %v7448_v0, %v5268_v61  ;;  %v7426_v61 = vld [vmem:[#allocation12 + $0x84] sm:$0xf]  ;;  %v5502_v0 = vld [vmem:[#allocation12 + $0xf8] sm:$0xf0] }
  0x64   :  { %718 = vmatpush.bf16.msrb.mxu0 %v7399_v33  ;;  %v5317_v33 = vor.u32 %v7460_v23, %v5316_v22  ;;  %v5492_v22 = vld [vmem:[#allocation12 + $0xe0] sm:$0xf]  ;;  %v7440_v23 = vld [vmem:[#allocation12 + $0xec] sm:$0xf0] }
  0x65   :  { %732 = vmatpush.bf16.msrb.mxu1 %v7407_v35  ;;  %v5341_v35 = vor.u32 %v7465_v32, %v5340_v28  ;;  %v427_v28 = vpack.c.bf16 %v251_v9, %v247_v8  ;;  %v5428_v8 = vld [vmem:[#allocation12 + $0x60] sm:$0xf]  ;;  %v7424_v9 = vld [vmem:[#allocation12 + $0x6c] sm:$0xf0] }
  0x66   :  { %974 = vmatpush.bf16.msrb.mxu2 %v5333_v17 }
  0x67   :  { %988 = vmatpush.bf16.msrb.mxu3 %v5337_v21  ;;  %v5310_v21 = vld [vmem:[#allocation13 + $0x78] sm:$0xf0] }
  0x68   :  { %719 = vmatpush.bf16.msrb.mxu0 %v7398_v37 }
  0x69   :  { %733 = vmatpush.bf16.msrb.mxu1 %v7406_v39  ;;  %v7456_v39 = vld [vmem:[#allocation13 + $0x6c] sm:$0xf0] }
  0x6a   :  { %975 = vmatpush.bf16.msrb.mxu2 %v5317_v33  ;;  %v5493_v33 = vor.u32 %v7440_v23, %v5492_v22  ;;  %v7418_v22 = vld [vmem:[#allocation12 + $0x44] sm:$0xf] }
  0x6b   :  { %989 = vmatpush.bf16.msrb.mxu3 %v5321_v38  ;;  %v5294_v38 = vld [vmem:[#allocation13 + $0x58] sm:$0xf0] }
  0x6c   :  { %720 = vmatpush.bf16.msrb.mxu0 %v7397_v41  ;;  %v5377_v41 = vor.u32 %v7471_v30, %v5374_v31  ;;  %v5260_v30 = vld [vmem:[#allocation13 + $0x8] sm:$0xf]  ;;  %v7445_v31 = vld [vmem:[#allocation13 + $0x14] sm:$0xf0] }
  0x6d   :  { %734 = vmatpush.bf16.msrb.mxu1 %v7405_v43  ;;  %v5302_v43 = vld [vmem:[#allocation13 + $0x70] sm:$0xf0] }
  0x6e   :  { %v5305_v51 = vor.u32 %v7454_v42, %v5302_v43  ;;  %v5478_v42 = vld [vmem:[#allocation12 + $0xd0] sm:$0xf0]  ;;  %v5261_v43 = vor.u32 %v7445_v31, %v5260_v30  ;;  %v7429_v30 = vld [vmem:[#allocation12 + $0x94] sm:$0xf0] }
  0x70   :  { %721 = vmatpush.bf16.msrb.mxu0 %v7396_v45  ;;  %990 = vmatpush.bf16.msrb.mxu3 %v5305_v51  ;;  %v7432_v51 = vld [vmem:[#allocation12 + $0xac] sm:$0xf0] }
  0x71   :  { %735 = vmatpush.bf16.msrb.mxu1 %v7404_v48  ;;  %v5301_v48 = vor.u32 %v7456_v39, %v5300_v34  ;;  %v7451_v34 = vld [vmem:[#allocation13 + $0x4c] sm:$0xf]  ;;  %v5476_v39 = vld [vmem:[#allocation12 + $0xc0] sm:$0xf] }
  0x73   :  { %976 = vmatpush.bf16.msrb.mxu2 %v5301_v48 }
  0x74   :  { %722 = vmatpush.bf16.msrb.mxu0 %v7395_v53  ;;  %v5308_v53 = vld [vmem:[#allocation13 + $0x68] sm:$0xf] }
  0x75   :  { %736 = vmatpush.bf16.msrb.mxu1 %v7403_v54  ;;  %v7457_v54 = vld [vmem:[#allocation13 + $0x74] sm:$0xf0] }
  0x76   :  { %v5309_v62 = vor.u32 %v7457_v54, %v5308_v53  ;;  %v5462_v53 = vld [vmem:[#allocation12 + $0xb0] sm:$0xf0] }
  0x77   :  { %977 = vmatpush.bf16.msrb.mxu2 %v5285_v60  ;;  %v7428_v60 = vld [vmem:[#allocation12 + $0x8c] sm:$0xf0] }
  0x78   :  { %723 = vmatpush.bf16.msrb.mxu0 %v7394_v55  ;;  %v5361_v55 = vor.u32 %v7467_v46, %v5358_v47  ;;  %v5477_v46 = vor.u32 %v7436_v40, %v5476_v39  ;;  %v7447_v47 = vld [vmem:[#allocation13 + $0x2c] sm:$0xf] }
  0x79   :  { %737 = vmatpush.bf16.msrb.mxu1 %v7402_v58  ;;  %v7463_v58 = vld [vmem:[#allocation13 + $0xac] sm:$0xf]  ;;  %v5281_v54 = vor.u32 %v7447_v47, %v5278_v49 }
  0x7a   :  { %v7423_v49 = vld [vmem:[#allocation12 + $0x6c] sm:$0xf] }
  0x7b   :  { %724 = vmatmul.bf16.vlgmr.msrb.gmra.mxu0 %v426_v59  ;;  %v5342_v59 = vld [vmem:[#allocation13 + $0xb8] sm:$0xf0]  ;;  %978 = vmatpush.bf16.msrb.mxu2 %v5269_v10  ;;  %v7422_v10 = vld [vmem:[#allocation12 + $0x64] sm:$0xf] }
  0x7c   :  { %1000 = vmatpush.bf16.msra.mxu0 %v5373_v16  ;;  %v5345_v3 = vor.u32 %v7463_v58, %v5342_v59  ;;  %v7449_v16 = vld [vmem:[#allocation13 + $0x34] sm:$0xf0]  ;;  %v5465_v58 = vor.u32 %v7430_v52, %v5462_v53  ;;  %v5444_v59 = vld [vmem:[#allocation12 + $0x80] sm:$0xf]  ;;  %v5420_v53 = vld [vmem:[#allocation12 + $0x48] sm:$0xf] }
  0x7d   :  { %v5277_v27 = vor.u32 %v7449_v16, %v5276_v15  ;;  %v5445_v2 = vor.u32 %v7428_v60, %v5444_v59  ;;  %v5404_v59 = vld [vmem:[#allocation12 + $0x28] sm:$0xf]  ;;  %v7417_v60 = vld [vmem:[#allocation12 + $0x34] sm:$0xf0] }
  0x80   :  { %1001 = vmatpush.bf16.msra.mxu0 %v5357_v24  ;;  %v5253_v24 = vor.u32 %v7444_v14, %v5252_v11  ;;  %v5429_v11 = vor.u32 %v7424_v9, %v5428_v8  ;;  %v5486_v14 = vld [vmem:[#allocation12 + $0xd8] sm:$0xf0] }
  0x81   :  { %v7958_v9 = vld [vmem:[#allocation7] ss:$0 sm:$0xff] }
  0x82   :  { %979 = vmatpush.bf16.msrb.mxu2 %v5253_v24  ;;  %v5414_v24 = vld [vmem:[#allocation12 + $0x50] sm:$0xf0] }
  0x84   :  { %1002 = vmatpush.bf16.msra.mxu0 %v5341_v35  ;;  %v5500_v35 = vld [vmem:[#allocation12 + $0xe8] sm:$0xf] }
  0x86   :  { %1188 = vmatpush.bf16.msra.mxu2 %v5493_v33  ;;  %v7416_v33 = vld [vmem:[#allocation12 + $0x2c] sm:$0xf0] }
  0x88   :  { %1003 = vmatpush.bf16.msra.mxu0 %v5325_v50  ;;  %v5460_v50 = vld [vmem:[#allocation12 + $0xa0] sm:$0xf] }
  0x8a   :  { %1189 = vmatpush.bf16.msra.mxu2 %v5477_v46  ;;  %v7410_v46 = vld [vmem:[#allocation12 + $0x4] sm:$0xf] }
  0x8c   :  { %1004 = vmatpush.bf16.msra.mxu0 %v5309_v62  ;;  %v5446_v62 = vld [vmem:[#allocation12 + $0x90] sm:$0xf0] }
  0x90   :  { %1005 = vmatpush.bf16.msra.mxu0 %v5293_v12  ;;  %v5430_v12 = vld [vmem:[#allocation12 + $0x70] sm:$0xf0] }
  0x91   :  { %v5433_v15 = vor.u32 %v7422_v10, %v5430_v12  ;;  %v7959_v10 = vld [vmem:[#allocation10] ss:$0 sm:$0xff] }
  0x94   :  { %1006 = vmatpush.bf16.msra.mxu0 %v5277_v27  ;;  %v5417_v27 = vor.u32 %v7418_v22, %v5414_v24  ;;  %v5692_v22 = vld [vmem:[#allocation16 + $0x170] sm:$0xf] }
  0x98   :  { %1007 = vmatpush.bf16.msra.mxu0 %v5261_v43 }
  0xd8   :  { %v332_v63 = vpop.f32.mrf.mxu0 }
  0xd9   :  { %v333_v20 = vadd.f32 %v7957_v7, %v332_v63  ;;  %v5289_v63 = vor.u32 %v7450_v56, %v5286_v57  ;;  %v7443_v56 = vld [vmem:[#allocation13 + $0xc] sm:$0xf]  ;;  %v5262_v57 = vld [vmem:[#allocation13 + $0x18] sm:$0xf0] }
  0xda   :  { %v5265_v1 = vor.u32 %v7443_v56, %v5262_v57  ;;  %v7419_v56 = vld [vmem:[#allocation12 + $0x4c] sm:$0xf]  ;;  %v5422_v57 = vld [vmem:[#allocation12 + $0x58] sm:$0xf0] }
  0xdb   :  { %v337_v36 = vmax.f32 %v333_v20, 0.0  ;;  %991 = vmatpush.bf16.msrb.mxu3 %v5289_v63  ;;  %v7455_v20 = vld [vmem:[#allocation13 + $0x6c] sm:$0xf] }
  0xdc   :  { %v5313_v32 = vor.u32 %v7455_v20, %v5310_v21  ;;  %v7439_v63 = vld [vmem:[#allocation12 + $0xec] sm:$0xf]  ;;  %v5412_v20 = vld [vmem:[#allocation12 + $0x40] sm:$0xf]  ;;  %v7420_v21 = vld [vmem:[#allocation12 + $0x4c] sm:$0xf0] }
  0xdd   :  { %v5505_v4 = vor.u32 %v7439_v63, %v5502_v0  ;;  %v5413_v23 = vor.u32 %v7420_v21, %v5412_v20  ;;  %v5406_v63 = vld [vmem:[#allocation12 + $0x38] sm:$0xf0] }
  0xde   :  { %v7505_v20 = vld [vmem:[#allocation16 + $0xf4] sm:$0xf0] }
  0xdf   :  { %992 = vmatpush.bf16.msrb.mxu3 %v5273_v13  ;;  %v7435_v13 = vld [vmem:[#allocation12 + $0xcc] sm:$0xf] }
  0xe0   :  { %v334_v25 = vpop.f32.mrf.mxu0  ;;  %v5489_v16 = vor.u32 %v7435_v13, %v5486_v14  ;;  %v697_v8 = vpop.f32.mrf.mxu2 }
  0xe1   :  { %v335_v29 = vadd.f32 %v7957_v7, %v334_v25  ;;  %v5326_v7 = vld [vmem:[#allocation13 + $0x98] sm:$0xf0]  ;;  %v7438_v25 = vld [vmem:[#allocation12 + $0xe4] sm:$0xf]  ;;  %v698_v14 = vadd.f32 %v7959_v10, %v697_v8 }
  0xe2   :  { %v5329_v17 = vor.u32 %v7459_v6, %v5326_v7  ;;  %v7437_v6 = vld [vmem:[#allocation12 + $0xd4] sm:$0xf0]  ;;  %v5732_v8 = vld [vmem:[#allocation16 + $0x1c0] sm:$0xf] }
  0xe3   :  { %v338_v37 = vmax.f32 %v335_v29, 0.0  ;;  %v5257_v29 = vor.u32 %v7442_v18, %v5254_v19  ;;  %v5485_v7 = vor.u32 %v7437_v6, %v5484_v5  ;;  %v7433_v18 = vld [vmem:[#allocation12 + $0xb4] sm:$0xf0]  ;;  %v5390_v5 = vld [vmem:[#allocation12 + $0x18] sm:$0xf0] }
  0xe5   :  { %v339_v45 = vpack.c.bf16 %v338_v37, %v337_v36  ;;  %v7441_v36 = vld [vmem:[#allocation12 + $0xf4] sm:$0xf0]  ;;  %v5497_v37 = vor.u32 %v7438_v25, %v5494_v26  ;;  %993 = vmatpush.bf16.msrb.mxu3 %v5257_v29  ;;  %v7431_v25 = vld [vmem:[#allocation12 + $0xac] sm:$0xf]  ;;  %v5470_v26 = vld [vmem:[#allocation12 + $0xb8] sm:$0xf0] }
  0xe6   :  { %v5501_v44 = vor.u32 %v7441_v36, %v5500_v35  ;;  %v5452_v29 = vld [vmem:[#allocation12 + $0x88] sm:$0xf]  ;;  %v5398_v36 = vld [vmem:[#allocation12 + $0x30] sm:$0xf0] }
  0xe7   :  { %416 = vmatmul.bf16.vlgmr.msra.gmra.mxu1 %v339_v45  ;;  %v5297_v45 = vor.u32 %v7451_v34, %v5294_v38  ;;  %v5453_v31 = vor.u32 %v7429_v30, %v5452_v29  ;;  %v7414_v34 = vld [vmem:[#allocation12 + $0x24] sm:$0xf]  ;;  %v5454_v38 = vld [vmem:[#allocation12 + $0x98] sm:$0xf0] }
  0xe8   :  { %1014 = vmatpush.bf16.msra.mxu1 %v5377_v41  ;;  %v7434_v41 = vld [vmem:[#allocation12 + $0xc4] sm:$0xf]  ;;  %1216 = vmatpush.bf16.msrb.mxu0 %v5501_v44  ;;  %v5401_v39 = vor.u32 %v7414_v34, %v5398_v36  ;;  %v5380_v44 = vld [vmem:[#allocation12] sm:$0xf]  ;;  %v699_v21 = vpop.f32.mrf.mxu2  ;;  %v7487_v34 = vld [vmem:[#allocation16 + $0x64] sm:$0xf0] }
  0xe9   :  { %1202 = vmatpush.bf16.msra.mxu3 %v5497_v37  ;;  %v5481_v48 = vor.u32 %v7434_v41, %v5478_v42  ;;  %v7427_v37 = vld [vmem:[#allocation12 + $0x8c] sm:$0xf]  ;;  %v5436_v41 = vld [vmem:[#allocation12 + $0x68] sm:$0xf]  ;;  %v7425_v42 = vld [vmem:[#allocation12 + $0x74] sm:$0xf0] }
  0xea   :  { %v5457_v40 = vor.u32 %v7427_v37, %v5454_v38  ;;  %v5437_v43 = vor.u32 %v7425_v42, %v5436_v41  ;;  %v7503_v36 = vld [vmem:[#allocation16 + $0xe4] sm:$0xf0]  ;;  %v5748_v42 = vld [vmem:[#allocation16 + $0x1e0] sm:$0xf] }
  0xeb   :  { %v7519_v41 = vld [vmem:[#allocation16 + $0x164] sm:$0xf0] }
  0xec   :  { %1015 = vmatpush.bf16.msra.mxu1 %v5361_v55  ;;  %v5461_v55 = vor.u32 %v7432_v51, %v5460_v50  ;;  %1217 = vmatpush.bf16.msrb.mxu0 %v5485_v7  ;;  %v5438_v50 = vld [vmem:[#allocation12 + $0x78] sm:$0xf0] }
  0xed   :  { %1203 = vmatpush.bf16.msra.mxu3 %v5481_v48  ;;  %v5382_v48 = vld [vmem:[#allocation12 + $0x10] sm:$0xf0]  ;;  %v5441_v52 = vor.u32 %v7423_v49, %v5438_v50  ;;  %v7485_v50 = vld [vmem:[#allocation16 + $0x54] sm:$0xf0] }
  0xee   :  { %1190 = vmatpush.bf16.msra.mxu2 %v5461_v55  ;;  %v5385_v51 = vor.u32 %v7410_v46, %v5382_v48  ;;  %v5548_v49 = vld [vmem:[#allocation16 + $0x50] sm:$0xf] }
  0xf0   :  { %1016 = vmatpush.bf16.msra.mxu1 %v5345_v3  ;;  %v5449_v3 = vor.u32 %v7426_v61, %v5446_v62  ;;  %v5405_v61 = vor.u32 %v7417_v60, %v5404_v59  ;;  %v7415_v62 = vld [vmem:[#allocation12 + $0x2c] sm:$0xf]  ;;  %v7533_v59 = vld [vmem:[#allocation16 + $0x1d4] sm:$0xf0]  ;;  %v5549_v60 = vor.u32 %v7485_v50, %v5548_v49  ;;  %v5708_v49 = vld [vmem:[#allocation16 + $0x190] sm:$0xf] }
  0xf1   :  { %1204 = vmatpush.bf16.msra.mxu3 %v5465_v58  ;;  %v5425_v58 = vor.u32 %v7419_v56, %v5422_v57  ;;  %v5409_v0 = vor.u32 %v7415_v62, %v5406_v63  ;;  %v5676_v56 = vld [vmem:[#allocation16 + $0x150] sm:$0xf]  ;;  %v7517_v57 = vld [vmem:[#allocation16 + $0x154] sm:$0xf0] }
  0xf2   :  { %1191 = vmatpush.bf16.msra.mxu2 %v5445_v2  ;;  %v7413_v2 = vld [vmem:[#allocation12 + $0x14] sm:$0xf0]  ;;  %v7525_v50 = vld [vmem:[#allocation16 + $0x194] sm:$0xf0] }
  0xf4   :  { %1017 = vmatpush.bf16.msra.mxu1 %v5329_v17  ;;  %v5468_v17 = vld [vmem:[#allocation12 + $0xa8] sm:$0xf] }
  0xf5   :  { %1205 = vmatpush.bf16.msra.mxu3 %v5449_v3  ;;  %v5469_v19 = vor.u32 %v7433_v18, %v5468_v17  ;;  %v5564_v17 = vld [vmem:[#allocation16 + $0x70] sm:$0xf]  ;;  %v7489_v18 = vld [vmem:[#allocation16 + $0x74] sm:$0xf0] }
  0xf6   :  { %1192 = vmatpush.bf16.msra.mxu2 %v5429_v11  ;;  %v711_v11 = vpop.f32.mrf.mxu3  ;;  %v5565_v30 = vor.u32 %v7489_v18, %v5564_v17  ;;  %v5596_v17 = vld [vmem:[#allocation16 + $0xb0] sm:$0xf]  ;;  %v7497_v18 = vld [vmem:[#allocation16 + $0xb4] sm:$0xf0] }
  0xf7   :  { %738 = vmatmul.bf16.vlgmr.msrb.gmra.mxu1 %v427_v28  ;;  %1218 = vmatpush.bf16.msrb.mxu0 %v5469_v19  ;;  %v5473_v28 = vor.u32 %v7431_v25, %v5470_v26  ;;  %v5628_v19 = vld [vmem:[#allocation16 + $0xf0] sm:$0xf] }
  0xf8   :  { %1018 = vmatpush.bf16.msra.mxu1 %v5313_v32  ;;  %v5396_v32 = vld [vmem:[#allocation12 + $0x20] sm:$0xf]  ;;  %v5756_v26 = vld [vmem:[#allocation16 + $0x1f0] sm:$0xf] }
  0xf9   :  { %1206 = vmatpush.bf16.msra.mxu3 %v5433_v15  ;;  %v5397_v35 = vor.u32 %v7416_v33, %v5396_v32  ;;  %v725_v15 = vpop.f32.mrf.mxu0  ;;  %v700_v32 = vadd.f32 %v7959_v10, %v699_v21  ;;  %v5556_v33 = vld [vmem:[#allocation16 + $0x60] sm:$0xf]  ;;  %v5660_v21 = vld [vmem:[#allocation16 + $0x130] sm:$0xf] }
  0xfa   :  { %1193 = vmatpush.bf16.msra.mxu2 %v5413_v23  ;;  %v7521_v23 = vld [vmem:[#allocation16 + $0x174] sm:$0xf0]  ;;  %v5557_v46 = vor.u32 %v7487_v34, %v5556_v33 }
  0xfb   :  { %1219 = vmatpush.bf16.msrb.mxu0 %v5453_v31  ;;  %v5629_v31 = vor.u32 %v7505_v20, %v5628_v19  ;;  %v5693_v38 = vor.u32 %v7521_v23, %v5692_v22  ;;  %v7513_v22 = vld [vmem:[#allocation16 + $0x134] sm:$0xf0] }
  0xfc   :  { %1019 = vmatpush.bf16.msra.mxu1 %v5297_v45  ;;  %v7412_v45 = vld [vmem:[#allocation12 + $0xc] sm:$0xf0]  ;;  %v5661_v33 = vor.u32 %v7513_v22, %v5660_v21  ;;  %v5940_v21 = vld [vmem:[#allocation16 + $0x360] sm:$0xf] }
  0xfd   :  { %1207 = vmatpush.bf16.msra.mxu3 %v5417_v27  ;;  %v5381_v47 = vor.u32 %v7412_v45, %v5380_v44  ;;  %v7537_v27 = vld [vmem:[#allocation16 + $0x1f4] sm:$0xf0]  ;;  %v1280_v22 = vld [vmem:[%s9087_s19 + $0x10] sm:$0xff] }
  0xfe   :  { %1194 = vmatpush.bf16.msra.mxu2 %v5397_v35  ;;  %v5620_v35 = vld [vmem:[#allocation16 + $0xe0] sm:$0xf]  ;;  %v713_v37 = vpop.f32.mrf.mxu3 }
  0xff   :  { %1220 = vmatpush.bf16.msrb.mxu0 %v5437_v43  ;;  %v7535_v43 = vld [vmem:[#allocation16 + $0x1e4] sm:$0xf0]  ;;  %v714_v48 = vadd.f32 %v713_v37, %v700_v32  ;;  %v5716_v37 = vld [vmem:[#allocation16 + $0x1a0] sm:$0xf] }
 0x100   :  { %1020 = vmatpush.bf16.msra.mxu1 %v5281_v54  ;;  %v7421_v54 = vld [vmem:[#allocation12 + $0x54] sm:$0xf0]  ;;  %v7495_v32 = vld [vmem:[#allocation16 + $0xa4] sm:$0xf0] }
 0x101   :  { %1208 = vmatpush.bf16.msra.mxu3 %v5401_v39  ;;  %v5421_v55 = vor.u32 %v7421_v54, %v5420_v53  ;;  %v5757_v39 = vor.u32 %v7537_v27, %v5756_v26  ;;  %v7501_v53 = vld [vmem:[#allocation16 + $0xd4] sm:$0xf0] }
 0x102   :  { %1195 = vmatpush.bf16.msra.mxu2 %v5381_v47  ;;  %v5621_v47 = vor.u32 %v7503_v36, %v5620_v35  ;;  %v5652_v35 = vld [vmem:[#allocation16 + $0x120] sm:$0xf]  ;;  %v7511_v36 = vld [vmem:[#allocation16 + $0x124] sm:$0xf0] }
 0x103   :  { %1221 = vmatpush.bf16.msrb.mxu0 %v5421_v55  ;;  %v5749_v55 = vor.u32 %v7535_v43, %v5748_v42  ;;  %v7477_v42 = vld [vmem:[#allocation16 + $0x14] sm:$0xf0]  ;;  %v5580_v43 = vld [vmem:[#allocation16 + $0x90] sm:$0xf] }
 0x104   :  { %1021 = vmatpush.bf16.msra.mxu1 %v5265_v1  ;;  %v5388_v1 = vld [vmem:[#allocation12 + $0x8] sm:$0xf] }
 0x105   :  { %1209 = vmatpush.bf16.msra.mxu3 %v5385_v51  ;;  %v5389_v3 = vor.u32 %v7413_v2, %v5388_v1  ;;  %v727_v51 = vpop.f32.mrf.mxu0  ;;  %v7483_v1 = vld [vmem:[#allocation16 + $0x44] sm:$0xf0]  ;;  %v5604_v2 = vld [vmem:[#allocation16 + $0xc0] sm:$0xf] }
 0x106   :  { %v728_v62 = vadd.f32 %v727_v51, %v714_v48  ;;  %v7509_v48 = vld [vmem:[#allocation16 + $0x114] sm:$0xf0]  ;;  %v5508_v51 = vld [vmem:[#allocation16] sm:$0xf] }
 0x107   :  { %1222 = vmatpush.bf16.msrb.mxu0 %v5405_v61 }
 0x108   :  { %1230 = vmatpush.bf16.msrb.mxu1 %v5505_v4  ;;  %v7411_v4 = vld [vmem:[#allocation12 + $0xc] sm:$0xf] }
 0x109   :  { %v5393_v6 = vor.u32 %v7411_v4, %v5390_v5  ;;  %v5677_v4 = vor.u32 %v7517_v57, %v5676_v56  ;;  %v7491_v56 = vld [vmem:[#allocation16 + $0x84] sm:$0xf0]  ;;  %v5820_v57 = vld [vmem:[#allocation16 + $0x270] sm:$0xf] }
 0x10b   :  { %1223 = vmatpush.bf16.msrb.mxu0 %v5389_v3  ;;  %v7499_v3 = vld [vmem:[#allocation16 + $0xc4] sm:$0xf0] }
 0x10c   :  { %1231 = vmatpush.bf16.msrb.mxu1 %v5489_v16 }
 0x110   :  { %1232 = vmatpush.bf16.msrb.mxu1 %v5473_v28  ;;  %v712_v28 = vadd.f32 %v711_v11, %v698_v14  ;;  %v5532_v11 = vld [vmem:[#allocation16 + $0x30] sm:$0xf] }
 0x112   :  { %v726_v44 = vadd.f32 %v725_v15, %v712_v28  ;;  %v5605_v15 = vor.u32 %v7499_v3, %v5604_v2  ;;  %v5597_v28 = vor.u32 %v7497_v18, %v5596_v17  ;;  %v7585_v2 = vld [vmem:[#allocation16 + $0x374] sm:$0xf0]  ;;  %v5700_v3 = vld [vmem:[#allocation16 + $0x180] sm:$0xf]  ;;  %v1308_v17 = vld [vmem:[%s9087_s19 + $0xf0] sm:$0xff] }
 0x113   :  { %v7567_v18 = vld [vmem:[#allocation16 + $0x2e4] sm:$0xf0] }
 0x114   :  { %1233 = vmatpush.bf16.msrb.mxu1 %v5457_v40  ;;  %v5684_v40 = vld [vmem:[#allocation16 + $0x160] sm:$0xf] }
 0x115   :  { %v5685_v54 = vor.u32 %v7519_v41, %v5684_v40  ;;  %v5516_v41 = vld [vmem:[#allocation16 + $0x10] sm:$0xf] }
 0x118   :  { %1234 = vmatpush.bf16.msrb.mxu1 %v5441_v52  ;;  %v5612_v52 = vld [vmem:[#allocation16 + $0xd0] sm:$0xf] }
 0x119   :  { %v5613_v63 = vor.u32 %v7501_v53, %v5612_v52  ;;  %v7475_v52 = vld [vmem:[#allocation16 + $0x4] sm:$0xf0]  ;;  %v5517_v53 = vor.u32 %v7477_v42, %v5516_v41 }
 0x11c   :  { %1235 = vmatpush.bf16.msrb.mxu1 %v5425_v58  ;;  %v5740_v58 = vld [vmem:[#allocation16 + $0x1d0] sm:$0xf] }
 0x11d   :  { %v5741_v5 = vor.u32 %v7533_v59, %v5740_v58  ;;  %v7553_v58 = vld [vmem:[#allocation16 + $0x274] sm:$0xf0]  ;;  %v5884_v59 = vld [vmem:[#allocation16 + $0x2f0] sm:$0xf] }
 0x120   :  { %1236 = vmatpush.bf16.msrb.mxu1 %v5409_v0  ;;  %v5540_v0 = vld [vmem:[#allocation16 + $0x40] sm:$0xf] }
 0x121   :  { %v5541_v14 = vor.u32 %v7483_v1, %v5540_v0  ;;  %v7507_v0 = vld [vmem:[#allocation16 + $0x104] sm:$0xf0]  ;;  %v5948_v1 = vld [vmem:[#allocation16 + $0x370] sm:$0xf] }
 0x124   :  { %1237 = vmatpush.bf16.msrb.mxu1 %v5393_v6  ;;  %v5668_v6 = vld [vmem:[#allocation16 + $0x140] sm:$0xf] }
 0x164   :  { %v417_v7 = vpop.f32.mrf.mxu1 }
 0x165   :  { %v418_v12 = vadd.f32 %v7958_v9, %v417_v7  ;;  %v7515_v7 = vld [vmem:[#allocation16 + $0x144] sm:$0xf0] }
 0x166   :  { %v5669_v19 = vor.u32 %v7515_v7, %v5668_v6  ;;  %v5812_v7 = vld [vmem:[#allocation16 + $0x260] sm:$0xf] }
 0x167   :  { %v422_v24 = vmax.f32 %v418_v12, 0.0 }
 0x16c   :  { %v419_v13 = vpop.f32.mrf.mxu1 }
 0x16d   :  { %v420_v16 = vadd.f32 %v7958_v9, %v419_v13  ;;  %v7531_v9 = vld [vmem:[#allocation16 + $0x1c4] sm:$0xf0] }
 0x16e   :  { %v5733_v20 = vor.u32 %v7531_v9, %v5732_v8  ;;  %v7551_v8 = vld [vmem:[#allocation16 + $0x264] sm:$0xf0]  ;;  %v5876_v9 = vld [vmem:[#allocation16 + $0x2e0] sm:$0xf] }
 0x16f   :  { %v423_v25 = vmax.f32 %v420_v16, 0.0  ;;  %v7481_v16 = vld [vmem:[#allocation16 + $0x34] sm:$0xf0] }
 0x170   :  { %v5533_v27 = vor.u32 %v7481_v16, %v5532_v11  ;;  %v7601_v11 = vld [vmem:[#allocation16 + $0x3f4] sm:$0xf0]  ;;  %v1279_v16 = vld [vmem:[%s9087_s19 + $0x8] sm:$0xff] }
 0x171   :  { %v779_v29 = vpack.c.bf16 %v423_v25, %v422_v24  ;;  %v5724_v24 = vld [vmem:[#allocation16 + $0x1b0] sm:$0xf]  ;;  %v7529_v25 = vld [vmem:[#allocation16 + $0x1b4] sm:$0xf0] }
 0x172   :  { %v5725_v34 = vor.u32 %v7529_v25, %v5724_v24  ;;  %v1309_v25 = vld [vmem:[%s9087_s19 + $0xf8] sm:$0xff] }
 0x173   :  { %980 = vmatmul.bf16.vlgmr.msrb.gmra.mxu2 %v779_v29  ;;  %994 = vmatmul.bf16.vlgmr.msrb.gmra.mxu3 %v779_v29 }
 0x174   :  { %1008 = vmatmul.bf16.vlgmr.msra.gmra.mxu0 %v779_v29  ;;  %1022 = vmatmul.bf16.vlgmr.msra.gmra.mxu1 %v779_v29  ;;  %v739_v45 = vpop.f32.mrf.mxu1  ;;  %v5524_v29 = vld [vmem:[#allocation16 + $0x20] sm:$0xf] }
 0x175   :  { %4155 = vmatpush.bf16.msrb.mxu2 %v5565_v30  ;;  %4169 = vmatpush.bf16.msrb.mxu3 %v5629_v31  ;;  %v740_v61 = vadd.f32 %v739_v45, %v726_v44  ;;  %v7479_v30 = vld [vmem:[#allocation16 + $0x24] sm:$0xf0]  ;;  %v5588_v31 = vld [vmem:[#allocation16 + $0xa0] sm:$0xf]  ;;  %v7493_v44 = vld [vmem:[#allocation16 + $0x94] sm:$0xf0]  ;;  %v5653_v45 = vor.u32 %v7511_v36, %v5652_v35 }
 0x176   :  { %4183 = vmatpush.bf16.msra.mxu0 %v5693_v38  ;;  %4197 = vmatpush.bf16.msra.mxu1 %v5757_v39  ;;  %v7527_v38 = vld [vmem:[#allocation16 + $0x1a4] sm:$0xf0]  ;;  %v5525_v39 = vor.u32 %v7479_v30, %v5524_v29  ;;  %v5589_v40 = vor.u32 %v7495_v32, %v5588_v31  ;;  %v6004_v30 = vld [vmem:[#allocation16 + $0x3e0] sm:$0xf]  ;;  %v8522_v32 = vpack.c.bf16 %v1308_v17, %v1279_v16  ;;  %v5804_v35 = vld [vmem:[#allocation16 + $0x250] sm:$0xf] }
 0x177   :  { %v744_v12 = vmax.f32 %v740_v61, 0.0  ;;  %v7599_v31 = vld [vmem:[#allocation16 + $0x3e4] sm:$0xf0]  ;;  %v7549_v36 = vld [vmem:[#allocation16 + $0x254] sm:$0xf0] }
 0x178   :  { %v6005_v42 = vor.u32 %v7599_v31, %v6004_v30  ;;  %v7575_v16 = vld [vmem:[#allocation16 + $0x324] sm:$0xf0]  ;;  %v5972_v17 = vld [vmem:[#allocation16 + $0x3a0] sm:$0xf]  ;;  %v7573_v31 = vld [vmem:[#allocation16 + $0x314] sm:$0xf0] }
 0x179   :  { %4156 = vmatpush.bf16.msrb.mxu2 %v5557_v46  ;;  %4170 = vmatpush.bf16.msrb.mxu3 %v5621_v47  ;;  %v5717_v46 = vor.u32 %v7527_v38, %v5716_v37  ;;  %v5644_v47 = vld [vmem:[#allocation16 + $0x110] sm:$0xf]  ;;  %v7565_v38 = vld [vmem:[#allocation16 + $0x2d4] sm:$0xf0]  ;;  %v7539_v30 = vld [vmem:[#allocation16 + $0x204] sm:$0xf0] }
 0x17a   :  { %4184 = vmatpush.bf16.msra.mxu0 %v5685_v54  ;;  %4198 = vmatpush.bf16.msra.mxu1 %v5749_v55  ;;  %v5581_v54 = vor.u32 %v7493_v44, %v5580_v43  ;;  %v5572_v55 = vld [vmem:[#allocation16 + $0x80] sm:$0xf]  ;;  %v5645_v61 = vor.u32 %v7509_v48, %v5644_v47  ;;  %v5868_v37 = vld [vmem:[#allocation16 + $0x2d0] sm:$0xf]  ;;  %v7581_v44 = vld [vmem:[#allocation16 + $0x354] sm:$0xf0]  ;;  %v5805_v47 = vor.u32 %v7549_v36, %v5804_v35 }
 0x17b   :  { %v5573_v6 = vor.u32 %v7491_v56, %v5572_v55  ;;  %v5932_v43 = vld [vmem:[#allocation16 + $0x350] sm:$0xf]  ;;  %v5869_v48 = vor.u32 %v7565_v38, %v5868_v37  ;;  %v5924_v55 = vld [vmem:[#allocation16 + $0x340] sm:$0xf]  ;;  %v7579_v56 = vld [vmem:[#allocation16 + $0x344] sm:$0xf0] }
 0x17c   :  { %v741_v10 = vpop.f32.mrf.mxu1  ;;  %v5828_v37 = vld [vmem:[#allocation16 + $0x280] sm:$0xf]  ;;  %v7555_v38 = vld [vmem:[#allocation16 + $0x284] sm:$0xf0] }
 0x17d   :  { %4157 = vmatpush.bf16.msrb.mxu2 %v5549_v60  ;;  %4171 = vmatpush.bf16.msrb.mxu3 %v5613_v63  ;;  %v742_v13 = vadd.f32 %v741_v10, %v728_v62  ;;  %v7569_v60 = vld [vmem:[#allocation16 + $0x2f4] sm:$0xf0]  ;;  %v5709_v62 = vor.u32 %v7525_v50, %v5708_v49  ;;  %v5636_v63 = vld [vmem:[#allocation16 + $0x100] sm:$0xf]  ;;  %v6012_v10 = vld [vmem:[#allocation16 + $0x3f0] sm:$0xf] }
 0x17e   :  { %4185 = vmatpush.bf16.msra.mxu0 %v5677_v4  ;;  %4199 = vmatpush.bf16.msra.mxu1 %v5741_v5  ;;  %v7523_v4 = vld [vmem:[#allocation16 + $0x184] sm:$0xf0]  ;;  %v5509_v5 = vor.u32 %v7475_v52, %v5508_v51  ;;  %v6013_v24 = vor.u32 %v7601_v11, %v6012_v10  ;;  %v5796_v49 = vld [vmem:[#allocation16 + $0x240] sm:$0xf] }
 0x17f   :  { %v745_v23 = vmax.f32 %v742_v13, 0.0  ;;  %v5821_v13 = vor.u32 %v7553_v58, %v5820_v57  ;;  %v7547_v50 = vld [vmem:[#allocation16 + $0x244] sm:$0xf0]  ;;  %v5860_v51 = vld [vmem:[#allocation16 + $0x2c0] sm:$0xf] }
 0x180   :  { %v7563_v52 = vld [vmem:[#allocation16 + $0x2c4] sm:$0xf0]  ;;  %v5988_v57 = vld [vmem:[#allocation16 + $0x3c0] sm:$0xf] }
 0x181   :  { %v746_v26 = vpack.c.bf16 %v745_v23, %v744_v12  ;;  %4158 = vmatpush.bf16.msrb.mxu2 %v5541_v14  ;;  %4172 = vmatpush.bf16.msrb.mxu3 %v5605_v15  ;;  %v1278_v12 = vld [vmem:[%s9087_s19] sm:$0xff]  ;;  %v5885_v14 = vor.u32 %v7569_v60, %v5884_v59  ;;  %v1307_v15 = vld [vmem:[%s9087_s19 + $0xe8] sm:$0xff]  ;;  %v5949_v23 = vor.u32 %v7585_v2, %v5948_v1  ;;  %v7595_v58 = vld [vmem:[#allocation16 + $0x3c4] sm:$0xf0] }
 0x182   :  { %4186 = vmatpush.bf16.msra.mxu0 %v5669_v19  ;;  %4200 = vmatpush.bf16.msra.mxu1 %v5733_v20  ;;  %v5637_v19 = vor.u32 %v7507_v0, %v5636_v63  ;;  %v5701_v20 = vor.u32 %v7523_v4, %v5700_v3  ;;  %v8520_v29 = vpack.c.bf16 %v1307_v15, %v1278_v12  ;;  %v5852_v63 = vld [vmem:[#allocation16 + $0x2b0] sm:$0xf]  ;;  %v7561_v0 = vld [vmem:[#allocation16 + $0x2b4] sm:$0xf0]  ;;  %v7543_v10 = vld [vmem:[#allocation16 + $0x224] sm:$0xf0] }
 0x183   :  { %1196 = vmatmul.bf16.vlgmr.msra.gmra.mxu2 %v746_v26  ;;  %1210 = vmatmul.bf16.vlgmr.msra.gmra.mxu3 %v746_v26  ;;  %v5797_v59 = vor.u32 %v7547_v50, %v5796_v49  ;;  %v5861_v60 = vor.u32 %v7563_v52, %v5860_v51  ;;  %v5925_v1 = vor.u32 %v7579_v56, %v5924_v55  ;;  %v5916_v3 = vld [vmem:[#allocation16 + $0x330] sm:$0xf]  ;;  %v7577_v4 = vld [vmem:[#allocation16 + $0x334] sm:$0xf0]  ;;  %v5844_v11 = vld [vmem:[#allocation16 + $0x2a0] sm:$0xf] }
 0x184   :  { %1224 = vmatmul.bf16.vlgmr.msrb.gmra.mxu0 %v746_v26  ;;  %1238 = vmatmul.bf16.vlgmr.msrb.gmra.mxu1 %v746_v26  ;;  %v1281_v26 = vld [vmem:[%s9087_s19 + $0x18] sm:$0xff]  ;;  %v5989_v2 = vor.u32 %v7595_v58, %v5988_v57  ;;  %v7559_v12 = vld [vmem:[#allocation16 + $0x2a4] sm:$0xf0]  ;;  %v5908_v15 = vld [vmem:[#allocation16 + $0x320] sm:$0xf]  ;;  %v5829_v56 = vor.u32 %v7555_v38, %v5828_v37 }
 0x185   :  { %4159 = vmatpush.bf16.msrb.mxu2 %v5533_v27  ;;  %4173 = vmatpush.bf16.msrb.mxu3 %v5597_v28  ;;  %v1310_v27 = vld [vmem:[%s9087_s19 + $0x100] sm:$0xff]  ;;  %v7583_v28 = vld [vmem:[#allocation16 + $0x364] sm:$0xf0]  ;;  %v5892_v51 = vld [vmem:[#allocation16 + $0x300] sm:$0xf] }
 0x186   :  { %4187 = vmatpush.bf16.msra.mxu0 %v5661_v33  ;;  %4201 = vmatpush.bf16.msra.mxu1 %v5725_v34  ;;  %v5813_v33 = vor.u32 %v7551_v8, %v5812_v7  ;;  %v5877_v34 = vor.u32 %v7567_v18, %v5876_v9  ;;  %v5941_v41 = vor.u32 %v7583_v28, %v5940_v21  ;;  %v5780_v9 = vld [vmem:[#allocation16 + $0x220] sm:$0xf]  ;;  %v7591_v18 = vld [vmem:[#allocation16 + $0x3a4] sm:$0xf0]  ;;  %v5772_v21 = vld [vmem:[#allocation16 + $0x210] sm:$0xf] }
 0x187   :  { %v5853_v8 = vor.u32 %v7561_v0, %v5852_v63  ;;  %v5764_v28 = vld [vmem:[#allocation16 + $0x200] sm:$0xf]  ;;  %v7571_v52 = vld [vmem:[#allocation16 + $0x304] sm:$0xf0]  ;;  %v6268_v63 = vld [vmem:[#allocation16 + $0x5f0] sm:$0xf] }
 0x188   :  { %v5765_v55 = vor.u32 %v7539_v30, %v5764_v28  ;;  %v6068_v57 = vld [vmem:[#allocation16 + $0x460] sm:$0xf]  ;;  %v7615_v58 = vld [vmem:[#allocation16 + $0x464] sm:$0xf0]  ;;  %v7665_v0 = vld [vmem:[#allocation16 + $0x5f4] sm:$0xf0] }
 0x189   :  { %4160 = vmatpush.bf16.msrb.mxu2 %v5525_v39  ;;  %4174 = vmatpush.bf16.msrb.mxu3 %v5589_v40  ;;  %v8524_v39 = vpack.c.bf16 %v1309_v25, %v1280_v22  ;;  %v8526_v40 = vpack.c.bf16 %v1310_v27, %v1281_v26  ;;  %v7541_v22 = vld [vmem:[#allocation16 + $0x214] sm:$0xf0]  ;;  %v5909_v25 = vor.u32 %v7575_v16, %v5908_v15  ;;  %v5900_v27 = vld [vmem:[#allocation16 + $0x310] sm:$0xf]  ;;  %v6116_v37 = vld [vmem:[#allocation16 + $0x4c0] sm:$0xf] }
 0x18a   :  { %4188 = vmatpush.bf16.msra.mxu0 %v5653_v45  ;;  %4202 = vmatpush.bf16.msra.mxu1 %v5717_v46  ;;  %v5996_v45 = vld [vmem:[#allocation16 + $0x3d0] sm:$0xf]  ;;  %v7597_v46 = vld [vmem:[#allocation16 + $0x3d4] sm:$0xf0]  ;;  %v5973_v26 = vor.u32 %v7591_v18, %v5972_v17  ;;  %v5773_v35 = vor.u32 %v7541_v22, %v5772_v21  ;;  %v5901_v49 = vor.u32 %v7573_v31, %v5900_v27  ;;  %v7647_v17 = vld [vmem:[#allocation16 + $0x564] sm:$0xf0] }
 0x18b   :  { %v6069_v15 = vor.u32 %v7615_v58, %v6068_v57  ;;  %v6260_v18 = vld [vmem:[#allocation16 + $0x5e0] sm:$0xf]  ;;  %v6124_v21 = vld [vmem:[#allocation16 + $0x4d0] sm:$0xf]  ;;  %v7629_v22 = vld [vmem:[#allocation16 + $0x4d4] sm:$0xf0] }
 0x18c   :  { %v6188_v28 = vld [vmem:[#allocation16 + $0x550] sm:$0xf]  ;;  %v6125_v31 = vor.u32 %v7629_v22, %v6124_v21  ;;  %v7627_v38 = vld [vmem:[#allocation16 + $0x4c4] sm:$0xf0] }
 0x18d   :  { %4161 = vmatpush.bf16.msrb.mxu2 %v5517_v53  ;;  %4175 = vmatpush.bf16.msrb.mxu3 %v5581_v54  ;;  %v5933_v53 = vor.u32 %v7581_v44, %v5932_v43  ;;  %v5997_v54 = vor.u32 %v7597_v46, %v5996_v45  ;;  %v6140_v43 = vld [vmem:[#allocation16 + $0x4f0] sm:$0xf]  ;;  %v7633_v44 = vld [vmem:[#allocation16 + $0x4f4] sm:$0xf0]  ;;  %v1311_v46 = vld [vmem:[%s9087_s19 + $0x108] sm:$0xff] }
 0x18e   :  { %4189 = vmatpush.bf16.msra.mxu0 %v5645_v61  ;;  %4203 = vmatpush.bf16.msra.mxu1 %v5709_v62  ;;  %v5788_v61 = vld [vmem:[#allocation16 + $0x230] sm:$0xf]  ;;  %v7545_v62 = vld [vmem:[#allocation16 + $0x234] sm:$0xf0] }
 0x18f   :  { %v5789_v7 = vor.u32 %v7545_v62, %v5788_v61  ;;  %v1282_v45 = vld [vmem:[%s9087_s19 + $0x20] sm:$0xff]  ;;  %v6141_v61 = vor.u32 %v7633_v44, %v6140_v43  ;;  %v6180_v44 = vld [vmem:[#allocation16 + $0x540] sm:$0xf] }
 0x190   :  { %v7649_v62 = vld [vmem:[#allocation16 + $0x574] sm:$0xf0] }
 0x191   :  { %4162 = vmatpush.bf16.msrb.mxu2 %v5509_v5  ;;  %4176 = vmatpush.bf16.msrb.mxu3 %v5573_v6  ;;  %v5980_v5 = vld [vmem:[#allocation16 + $0x3b0] sm:$0xf]  ;;  %v7593_v6 = vld [vmem:[#allocation16 + $0x3b4] sm:$0xf0] }
 0x192   :  { %4190 = vmatpush.bf16.msra.mxu0 %v5637_v19  ;;  %4204 = vmatpush.bf16.msra.mxu1 %v5701_v20  ;;  %v5781_v19 = vor.u32 %v7543_v10, %v5780_v9  ;;  %v5845_v20 = vor.u32 %v7559_v12, %v5844_v11  ;;  %v1285_v9 = vld [vmem:[%s9087_s19 + $0x38] sm:$0xff]  ;;  %v1314_v10 = vld [vmem:[%s9087_s19 + $0x120] sm:$0xff] }
 0x193   :  { %v6060_v11 = vld [vmem:[#allocation16 + $0x450] sm:$0xf] }
 0x194   :  { %4163 = vmatmul.bf16.vlgmr.msrb.gmra.mxu2 %v8520_v29  ;;  %4177 = vmatmul.bf16.vlgmr.msrb.gmra.mxu3 %v8522_v32 }
 0x195   :  { %4211 = vmatpush.bf16.msra.mxu2 %v5821_v13  ;;  %4225 = vmatpush.bf16.msra.mxu3 %v5885_v14  ;;  %v5917_v13 = vor.u32 %v7577_v4, %v5916_v3  ;;  %v5981_v14 = vor.u32 %v7593_v6, %v5980_v5  ;;  %v5893_v3 = vor.u32 %v7571_v52, %v5892_v51  ;;  %v1284_v5 = vld [vmem:[%s9087_s19 + $0x30] sm:$0xff]  ;;  %v6108_v51 = vld [vmem:[#allocation16 + $0x4b0] sm:$0xf]  ;;  %v7625_v52 = vld [vmem:[#allocation16 + $0x4b4] sm:$0xf0] }
 0x196   :  { %4239 = vmatpush.bf16.msrb.mxu0 %v5949_v23  ;;  %4253 = vmatpush.bf16.msrb.mxu1 %v6013_v24  ;;  %v5836_v23 = vld [vmem:[#allocation16 + $0x290] sm:$0xf]  ;;  %v7557_v24 = vld [vmem:[#allocation16 + $0x294] sm:$0xf0]  ;;  %v8547_v6 = vpack.c.bf16 %v1311_v46, %v1282_v45  ;;  %v6117_v46 = vor.u32 %v7627_v38, %v6116_v37  ;;  %v6109_v58 = vor.u32 %v7625_v52, %v6108_v51  ;;  %v1287_v37 = vld [vmem:[%s9087_s19 + $0x48] sm:$0xff] }
 0x197   :  { %4191 = vmatmul.bf16.vlgmr.msra.gmra.mxu0 %v8524_v39  ;;  %4205 = vmatmul.bf16.vlgmr.msra.gmra.mxu1 %v8526_v40  ;;  %v5837_v36 = vor.u32 %v7557_v24, %v5836_v23  ;;  %v8562_v24 = vpack.c.bf16 %v1314_v10, %v1285_v9  ;;  %v7639_v9 = vld [vmem:[#allocation16 + $0x524] sm:$0xf0]  ;;  %v6228_v10 = vld [vmem:[#allocation16 + $0x5a0] sm:$0xf] }
 0x198   :  { %v1316_v38 = vld [vmem:[%s9087_s19 + $0x130] sm:$0xff]  ;;  %v6212_v52 = vld [vmem:[#allocation16 + $0x580] sm:$0xf] }
 0x199   :  { %4212 = vmatpush.bf16.msra.mxu2 %v5813_v33  ;;  %4226 = vmatpush.bf16.msra.mxu3 %v5877_v34  ;;  %v5964_v33 = vld [vmem:[#allocation16 + $0x390] sm:$0xf]  ;;  %v7589_v34 = vld [vmem:[#allocation16 + $0x394] sm:$0xf0]  ;;  %v7635_v51 = vld [vmem:[#allocation16 + $0x504] sm:$0xf0] }
 0x19a   :  { %4240 = vmatpush.bf16.msrb.mxu0 %v5941_v41  ;;  %4254 = vmatpush.bf16.msrb.mxu1 %v6005_v42  ;;  %v6076_v41 = vld [vmem:[#allocation16 + $0x470] sm:$0xf]  ;;  %v7617_v42 = vld [vmem:[#allocation16 + $0x474] sm:$0xf0]  ;;  %v5965_v50 = vor.u32 %v7589_v34, %v5964_v33 }
 0x19b   :  { %v7645_v33 = vld [vmem:[#allocation16 + $0x554] sm:$0xf0]  ;;  %v6252_v34 = vld [vmem:[#allocation16 + $0x5d0] sm:$0xf] }
 0x19d   :  { %4213 = vmatpush.bf16.msra.mxu2 %v5805_v47  ;;  %4227 = vmatpush.bf16.msra.mxu3 %v5869_v48  ;;  %v1283_v47 = vld [vmem:[%s9087_s19 + $0x28] sm:$0xff]  ;;  %v1312_v48 = vld [vmem:[%s9087_s19 + $0x110] sm:$0xff] }
 0x19e   :  { %4241 = vmatpush.bf16.msrb.mxu0 %v5933_v53  ;;  %4255 = vmatpush.bf16.msrb.mxu1 %v5997_v54  ;;  %v5956_v53 = vld [vmem:[#allocation16 + $0x380] sm:$0xf]  ;;  %v7587_v54 = vld [vmem:[#allocation16 + $0x384] sm:$0xf0] }
 0x19f   :  { %v5957_v4 = vor.u32 %v7587_v54, %v5956_v53  ;;  %v6036_v53 = vld [vmem:[#allocation16 + $0x420] sm:$0xf] }
 0x1a1   :  { %4214 = vmatpush.bf16.msra.mxu2 %v5797_v59  ;;  %4228 = vmatpush.bf16.msra.mxu3 %v5861_v60  ;;  %v6204_v59 = vld [vmem:[#allocation16 + $0x570] sm:$0xf]  ;;  %v6077_v60 = vor.u32 %v7617_v42, %v6076_v41  ;;  %v6189_v42 = vor.u32 %v7645_v33, %v6188_v28  ;;  %v7619_v28 = vld [vmem:[#allocation16 + $0x484] sm:$0xf0] }
 0x1a2   :  { %4242 = vmatpush.bf16.msrb.mxu0 %v5925_v1  ;;  %4256 = vmatpush.bf16.msrb.mxu1 %v5989_v2  ;;  %v6132_v1 = vld [vmem:[#allocation16 + $0x4e0] sm:$0xf]  ;;  %v7631_v2 = vld [vmem:[#allocation16 + $0x4e4] sm:$0xf0]  ;;  %v6205_v12 = vor.u32 %v7649_v62, %v6204_v59  ;;  %v6044_v41 = vld [vmem:[#allocation16 + $0x430] sm:$0xf] }
 0x1a3   :  { %v6133_v16 = vor.u32 %v7631_v2, %v6132_v1  ;;  %v7641_v59 = vld [vmem:[#allocation16 + $0x534] sm:$0xf0]  ;;  %v7607_v62 = vld [vmem:[#allocation16 + $0x424] sm:$0xf0]  ;;  %v6028_v1 = vld [vmem:[#allocation16 + $0x410] sm:$0xf] }
 0x1a4   :  { %v6396_v33 = vld [vmem:[#allocation16 + $0x6f0] sm:$0xf] }
 0x1a5   :  { %4215 = vmatpush.bf16.msra.mxu2 %v5789_v7  ;;  %4229 = vmatpush.bf16.msra.mxu3 %v5853_v8  ;;  %v8549_v7 = vpack.c.bf16 %v1312_v48, %v1283_v47  ;;  %v1313_v8 = vld [vmem:[%s9087_s19 + $0x118] sm:$0xff]  ;;  %v7643_v47 = vld [vmem:[#allocation16 + $0x544] sm:$0xf0]  ;;  %v6244_v48 = vld [vmem:[#allocation16 + $0x5c0] sm:$0xf] }
 0x1a6   :  { %4243 = vmatpush.bf16.msrb.mxu0 %v5917_v13  ;;  %4257 = vmatpush.bf16.msrb.mxu1 %v5981_v14  ;;  %v6269_v13 = vor.u32 %v7665_v0, %v6268_v63  ;;  %v6196_v14 = vld [vmem:[#allocation16 + $0x560] sm:$0xf]  ;;  %v8560_v23 = vpack.c.bf16 %v1313_v8, %v1284_v5  ;;  %v6181_v54 = vor.u32 %v7643_v47, %v6180_v44  ;;  %v7623_v0 = vld [vmem:[#allocation16 + $0x4a4] sm:$0xf0] }
 0x1a7   :  { %v6100_v63 = vld [vmem:[#allocation16 + $0x4a0] sm:$0xf]  ;;  %v6037_v5 = vor.u32 %v7607_v62, %v6036_v53  ;;  %v7651_v53 = vld [vmem:[#allocation16 + $0x584] sm:$0xf0] }
 0x1a8   :  { %v6101_v8 = vor.u32 %v7623_v0, %v6100_v63  ;;  %v6388_v47 = vld [vmem:[#allocation16 + $0x6e0] sm:$0xf]  ;;  %v6213_v63 = vor.u32 %v7651_v53, %v6212_v52  ;;  %v1317_v0 = vld [vmem:[%s9087_s19 + $0x138] sm:$0xff]  ;;  %v7671_v52 = vld [vmem:[#allocation16 + $0x624] sm:$0xf0] }
 0x1a9   :  { %4216 = vmatpush.bf16.msra.mxu2 %v5781_v19  ;;  %4230 = vmatpush.bf16.msra.mxu3 %v5845_v20  ;;  %v7663_v19 = vld [vmem:[#allocation16 + $0x5e4] sm:$0xf0]  ;;  %v7613_v20 = vld [vmem:[#allocation16 + $0x454] sm:$0xf0]  ;;  %v6356_v53 = vld [vmem:[#allocation16 + $0x6a0] sm:$0xf] }
 0x1aa   :  { %4244 = vmatpush.bf16.msrb.mxu0 %v5909_v25  ;;  %4258 = vmatpush.bf16.msrb.mxu1 %v5973_v26  ;;  %v6052_v25 = vld [vmem:[#allocation16 + $0x440] sm:$0xf]  ;;  %v6197_v26 = vor.u32 %v7647_v17, %v6196_v14  ;;  %v6261_v27 = vor.u32 %v7663_v19, %v6260_v18  ;;  %v6061_v30 = vor.u32 %v7613_v20, %v6060_v11  ;;  %v7655_v11 = vld [vmem:[#allocation16 + $0x5a4] sm:$0xf0]  ;;  %v7621_v14 = vld [vmem:[#allocation16 + $0x494] sm:$0xf0] }
 0x1ab   :  { %v6084_v17 = vld [vmem:[#allocation16 + $0x480] sm:$0xf]  ;;  %v6229_v19 = vor.u32 %v7655_v11, %v6228_v10  ;;  %v6156_v20 = vld [vmem:[#allocation16 + $0x510] sm:$0xf]  ;;  %v7693_v10 = vld [vmem:[#allocation16 + $0x6d4] sm:$0xf0] }
 0x1ac   :  { %v6085_v44 = vor.u32 %v7619_v28, %v6084_v17  ;;  %v6516_v17 = vld [vmem:[#allocation16 + $0x7e0] sm:$0xf] }
 0x1ad   :  { %4217 = vmatpush.bf16.msra.mxu2 %v5773_v35  ;;  %4231 = vmatpush.bf16.msra.mxu3 %v5837_v36  ;;  %v7661_v35 = vld [vmem:[#allocation16 + $0x5d4] sm:$0xf0]  ;;  %v7611_v36 = vld [vmem:[#allocation16 + $0x444] sm:$0xf0] }
 0x1ae   :  { %4245 = vmatpush.bf16.msrb.mxu0 %v5901_v49  ;;  %4259 = vmatpush.bf16.msrb.mxu1 %v5965_v50  ;;  %v6253_v43 = vor.u32 %v7661_v35, %v6252_v34  ;;  %v6053_v45 = vor.u32 %v7611_v36, %v6052_v25  ;;  %v7659_v49 = vld [vmem:[#allocation16 + $0x5c4] sm:$0xf0]  ;;  %v7609_v50 = vld [vmem:[#allocation16 + $0x434] sm:$0xf0]  ;;  %v1315_v36 = vld [vmem:[%s9087_s19 + $0x128] sm:$0xff] }
 0x1af   :  { %v6045_v57 = vor.u32 %v7609_v50, %v6044_v41  ;;  %v7637_v25 = vld [vmem:[#allocation16 + $0x514] sm:$0xf0] }
 0x1b0   :  { %v7697_v34 = vld [vmem:[#allocation16 + $0x6f4] sm:$0xf0]  ;;  %v6157_v41 = vor.u32 %v7637_v25, %v6156_v20  ;;  %v6372_v25 = vld [vmem:[#allocation16 + $0x6c0] sm:$0xf] }
 0x1b1   :  { %4218 = vmatpush.bf16.msra.mxu2 %v5765_v55  ;;  %4232 = vmatpush.bf16.msra.mxu3 %v5829_v56  ;;  %v6245_v55 = vor.u32 %v7659_v49, %v6244_v48  ;;  %v6172_v56 = vld [vmem:[#allocation16 + $0x530] sm:$0xf]  ;;  %v1286_v35 = vld [vmem:[%s9087_s19 + $0x40] sm:$0xff]  ;;  %v6148_v48 = vld [vmem:[#allocation16 + $0x500] sm:$0xf]  ;;  %v6397_v50 = vor.u32 %v7697_v34, %v6396_v33 }
 0x1b2   :  { %4246 = vmatpush.bf16.msrb.mxu0 %v5893_v3  ;;  %4260 = vmatpush.bf16.msrb.mxu1 %v5957_v4  ;;  %v6173_v2 = vor.u32 %v7641_v59, %v6172_v56  ;;  %v6164_v4 = vld [vmem:[#allocation16 + $0x520] sm:$0xf]  ;;  %v7713_v56 = vld [vmem:[#allocation16 + $0x774] sm:$0xf0]  ;;  %v1288_v59 = vld [vmem:[%s9087_s19 + $0x50] sm:$0xff]  ;;  %v6149_v62 = vor.u32 %v7635_v51, %v6148_v48 }
 0x1b3   :  { %v6165_v18 = vor.u32 %v7639_v9, %v6164_v4  ;;  %v6380_v9 = vld [vmem:[#allocation16 + $0x6d0] sm:$0xf]  ;;  %v7725_v34 = vld [vmem:[#allocation16 + $0x7d4] sm:$0xf0]  ;;  %v7723_v48 = vld [vmem:[#allocation16 + $0x7c4] sm:$0xf0] }
 0x1b4   :  { %4219 = vmatmul.bf16.vlgmr.msra.gmra.mxu2 %v8547_v6  ;;  %4233 = vmatmul.bf16.vlgmr.msra.gmra.mxu3 %v8549_v7  ;;  %v6381_v20 = vor.u32 %v7693_v10, %v6380_v9  ;;  %v6508_v33 = vld [vmem:[#allocation16 + $0x7d0] sm:$0xf]  ;;  %v6292_v51 = vld [vmem:[#allocation16 + $0x620] sm:$0xf]  ;;  %v7703_v10 = vld [vmem:[#allocation16 + $0x724] sm:$0xf0] }
 0x1b5   :  { %4267 = vmatpush.bf16.msrb.mxu2 %v6077_v60  ;;  %4281 = vmatpush.bf16.msrb.mxu3 %v6141_v61  ;;  %v6236_v60 = vld [vmem:[#allocation16 + $0x5b0] sm:$0xf]  ;;  %v7657_v61 = vld [vmem:[#allocation16 + $0x5b4] sm:$0xf0]  ;;  %v6420_v9 = vld [vmem:[#allocation16 + $0x720] sm:$0xf] }
 0x1b6   :  { %4295 = vmatpush.bf16.msra.mxu0 %v6205_v12  ;;  %4309 = vmatpush.bf16.msra.mxu1 %v6269_v13  ;;  %v6237_v3 = vor.u32 %v7657_v61, %v6236_v60  ;;  %v7605_v12 = vld [vmem:[#allocation16 + $0x414] sm:$0xf0]  ;;  %v6092_v13 = vld [vmem:[#allocation16 + $0x490] sm:$0xf] }
 0x1b7   :  { %4247 = vmatmul.bf16.vlgmr.msrb.gmra.mxu0 %v8560_v23  ;;  %4261 = vmatmul.bf16.vlgmr.msrb.gmra.mxu1 %v8562_v24  ;;  %v6029_v21 = vor.u32 %v7605_v12, %v6028_v1  ;;  %v6093_v22 = vor.u32 %v7621_v14, %v6092_v13  ;;  %v6524_v60 = vld [vmem:[#allocation16 + $0x7f0] sm:$0xf]  ;;  %v7729_v61 = vld [vmem:[#allocation16 + $0x7f4] sm:$0xf0]  ;;  %v6452_v13 = vld [vmem:[#allocation16 + $0x760] sm:$0xf]  ;;  %v8598_v14 = vpack.c.bf16 %v1317_v0, %v1288_v59 }
 0x1b8   :  { %v1289_v1 = vld [vmem:[%s9087_s19 + $0x58] sm:$0xff]  ;;  %v6525_v12 = vor.u32 %v7729_v61, %v6524_v60  ;;  %v7705_v60 = vld [vmem:[#allocation16 + $0x734] sm:$0xf0] }
 0x1b9   :  { %4268 = vmatpush.bf16.msrb.mxu2 %v6069_v15  ;;  %4282 = vmatpush.bf16.msrb.mxu3 %v6133_v16  ;;  %v6020_v15 = vld [vmem:[#allocation16 + $0x400] sm:$0xf]  ;;  %v7603_v16 = vld [vmem:[#allocation16 + $0x404] sm:$0xf0]  ;;  %v6428_v59 = vld [vmem:[#allocation16 + $0x730] sm:$0xf] }
 0x1ba   :  { %4296 = vmatpush.bf16.msra.mxu0 %v6197_v26  ;;  %4310 = vmatpush.bf16.msra.mxu1 %v6261_v27  ;;  %v6220_v26 = vld [vmem:[#allocation16 + $0x590] sm:$0xf]  ;;  %v7653_v27 = vld [vmem:[#allocation16 + $0x594] sm:$0xf0] }
 0x1bb   :  { %v6492_v61 = vld [vmem:[#allocation16 + $0x7b0] sm:$0xf] }
 0x1bd   :  { %4269 = vmatpush.bf16.msrb.mxu2 %v6061_v30  ;;  %4283 = vmatpush.bf16.msrb.mxu3 %v6125_v31  ;;  %v6332_v30 = vld [vmem:[#allocation16 + $0x670] sm:$0xf]  ;;  %v7681_v31 = vld [vmem:[#allocation16 + $0x674] sm:$0xf0] }
 0x1be   :  { %4297 = vmatpush.bf16.msra.mxu0 %v6189_v42  ;;  %4311 = vmatpush.bf16.msra.mxu1 %v6253_v43  ;;  %v6221_v42 = vor.u32 %v7653_v27, %v6220_v26  ;;  %v6021_v43 = vor.u32 %v7603_v16, %v6020_v15  ;;  %v6333_v49 = vor.u32 %v7681_v31, %v6332_v30  ;;  %v7711_v16 = vld [vmem:[#allocation16 + $0x764] sm:$0xf0]  ;;  %v6444_v30 = vld [vmem:[#allocation16 + $0x750] sm:$0xf]  ;;  %v7709_v31 = vld [vmem:[#allocation16 + $0x754] sm:$0xf0] }
 0x1bf   :  { %v7691_v26 = vld [vmem:[#allocation16 + $0x6c4] sm:$0xf0]  ;;  %v6453_v27 = vor.u32 %v7711_v16, %v6452_v13  ;;  %v6276_v13 = vld [vmem:[#allocation16 + $0x600] sm:$0xf] }
 0x1c1   :  { %4270 = vmatpush.bf16.msrb.mxu2 %v6053_v45  ;;  %4284 = vmatpush.bf16.msrb.mxu3 %v6117_v46  ;;  %v6324_v45 = vld [vmem:[#allocation16 + $0x660] sm:$0xf]  ;;  %v7679_v46 = vld [vmem:[#allocation16 + $0x664] sm:$0xf0] }
 0x1c2   :  { %4298 = vmatpush.bf16.msra.mxu0 %v6181_v54  ;;  %4312 = vmatpush.bf16.msra.mxu1 %v6245_v55  ;;  %v7695_v54 = vld [vmem:[#allocation16 + $0x6e4] sm:$0xf0]  ;;  %v6460_v55 = vld [vmem:[#allocation16 + $0x770] sm:$0xf] }
 0x1c3   :  { %v6389_v4 = vor.u32 %v7695_v54, %v6388_v47  ;;  %v6461_v11 = vor.u32 %v7713_v56, %v6460_v55  ;;  %v6500_v47 = vld [vmem:[#allocation16 + $0x7c0] sm:$0xf]  ;;  %v7687_v54 = vld [vmem:[#allocation16 + $0x6a4] sm:$0xf0] }
 0x1c4   :  { %v6501_v56 = vor.u32 %v7723_v48, %v6500_v47  ;;  %v6357_v0 = vor.u32 %v7687_v54, %v6356_v53  ;;  %v6644_v47 = vld [vmem:[#allocation16 + $0x8e0] sm:$0xf]  ;;  %v7759_v48 = vld [vmem:[#allocation16 + $0x8e4] sm:$0xf0] }
 0x1c5   :  { %4271 = vmatpush.bf16.msrb.mxu2 %v6045_v57  ;;  %4285 = vmatpush.bf16.msrb.mxu3 %v6109_v58  ;;  %v8580_v57 = vpack.c.bf16 %v1315_v36, %v1286_v35  ;;  %v8582_v58 = vpack.c.bf16 %v1316_v38, %v1287_v37  ;;  %v6373_v36 = vor.u32 %v7691_v26, %v6372_v25  ;;  %v6300_v37 = vld [vmem:[#allocation16 + $0x630] sm:$0xf]  ;;  %v7673_v38 = vld [vmem:[#allocation16 + $0x634] sm:$0xf0] }
 0x1c6   :  { %4299 = vmatpush.bf16.msra.mxu0 %v6173_v2  ;;  %4313 = vmatpush.bf16.msra.mxu1 %v6237_v3  ;;  %v1318_v2 = vld [vmem:[%s9087_s19 + $0x140] sm:$0xff]  ;;  %v6325_v3 = vor.u32 %v7679_v46, %v6324_v45  ;;  %v6436_v45 = vld [vmem:[#allocation16 + $0x740] sm:$0xf]  ;;  %v7707_v46 = vld [vmem:[#allocation16 + $0x744] sm:$0xf0]  ;;  %v6421_v26 = vor.u32 %v7703_v10, %v6420_v9 }
 0x1c7   :  { %v8600_v15 = vpack.c.bf16 %v1318_v2, %v1289_v1  ;;  %v6437_v55 = vor.u32 %v7707_v46, %v6436_v45  ;;  %v6284_v1 = vld [vmem:[#allocation16 + $0x610] sm:$0xf]  ;;  %v7669_v2 = vld [vmem:[#allocation16 + $0x614] sm:$0xf0]  ;;  %v6580_v45 = vld [vmem:[#allocation16 + $0x860] sm:$0xf] }
 0x1c8   :  { %v6285_v16 = vor.u32 %v7669_v2, %v6284_v1  ;;  %v6652_v25 = vld [vmem:[#allocation16 + $0x8f0] sm:$0xf]  ;;  %v7743_v46 = vld [vmem:[#allocation16 + $0x864] sm:$0xf0]  ;;  %v7741_v2 = vld [vmem:[#allocation16 + $0x854] sm:$0xf0] }
 0x1c9   :  { %4272 = vmatpush.bf16.msrb.mxu2 %v6037_v5  ;;  %4286 = vmatpush.bf16.msrb.mxu3 %v6101_v8  ;;  %v6316_v5 = vld [vmem:[#allocation16 + $0x650] sm:$0xf]  ;;  %v7677_v8 = vld [vmem:[#allocation16 + $0x654] sm:$0xf0]  ;;  %v1292_v9 = vld [vmem:[%s9087_s19 + $0x70] sm:$0xff] }
 0x1ca   :  { %4300 = vmatpush.bf16.msra.mxu0 %v6165_v18  ;;  %4314 = vmatpush.bf16.msra.mxu1 %v6229_v19  ;;  %v7727_v18 = vld [vmem:[#allocation16 + $0x7e4] sm:$0xf0]  ;;  %v6317_v19 = vor.u32 %v7677_v8, %v6316_v5  ;;  %v6429_v5 = vor.u32 %v7705_v60, %v6428_v59  ;;  %v7777_v60 = vld [vmem:[#allocation16 + $0x974] sm:$0xf0]  ;;  %v6572_v1 = vld [vmem:[#allocation16 + $0x850] sm:$0xf] }
 0x1cb   :  { %v6517_v28 = vor.u32 %v7727_v18, %v6516_v17  ;;  %v7667_v18 = vld [vmem:[#allocation16 + $0x604] sm:$0xf0]  ;;  %v1321_v10 = vld [vmem:[%s9087_s19 + $0x158] sm:$0xff] }
 0x1cc   :  { %v7715_v59 = vld [vmem:[#allocation16 + $0x784] sm:$0xf0] }
 0x1cd   :  { %4273 = vmatpush.bf16.msrb.mxu2 %v6029_v21  ;;  %4287 = vmatpush.bf16.msrb.mxu3 %v6093_v22  ;;  %v6308_v21 = vld [vmem:[#allocation16 + $0x640] sm:$0xf]  ;;  %v7675_v22 = vld [vmem:[#allocation16 + $0x644] sm:$0xf0] }
 0x1ce   :  { %4301 = vmatpush.bf16.msra.mxu0 %v6157_v41  ;;  %4315 = vmatpush.bf16.msra.mxu1 %v6221_v42  ;;  %v6309_v35 = vor.u32 %v7675_v22, %v6308_v21  ;;  %v6364_v41 = vld [vmem:[#allocation16 + $0x6b0] sm:$0xf]  ;;  %v7689_v42 = vld [vmem:[#allocation16 + $0x6b4] sm:$0xf0] }
 0x1cf   :  { %v6588_v21 = vld [vmem:[#allocation16 + $0x870] sm:$0xf]  ;;  %v7745_v22 = vld [vmem:[#allocation16 + $0x874] sm:$0xf0] }
 0x1d1   :  { %4274 = vmatpush.bf16.msrb.mxu2 %v6021_v43  ;;  %4288 = vmatpush.bf16.msrb.mxu3 %v6085_v44  ;;  %v6445_v43 = vor.u32 %v7709_v31, %v6444_v30  ;;  %v6509_v44 = vor.u32 %v7725_v34, %v6508_v33  ;;  %v1290_v30 = vld [vmem:[%s9087_s19 + $0x60] sm:$0xff]  ;;  %v6412_v31 = vld [vmem:[#allocation16 + $0x710] sm:$0xf] }
 0x1d2   :  { %4302 = vmatpush.bf16.msra.mxu0 %v6149_v62  ;;  %4316 = vmatpush.bf16.msra.mxu1 %v6213_v63  ;;  %v7721_v62 = vld [vmem:[#allocation16 + $0x7b4] sm:$0xf0]  ;;  %v6293_v63 = vor.u32 %v7671_v52, %v6292_v51  ;;  %v6476_v34 = vld [vmem:[#allocation16 + $0x790] sm:$0xf]  ;;  %v6404_v51 = vld [vmem:[#allocation16 + $0x700] sm:$0xf] }
 0x1d3   :  { %v6493_v8 = vor.u32 %v7721_v62, %v6492_v61  ;;  %v7701_v33 = vld [vmem:[#allocation16 + $0x714] sm:$0xf0]  ;;  %v7699_v52 = vld [vmem:[#allocation16 + $0x704] sm:$0xf0]  ;;  %v6780_v61 = vld [vmem:[#allocation16 + $0x9f0] sm:$0xf] }
 0x1d4   :  { %4275 = vmatmul.bf16.vlgmr.msrb.gmra.mxu2 %v8580_v57  ;;  %4289 = vmatmul.bf16.vlgmr.msrb.gmra.mxu3 %v8582_v58  ;;  %v7793_v62 = vld [vmem:[#allocation16 + $0x9f4] sm:$0xf0] }
 0x1d5   :  { %4323 = vmatpush.bf16.msra.mxu2 %v6333_v49  ;;  %4337 = vmatpush.bf16.msra.mxu3 %v6397_v50  ;;  %v6301_v49 = vor.u32 %v7673_v38, %v6300_v37  ;;  %v6365_v50 = vor.u32 %v7689_v42, %v6364_v41  ;;  %v1319_v38 = vld [vmem:[%s9087_s19 + $0x148] sm:$0xff]  ;;  %v1320_v42 = vld [vmem:[%s9087_s19 + $0x150] sm:$0xff] }
 0x1d6   :  { %4351 = vmatpush.bf16.msrb.mxu0 %v6461_v11  ;;  %4365 = vmatpush.bf16.msrb.mxu1 %v6525_v12  ;;  %v6484_v11 = vld [vmem:[#allocation16 + $0x7a0] sm:$0xf]  ;;  %v7719_v12 = vld [vmem:[#allocation16 + $0x7a4] sm:$0xf0]  ;;  %v8616_v53 = vpack.c.bf16 %v1319_v38, %v1290_v30  ;;  %v7789_v38 = vld [vmem:[#allocation16 + $0x9d4] sm:$0xf0] }
 0x1d7   :  { %4303 = vmatmul.bf16.vlgmr.msra.gmra.mxu0 %v8598_v14  ;;  %4317 = vmatmul.bf16.vlgmr.msra.gmra.mxu1 %v8600_v15  ;;  %v1291_v41 = vld [vmem:[%s9087_s19 + $0x68] sm:$0xff]  ;;  %v7755_v30 = vld [vmem:[#allocation16 + $0x8c4] sm:$0xf0] }
 0x1d8   :  { %v8618_v54 = vpack.c.bf16 %v1320_v42, %v1291_v41 }
 0x1d9   :  { %4324 = vmatpush.bf16.msra.mxu2 %v6325_v3  ;;  %4338 = vmatpush.bf16.msra.mxu3 %v6389_v4  ;;  %v6348_v3 = vld [vmem:[#allocation16 + $0x690] sm:$0xf]  ;;  %v7685_v4 = vld [vmem:[#allocation16 + $0x694] sm:$0xf0] }
 0x1da   :  { %4352 = vmatpush.bf16.msrb.mxu0 %v6453_v27  ;;  %4366 = vmatpush.bf16.msrb.mxu1 %v6517_v28  ;;  %v6349_v17 = vor.u32 %v7685_v4, %v6348_v3  ;;  %v6485_v27 = vor.u32 %v7719_v12, %v6484_v11  ;;  %v7761_v28 = vld [vmem:[#allocation16 + $0x8f4] sm:$0xf0]  ;;  %v6636_v3 = vld [vmem:[#allocation16 + $0x8d0] sm:$0xf]  ;;  %v6781_v12 = vor.u32 %v7793_v62, %v6780_v61  ;;  %v6548_v61 = vld [vmem:[#allocation16 + $0x820] sm:$0xf] }
 0x1db   :  { %v7757_v4 = vld [vmem:[#allocation16 + $0x8d4] sm:$0xf0] }
 0x1dd   :  { %4325 = vmatpush.bf16.msra.mxu2 %v6317_v19  ;;  %4339 = vmatpush.bf16.msra.mxu3 %v6381_v20  ;;  %v6340_v19 = vld [vmem:[#allocation16 + $0x680] sm:$0xf]  ;;  %v7683_v20 = vld [vmem:[#allocation16 + $0x684] sm:$0xf0] }
 0x1de   :  { %4353 = vmatpush.bf16.msrb.mxu0 %v6445_v43  ;;  %4367 = vmatpush.bf16.msrb.mxu1 %v6509_v44  ;;  %v6341_v37 = vor.u32 %v7683_v20, %v6340_v19  ;;  %v6589_v43 = vor.u32 %v7745_v22, %v6588_v21  ;;  %v6653_v44 = vor.u32 %v7761_v28, %v6652_v25  ;;  %v6772_v19 = vld [vmem:[#allocation16 + $0x9e0] sm:$0xf]  ;;  %v7791_v20 = vld [vmem:[#allocation16 + $0x9e4] sm:$0xf0] }
 0x1df   :  { %v6573_v21 = vor.u32 %v7741_v2, %v6572_v1  ;;  %v6637_v22 = vor.u32 %v7757_v4, %v6636_v3  ;;  %v6564_v25 = vld [vmem:[#allocation16 + $0x840] sm:$0xf]  ;;  %v7751_v2 = vld [vmem:[#allocation16 + $0x8a4] sm:$0xf0] }
 0x1e0   :  { %v6628_v28 = vld [vmem:[#allocation16 + $0x8c0] sm:$0xf] }
 0x1e1   :  { %4326 = vmatpush.bf16.msra.mxu2 %v6309_v35  ;;  %4340 = vmatpush.bf16.msra.mxu3 %v6373_v36  ;;  %v7717_v35 = vld [vmem:[#allocation16 + $0x794] sm:$0xf0]  ;;  %v6277_v36 = vor.u32 %v7667_v18, %v6276_v13  ;;  %v1293_v13 = vld [vmem:[%s9087_s19 + $0x78] sm:$0xff]  ;;  %v7775_v18 = vld [vmem:[#allocation16 + $0x964] sm:$0xf0] }
 0x1e2   :  { %4354 = vmatpush.bf16.msrb.mxu0 %v6437_v55  ;;  %4368 = vmatpush.bf16.msrb.mxu1 %v6501_v56  ;;  %v6716_v55 = vld [vmem:[#allocation16 + $0x970] sm:$0xf]  ;;  %v6468_v56 = vld [vmem:[#allocation16 + $0x780] sm:$0xf] }
 0x1e3   :  { %v6717_v11 = vor.u32 %v7777_v60, %v6716_v55  ;;  %v6756_v55 = vld [vmem:[#allocation16 + $0x9c0] sm:$0xf] }
 0x1e4   :  { %v6612_v1 = vld [vmem:[#allocation16 + $0x8a0] sm:$0xf] }
 0x1e5   :  { %4327 = vmatpush.bf16.msra.mxu2 %v6301_v49  ;;  %4341 = vmatpush.bf16.msra.mxu3 %v6365_v50  ;;  %v6413_v49 = vor.u32 %v7701_v33, %v6412_v31  ;;  %v6477_v50 = vor.u32 %v7717_v35, %v6476_v34  ;;  %v6773_v34 = vor.u32 %v7791_v20, %v6772_v19  ;;  %v6700_v35 = vld [vmem:[#allocation16 + $0x950] sm:$0xf]  ;;  %v7749_v20 = vld [vmem:[#allocation16 + $0x894] sm:$0xf0] }
 0x1e6   :  { %4355 = vmatpush.bf16.msrb.mxu0 %v6429_v5  ;;  %4369 = vmatpush.bf16.msrb.mxu1 %v6493_v8  ;;  %v6405_v5 = vor.u32 %v7699_v52, %v6404_v51  ;;  %v6469_v8 = vor.u32 %v7715_v59, %v6468_v56  ;;  %v6692_v51 = vld [vmem:[#allocation16 + $0x940] sm:$0xf]  ;;  %v7771_v52 = vld [vmem:[#allocation16 + $0x944] sm:$0xf0]  ;;  %v6604_v19 = vld [vmem:[#allocation16 + $0x890] sm:$0xf] }
 0x1e7   :  { %v7787_v56 = vld [vmem:[#allocation16 + $0x9c4] sm:$0xf0]  ;;  %v6693_v3 = vor.u32 %v7771_v52, %v6692_v51 }
 0x1e8   :  { %v6757_v4 = vor.u32 %v7787_v56, %v6756_v55  ;;  %v1294_v55 = vld [vmem:[%s9087_s19 + $0x80] sm:$0xff]  ;;  %v1323_v56 = vld [vmem:[%s9087_s19 + $0x168] sm:$0xff] }
 0x1e9   :  { %4328 = vmatpush.bf16.msra.mxu2 %v6293_v63  ;;  %4342 = vmatpush.bf16.msra.mxu3 %v6357_v0  ;;  %v6581_v63 = vor.u32 %v7743_v46, %v6580_v45  ;;  %v6645_v0 = vor.u32 %v7759_v48, %v6644_v47  ;;  %v6556_v45 = vld [vmem:[#allocation16 + $0x830] sm:$0xf]  ;;  %v7737_v46 = vld [vmem:[#allocation16 + $0x834] sm:$0xf0] }
 0x1ea   :  { %4356 = vmatpush.bf16.msrb.mxu0 %v6421_v26  ;;  %4370 = vmatpush.bf16.msrb.mxu1 %v6485_v27  ;;  %v8634_v26 = vpack.c.bf16 %v1321_v10, %v1292_v9  ;;  %v7739_v27 = vld [vmem:[#allocation16 + $0x844] sm:$0xf0]  ;;  %v6620_v47 = vld [vmem:[#allocation16 + $0x8b0] sm:$0xf]  ;;  %v7753_v48 = vld [vmem:[#allocation16 + $0x8b4] sm:$0xf0]  ;;  %v6557_v59 = vor.u32 %v7737_v46, %v6556_v45 }
 0x1eb   :  { %v6621_v60 = vor.u32 %v7753_v48, %v6620_v47  ;;  %v6748_v9 = vld [vmem:[#allocation16 + $0x9b0] sm:$0xf]  ;;  %v7785_v10 = vld [vmem:[#allocation16 + $0x9b4] sm:$0xf0] }
 0x1ec   :  { %v7809_v47 = vld [vmem:[#allocation16 + $0xa74] sm:$0xf0]  ;;  %v6908_v48 = vld [vmem:[#allocation16 + $0xaf0] sm:$0xf] }
 0x1ed   :  { %4329 = vmatpush.bf16.msra.mxu2 %v6285_v16  ;;  %4343 = vmatpush.bf16.msra.mxu3 %v6349_v17  ;;  %v1322_v16 = vld [vmem:[%s9087_s19 + $0x160] sm:$0xff]  ;;  %v6708_v17 = vld [vmem:[#allocation16 + $0x960] sm:$0xf] }
 0x1ee   :  { %4357 = vmatpush.bf16.msrb.mxu0 %v6413_v49  ;;  %4371 = vmatpush.bf16.msrb.mxu1 %v6477_v50  ;;  %v8636_v31 = vpack.c.bf16 %v1322_v16, %v1293_v13  ;;  %v6709_v33 = vor.u32 %v7775_v18, %v6708_v17  ;;  %v6613_v16 = vor.u32 %v7751_v2, %v6612_v1  ;;  %v6540_v17 = vld [vmem:[#allocation16 + $0x810] sm:$0xf]  ;;  %v7733_v18 = vld [vmem:[#allocation16 + $0x814] sm:$0xf0] }
 0x1ef   :  { %v7781_v1 = vld [vmem:[#allocation16 + $0x994] sm:$0xf0] }
 0x1f1   :  { %4330 = vmatpush.bf16.msra.mxu2 %v6277_v36  ;;  %4344 = vmatpush.bf16.msra.mxu3 %v6341_v37  ;;  %v7773_v36 = vld [vmem:[#allocation16 + $0x954] sm:$0xf0]  ;;  %v6764_v37 = vld [vmem:[#allocation16 + $0x9d0] sm:$0xf]  ;;  %v8638_v41 = vpop.f32.mrf.mxu0  ;;  %v8640_v42 = vpop.f32.mrf.mxu1 }
 0x1f2   :  { %4358 = vmatpush.bf16.msrb.mxu0 %v6405_v5  ;;  %4372 = vmatpush.bf16.msrb.mxu1 %v6469_v8  ;;  %v6701_v49 = vor.u32 %v7773_v36, %v6700_v35  ;;  %v6765_v50 = vor.u32 %v7789_v38, %v6764_v37  ;;  %v6684_v5 = vld [vmem:[#allocation16 + $0x930] sm:$0xf]  ;;  %v7769_v8 = vld [vmem:[#allocation16 + $0x934] sm:$0xf0]  ;;  %v7783_v35 = vld [vmem:[#allocation16 + $0x9a4] sm:$0xf0]  ;;  %v6541_v36 = vor.u32 %v7733_v18, %v6540_v17 }
 0x1f3   :  { %v6605_v37 = vor.u32 %v7749_v20, %v6604_v19  ;;  %v6596_v38 = vld [vmem:[#allocation16 + $0x880] sm:$0xf] }
 0x1f4   :  { %4331 = vmatmul.bf16.vlgmr.msra.gmra.mxu2 %v8616_v53  ;;  %4345 = vmatmul.bf16.vlgmr.msra.gmra.mxu3 %v8618_v54 }
 0x1f5   :  { %4379 = vmatpush.bf16.msrb.mxu2 %v6589_v43  ;;  %4393 = vmatpush.bf16.msrb.mxu3 %v6653_v44  ;;  %v6565_v43 = vor.u32 %v7739_v27, %v6564_v25  ;;  %v6629_v44 = vor.u32 %v7755_v30, %v6628_v28  ;;  %v6749_v25 = vor.u32 %v7785_v10, %v6748_v9  ;;  %v6676_v27 = vld [vmem:[#allocation16 + $0x920] sm:$0xf]  ;;  %v7731_v30 = vld [vmem:[#allocation16 + $0x804] sm:$0xf0] }
 0x1f6   :  { %4407 = vmatpush.bf16.msra.mxu0 %v6717_v11  ;;  %4421 = vmatpush.bf16.msra.mxu1 %v6781_v12  ;;  %v8644_v62 = vpop.f32.mrf.mxu2  ;;  %v8654_v28 = vld [vmem:[#allocation16 + $0x800] sm:$0xf] }
 0x1f7   :  { %4359 = vmatmul.bf16.vlgmr.msrb.gmra.mxu0 %v8634_v26  ;;  %4373 = vmatmul.bf16.vlgmr.msrb.gmra.mxu1 %v8636_v31  ;;  %v1295_v10 = vld [vmem:[%s9087_s19 + $0x88] sm:$0xff] }
 0x1f9   :  { %4380 = vmatpush.bf16.msrb.mxu2 %v6581_v63  ;;  %4394 = vmatpush.bf16.msrb.mxu3 %v6645_v0  ;;  %v8646_v63 = vpop.f32.mrf.mxu3  ;;  %v7735_v0 = vld [vmem:[#allocation16 + $0x824] sm:$0xf0]  ;;  %v8648_v11 = vpop.f32.mrf.mxu0 }
 0x1fa   :  { %4408 = vmatpush.bf16.msra.mxu0 %v6709_v33  ;;  %4422 = vmatpush.bf16.msra.mxu1 %v6773_v34  ;;  %v8650_v12 = vpop.f32.mrf.mxu1  ;;  %v6549_v13 = vor.u32 %v7735_v0, %v6548_v61  ;;  %v7767_v33 = vld [vmem:[#allocation16 + $0x924] sm:$0xf0]  ;;  %v6740_v34 = vld [vmem:[#allocation16 + $0x9a0] sm:$0xf]  ;;  %v7765_v61 = vld [vmem:[#allocation16 + $0x914] sm:$0xf0] }
 0x1fb   :  { %v6677_v52 = vor.u32 %v7767_v33, %v6676_v27  ;;  %v6732_v0 = vld [vmem:[#allocation16 + $0x990] sm:$0xf]  ;;  %v8688_v27 = vld [vmem:[#allocation16 + $0xae4] sm:$0xf0] }
 0x1fc   :  { %v8690_v33 = vld [vmem:[#allocation16 + $0xa50] sm:$0xf] }
 0x1fd   :  { %4381 = vmatpush.bf16.msrb.mxu2 %v6573_v21  ;;  %4395 = vmatpush.bf16.msrb.mxu3 %v6637_v22  ;;  %v8652_v21 = vld [vmem:[#allocation15] sm:$0xf]  ;;  %v6685_v22 = vor.u32 %v7769_v8, %v6684_v5 }
 0x1fe   :  { %4409 = vmatpush.bf16.msra.mxu0 %v6701_v49  ;;  %4423 = vmatpush.bf16.msra.mxu1 %v6765_v50  ;;  %v8658_v45 = vpop.f32.mrf.mxu2  ;;  %v7825_v49 = vld [vmem:[#allocation16 + $0xaf4] sm:$0xf0]  ;;  %v1248_v50 = vperm.slane %v8652_v21, 2  ;;  %v1249_v51 = vperm.slane %v8652_v21, 3  ;;  %v1246_v8 = vperm.slane %v8652_v21, 0  ;;  %v1247_v9 = vperm.slane %v8652_v21, 1 }
 0x1ff   :  { %v6909_v20 = vor.u32 %v7825_v49, %v6908_v48  ;;  %v7779_v48 = vld [vmem:[#allocation16 + $0x984] sm:$0xf0]  ;;  %v6868_v21 = vld [vmem:[#allocation16 + $0xaa0] sm:$0xf] }
 0x201   :  { %4382 = vmatpush.bf16.msrb.mxu2 %v6565_v43  ;;  %4396 = vmatpush.bf16.msrb.mxu3 %v6629_v44  ;;  %v7747_v43 = vld [vmem:[#allocation16 + $0x884] sm:$0xf0]  ;;  %v8656_v44 = vld [vmem:[#allocation16 + $0xa70] sm:$0xf]  ;;  %v8660_v46 = vpop.f32.mrf.mxu3  ;;  %v1225_v2 = vpop.f32.mrf.mxu0 }
 0x202   :  { %4410 = vmatpush.bf16.msra.mxu0 %v6693_v3  ;;  %4424 = vmatpush.bf16.msra.mxu1 %v6757_v4  ;;  %v1239_v3 = vpop.f32.mrf.mxu1  ;;  %v6533_v4 = vor.u32 %v7731_v30, %v8654_v28  ;;  %v6597_v5 = vor.u32 %v7747_v43, %v6596_v38  ;;  %v1226_v17 = vadd.f32 %v1225_v2, %v8638_v41  ;;  %v8694_v41 = vld [vmem:[#allocation16 + $0x900] sm:$0xf]  ;;  %v8706_v43 = vld [vmem:[#allocation16 + $0xad0] sm:$0xf] }
 0x203   :  { %v1240_v18 = vadd.f32 %v1239_v3, %v8640_v42  ;;  %v6845_v19 = vor.u32 %v7809_v47, %v8656_v44  ;;  %v6733_v30 = vor.u32 %v7781_v1, %v6732_v0  ;;  %v8696_v42 = vld [vmem:[#allocation16 + $0x904] sm:$0xf0]  ;;  %v8708_v44 = vld [vmem:[#allocation16 + $0xb70] sm:$0xf]  ;;  %v6724_v47 = vld [vmem:[#allocation16 + $0x980] sm:$0xf] }
 0x204   :  { %v7973_v0 = vld [vmem:[%s9086_s23 + $0x18] sm:$0xff] }
 0x205   :  { %4383 = vmatpush.bf16.msrb.mxu2 %v6557_v59  ;;  %4397 = vmatpush.bf16.msrb.mxu3 %v6621_v60  ;;  %v6741_v59 = vor.u32 %v7783_v35, %v6740_v34  ;;  %v6668_v60 = vld [vmem:[#allocation16 + $0x910] sm:$0xf]  ;;  %v8692_v34 = vld [vmem:[#allocation16 + $0xa54] sm:$0xf0]  ;;  %v1256_v35 = vadd.f32 %v1248_v50, %v1226_v17 }
 0x206   :  { %4411 = vmatpush.bf16.msra.mxu0 %v6685_v22  ;;  %4425 = vmatpush.bf16.msra.mxu1 %v6749_v25  ;;  %v8684_v22 = vld [vmem:[#allocation16 + $0xa64] sm:$0xf0]  ;;  %v8686_v25 = vld [vmem:[#allocation16 + $0xae0] sm:$0xf]  ;;  %v6669_v28 = vor.u32 %v7765_v61, %v6668_v60  ;;  %v7036_v60 = vld [vmem:[#allocation16 + $0xbf0] sm:$0xf]  ;;  %v1197_v2 = vpop.f32.mrf.mxu2 }
 0x209   :  { %4384 = vmatpush.bf16.msrb.mxu2 %v6549_v13  ;;  %4398 = vmatpush.bf16.msrb.mxu3 %v6613_v16  ;;  %v1324_v13 = vld [vmem:[%s9087_s19 + $0x170] sm:$0xff]  ;;  %v8679_v16 = vld [vmem:[#allocation16 + $0xa60] sm:$0xf]  ;;  %v1211_v3 = vpop.f32.mrf.mxu3 }
 0x20a   :  { %4412 = vmatpush.bf16.msra.mxu0 %v6677_v52  ;;  %4426 = vmatpush.bf16.msra.mxu1 %v6741_v59  ;;  %v8704_v38 = vpack.c.bf16 %v1324_v13, %v1295_v10  ;;  %v6837_v49 = vor.u32 %v8684_v22, %v8679_v16  ;;  %v6901_v52 = vor.u32 %v8688_v27, %v8686_v25  ;;  %v7841_v59 = vld [vmem:[#allocation16 + $0xb74] sm:$0xf0]  ;;  %v1296_v10 = vld [vmem:[%s9087_s19 + $0x90] sm:$0xff]  ;;  %v1325_v13 = vld [vmem:[%s9087_s19 + $0x178] sm:$0xff] }
 0x20b   :  { %v1198_v16 = vadd.f32 %v1197_v2, %v8644_v62  ;;  %v1212_v17 = vadd.f32 %v1211_v3, %v8646_v63  ;;  %v6829_v62 = vor.u32 %v8692_v34, %v8690_v33  ;;  %v6973_v63 = vor.u32 %v7841_v59, %v8708_v44  ;;  %v6964_v25 = vld [vmem:[#allocation16 + $0xb60] sm:$0xf]  ;;  %v7839_v27 = vld [vmem:[#allocation16 + $0xb64] sm:$0xf0]  ;;  %v6956_v2 = vld [vmem:[#allocation16 + $0xb50] sm:$0xf] }
 0x20c   :  { %v8752_v33 = vpack.c.bf16 %v1325_v13, %v1296_v10  ;;  %v7028_v34 = vld [vmem:[#allocation16 + $0xbe0] sm:$0xf]  ;;  %v7803_v59 = vld [vmem:[#allocation16 + $0xa44] sm:$0xf0]  ;;  %v7853_v10 = vld [vmem:[#allocation16 + $0xbd4] sm:$0xf0] }
 0x20d   :  { %4385 = vmatpush.bf16.msrb.mxu2 %v6541_v36  ;;  %4399 = vmatpush.bf16.msrb.mxu3 %v6605_v37  ;;  %v1257_v36 = vadd.f32 %v1249_v51, %v1240_v18  ;;  %v8702_v37 = vpack.c.bf16 %v1323_v56, %v1294_v55  ;;  %v7857_v55 = vld [vmem:[#allocation16 + $0xbf4] sm:$0xf0]  ;;  %v7972_v56 = vld [vmem:[%s9086_s23 + $0x10] sm:$0xff]  ;;  %v6725_v18 = vor.u32 %v7779_v48, %v6724_v47  ;;  %v6820_v48 = vld [vmem:[#allocation16 + $0xa40] sm:$0xf] }
 0x20e   :  { %v1264_v61 = vadd.f32 %v7972_v56, %v1256_v35  ;;  %4413 = vmatpush.bf16.msra.mxu0 %v6669_v28  ;;  %4427 = vmatpush.bf16.msra.mxu1 %v6733_v30  ;;  %v7037_v22 = vor.u32 %v7857_v55, %v7036_v60  ;;  %v1254_v28 = vadd.f32 %v1246_v8, %v1198_v16  ;;  %v7974_v55 = vld [vmem:[%s9086_s23] sm:$0xff]  ;;  %v7977_v13 = vld [vmem:[%s9086_s23 + $0x38] sm:$0xff] }
 0x20f   :  { %v1265_v1 = vadd.f32 %v7973_v0, %v1257_v36  ;;  %v1255_v30 = vadd.f32 %v1247_v9, %v1212_v17  ;;  %v7855_v36 = vld [vmem:[#allocation16 + $0xbe4] sm:$0xf0]  ;;  %v6821_v3 = vor.u32 %v7803_v59, %v6820_v48  ;;  %v1199_v17 = vpop.f32.mrf.mxu2  ;;  %v7978_v48 = vld [vmem:[%s9086_s23 + $0x20] sm:$0xff] }
 0x210   :  { %1272 = vst [vmem:[%s9075_s16 + $0x10] sm:$0xff] %v1264_v61  ;;  %v1262_v56 = vadd.f32 %v7974_v55, %v1254_v28  ;;  %v7817_v28 = vld [vmem:[#allocation16 + $0xab4] sm:$0xf0]  ;;  %v7979_v55 = vld [vmem:[%s9086_s23 + $0x28] sm:$0xff] }
 0x211   :  { %4386 = vmatpush.bf16.msrb.mxu2 %v6533_v4  ;;  %4400 = vmatpush.bf16.msrb.mxu3 %v6597_v5  ;;  %v7821_v4 = vld [vmem:[#allocation16 + $0xad4] sm:$0xf0]  ;;  %v6661_v5 = vor.u32 %v8696_v42, %v8694_v41  ;;  %1273 = vst [vmem:[%s9075_s16 + $0x18] sm:$0xff] %v1265_v1  ;;  %v1227_v41 = vpop.f32.mrf.mxu0  ;;  %v1241_v42 = vpop.f32.mrf.mxu1  ;;  %v7029_v1 = vor.u32 %v7855_v36, %v7028_v34  ;;  %v7851_v34 = vld [vmem:[#allocation16 + $0xbc4] sm:$0xf0] }
 0x212   :  { %v6893_v35 = vor.u32 %v7821_v4, %v8706_v43  ;;  %v1228_v44 = vadd.f32 %v1227_v41, %v8648_v11  ;;  %v1242_v47 = vadd.f32 %v1241_v42, %v8650_v12  ;;  %v7975_v43 = vld [vmem:[%s9086_s23 + $0x8] sm:$0xff]  ;;  %4428 = vmatpush.bf16.msra.mxu1 %v6725_v18  ;;  %v7819_v12 = vld [vmem:[#allocation16 + $0xac4] sm:$0xf0]  ;;  %1270 = vst [vmem:[%s9075_s16] sm:$0xff] %v1262_v56  ;;  %v7837_v4 = vld [vmem:[#allocation16 + $0xb54] sm:$0xf0]  ;;  %v1213_v18 = vpop.f32.mrf.mxu3 }
 0x213   :  { %v1263_v61 = vadd.f32 %v7975_v43, %v1255_v30  ;;  %4414 = vmatpush.bf16.msra.mxu0 %v6661_v5  ;;  %v6884_v11 = vld [vmem:[#allocation16 + $0xac0] sm:$0xf]  ;;  %v7020_v5 = vld [vmem:[#allocation16 + $0xbd0] sm:$0xf]  ;;  %v7835_v42 = vld [vmem:[#allocation16 + $0xb44] sm:$0xf0] }
 0x214   :  { %4387 = vmatmul.bf16.vlgmr.msrb.gmra.mxu2 %v8702_v37  ;;  %4401 = vmatmul.bf16.vlgmr.msrb.gmra.mxu3 %v8704_v38  ;;  %v1261_v0 = vadd.f32 %v1249_v51, %v1242_v47  ;;  %v7021_v30 = vor.u32 %v7853_v10, %v7020_v5  ;;  %v6948_v41 = vld [vmem:[#allocation16 + $0xb40] sm:$0xf]  ;;  %v7799_v56 = vld [vmem:[#allocation16 + $0xa24] sm:$0xf0]  ;;  %v7813_v5 = vld [vmem:[#allocation16 + $0xa94] sm:$0xf0] }
 0x215   :  { %4435 = vmatpush.bf16.msra.mxu2 %v6845_v19  ;;  %4449 = vmatpush.bf16.msra.mxu3 %v6909_v20  ;;  %v1297_v19 = vld [vmem:[%s9087_s19 + $0x98] sm:$0xff]  ;;  %v1326_v20 = vld [vmem:[%s9087_s19 + $0x180] sm:$0xff]  ;;  %1271 = vst [vmem:[%s9075_s16 + $0x8] sm:$0xff] %v1263_v61  ;;  %v6804_v47 = vld [vmem:[#allocation16 + $0xa20] sm:$0xf]  ;;  %v6949_v43 = vor.u32 %v7835_v42, %v6948_v41 }
 0x216   :  { %v8756_v60 = vpack.c.bf16 %v1326_v20, %v1297_v19  ;;  %4477 = vmatpush.bf16.msrb.mxu1 %v7037_v22  ;;  %v1269_v16 = vadd.f32 %v7977_v13, %v1261_v0  ;;  %v6885_v19 = vor.u32 %v7819_v12, %v6884_v11  ;;  %v6812_v20 = vld [vmem:[#allocation16 + $0xa30] sm:$0xf]  ;;  %v1214_v22 = vadd.f32 %v1213_v18, %v8660_v46  ;;  %v7833_v12 = vld [vmem:[#allocation16 + $0xb34] sm:$0xf0]  ;;  %v6788_v13 = vld [vmem:[#allocation16 + $0xa00] sm:$0xf] }
 0x217   :  { %4463 = vmatpush.bf16.msrb.mxu0 %v6973_v63  ;;  %v1200_v63 = vadd.f32 %v1199_v17, %v8658_v45  ;;  %v6940_v11 = vld [vmem:[#allocation16 + $0xb30] sm:$0xf]  ;;  %v6805_v0 = vor.u32 %v7799_v56, %v6804_v47  ;;  %v6996_v17 = vld [vmem:[#allocation16 + $0xba0] sm:$0xf]  ;;  %v7847_v18 = vld [vmem:[#allocation16 + $0xba4] sm:$0xf0] }
 0x218   :  { %4415 = vmatmul.bf16.vlgmr.msra.gmra.mxu0 %v8752_v33  ;;  %4429 = vmatmul.bf16.vlgmr.msra.gmra.mxu1 %v8756_v60  ;;  %1277 = vst [vmem:[%s9075_s16 + $0x38] sm:$0xff] %v1269_v16  ;;  %v1259_v46 = vadd.f32 %v1247_v9, %v1214_v22  ;;  %v7815_v9 = vld [vmem:[#allocation16 + $0xaa4] sm:$0xf0]  ;;  %v6941_v10 = vor.u32 %v7833_v12, %v6940_v11  ;;  %v6852_v22 = vld [vmem:[#allocation16 + $0xa80] sm:$0xf]  ;;  %v1298_v42 = vld [vmem:[%s9087_s19 + $0xa0] sm:$0xff] }
 0x219   :  { %4436 = vmatpush.bf16.msra.mxu2 %v6837_v49  ;;  %4450 = vmatpush.bf16.msra.mxu3 %v6901_v52  ;;  %v6965_v49 = vor.u32 %v7839_v27, %v6964_v25  ;;  %v1260_v52 = vadd.f32 %v1248_v50, %v1228_v44  ;;  %v7976_v50 = vld [vmem:[%s9086_s23 + $0x30] sm:$0xff]  ;;  %v7801_v25 = vld [vmem:[#allocation16 + $0xa34] sm:$0xf0]  ;;  %v6876_v27 = vld [vmem:[#allocation16 + $0xab0] sm:$0xf]  ;;  %v1258_v45 = vadd.f32 %v1246_v8, %v1200_v63 }
 0x21a   :  { %4478 = vmatpush.bf16.msrb.mxu1 %v7029_v1  ;;  %v6813_v36 = vor.u32 %v7801_v25, %v6812_v20  ;;  %v6877_v44 = vor.u32 %v7817_v28, %v6876_v27  ;;  %v1267_v8 = vadd.f32 %v7979_v55, %v1259_v46  ;;  %v6869_v1 = vor.u32 %v7815_v9, %v6868_v21  ;;  %v7831_v16 = vld [vmem:[#allocation16 + $0xb24] sm:$0xf0]  ;;  %v7100_v27 = vld [vmem:[#allocation16 + $0xc70] sm:$0xf]  ;;  %v7873_v28 = vld [vmem:[#allocation16 + $0xc74] sm:$0xf0] }
 0x21b   :  { %v1268_v51 = vadd.f32 %v7976_v50, %v1260_v52  ;;  %4464 = vmatpush.bf16.msrb.mxu0 %v6965_v49  ;;  %v1266_v59 = vadd.f32 %v7978_v48, %v1258_v45  ;;  %v7004_v49 = vld [vmem:[#allocation16 + $0xbb0] sm:$0xf]  ;;  %v7849_v52 = vld [vmem:[#allocation16 + $0xbb4] sm:$0xf0]  ;;  %v7795_v63 = vld [vmem:[#allocation16 + $0xa04] sm:$0xf0]  ;;  %v6997_v45 = vor.u32 %v7847_v18, %v6996_v17 }
 0x21c   :  { %1275 = vst [vmem:[%s9075_s16 + $0x28] sm:$0xff] %v1267_v8  ;;  %v7005_v50 = vor.u32 %v7849_v52, %v7004_v49  ;;  %v7811_v25 = vld [vmem:[#allocation16 + $0xa84] sm:$0xf0]  ;;  %v6924_v46 = vld [vmem:[#allocation16 + $0xb10] sm:$0xf]  ;;  %v1327_v48 = vld [vmem:[%s9087_s19 + $0x188] sm:$0xff]  ;;  %v7101_v8 = vor.u32 %v7873_v28, %v7100_v27 }
 0x21d   :  { %4437 = vmatpush.bf16.msra.mxu2 %v6829_v62  ;;  %4451 = vmatpush.bf16.msra.mxu3 %v6893_v35  ;;  %1276 = vst [vmem:[%s9075_s16 + $0x30] sm:$0xff] %v1268_v51  ;;  %v6957_v62 = vor.u32 %v7837_v4, %v6956_v2  ;;  %v7012_v35 = vld [vmem:[#allocation16 + $0xbc0] sm:$0xf]  ;;  %v6796_v2 = vld [vmem:[#allocation16 + $0xa10] sm:$0xf]  ;;  %v6853_v47 = vor.u32 %v7811_v25, %v6852_v22  ;;  %v1328_v55 = vld [vmem:[%s9087_s19 + $0x190] sm:$0xff] }
 0x21e   :  { %4479 = vmatpush.bf16.msrb.mxu1 %v7021_v30  ;;  %v7013_v61 = vor.u32 %v7851_v34, %v7012_v35  ;;  %1274 = vst [vmem:[%s9075_s16 + $0x20] sm:$0xff] %v1266_v59  ;;  %v6860_v4 = vld [vmem:[#allocation16 + $0xa90] sm:$0xf]  ;;  %v6932_v51 = vld [vmem:[#allocation16 + $0xb20] sm:$0xf]  ;;  %v1300_v22 = vld [vmem:[%s9087_s19 + $0xb0] sm:$0xff] }
 0x21f   :  { %4465 = vmatpush.bf16.msrb.mxu0 %v6957_v62  ;;  %v6861_v20 = vor.u32 %v7813_v5, %v6860_v4  ;;  %v7164_v62 = vld [vmem:[#allocation16 + $0xcf0] sm:$0xf]  ;;  %v7889_v30 = vld [vmem:[#allocation16 + $0xcf4] sm:$0xf0]  ;;  %v6933_v41 = vor.u32 %v7831_v16, %v6932_v51  ;;  %v1299_v59 = vld [vmem:[%s9087_s19 + $0xa8] sm:$0xff] }
 0x220   :  { %v7829_v35 = vld [vmem:[#allocation16 + $0xb14] sm:$0xf0]  ;;  %v6988_v34 = vld [vmem:[#allocation16 + $0xb90] sm:$0xf]  ;;  %v7165_v56 = vor.u32 %v7889_v30, %v7164_v62  ;;  %v7092_v21 = vld [vmem:[#allocation16 + $0xc60] sm:$0xf] }
 0x221   :  { %4438 = vmatpush.bf16.msra.mxu2 %v6821_v3  ;;  %4452 = vmatpush.bf16.msra.mxu3 %v6885_v19  ;;  %v7797_v3 = vld [vmem:[#allocation16 + $0xa14] sm:$0xf0]  ;;  %v7871_v9 = vld [vmem:[#allocation16 + $0xc64] sm:$0xf0]  ;;  %v6925_v11 = vor.u32 %v7829_v35, %v6924_v46  ;;  %v6916_v49 = vld [vmem:[#allocation16 + $0xb00] sm:$0xf] }
 0x222   :  { %4480 = vmatpush.bf16.msrb.mxu1 %v7013_v61  ;;  %v6797_v19 = vor.u32 %v7797_v3, %v6796_v2  ;;  %v7887_v61 = vld [vmem:[#allocation16 + $0xce4] sm:$0xf0]  ;;  %v7228_v2 = vld [vmem:[#allocation16 + $0xd70] sm:$0xf]  ;;  %v6980_v3 = vld [vmem:[#allocation16 + $0xb80] sm:$0xf]  ;;  %v7093_v51 = vor.u32 %v7871_v9, %v7092_v21 }
 0x223   :  { %4466 = vmatpush.bf16.msrb.mxu0 %v6949_v43  ;;  %v7156_v43 = vld [vmem:[#allocation16 + $0xce0] sm:$0xf]  ;;  %v7827_v52 = vld [vmem:[#allocation16 + $0xb04] sm:$0xf0]  ;;  %v7905_v5 = vld [vmem:[#allocation16 + $0xd74] sm:$0xf0] }
 0x224   :  { %v7843_v4 = vld [vmem:[#allocation16 + $0xb84] sm:$0xf0]  ;;  %v7084_v16 = vld [vmem:[#allocation16 + $0xc50] sm:$0xf]  ;;  %v7869_v17 = vld [vmem:[#allocation16 + $0xc54] sm:$0xf0]  ;;  %v7229_v27 = vor.u32 %v7905_v5, %v7228_v2 }
 0x225   :  { %4439 = vmatpush.bf16.msra.mxu2 %v6813_v36  ;;  %4453 = vmatpush.bf16.msra.mxu3 %v6877_v44  ;;  %v7845_v36 = vld [vmem:[#allocation16 + $0xb94] sm:$0xf0]  ;;  %v6789_v44 = vor.u32 %v7795_v63, %v6788_v13  ;;  %v7157_v13 = vor.u32 %v7887_v61, %v7156_v43  ;;  %v7148_v18 = vld [vmem:[#allocation16 + $0xcd0] sm:$0xf]  ;;  %v6981_v63 = vor.u32 %v7843_v4, %v6980_v3  ;;  %v7919_v46 = vld [vmem:[#allocation16 + $0xde4] sm:$0xf0] }
 0x226   :  { %4481 = vmatpush.bf16.msrb.mxu1 %v7005_v50  ;;  %v6989_v12 = vor.u32 %v7845_v36, %v6988_v34  ;;  %v7921_v50 = vld [vmem:[#allocation16 + $0xdf4] sm:$0xf0]  ;;  %v1329_v25 = vld [vmem:[%s9087_s19 + $0x198] sm:$0xff]  ;;  %v7085_v35 = vor.u32 %v7869_v17, %v7084_v16  ;;  %v7076_v36 = vld [vmem:[#allocation16 + $0xc40] sm:$0xf] }
 0x227   :  { %4467 = vmatpush.bf16.msrb.mxu0 %v6941_v10  ;;  %v7292_v10 = vld [vmem:[#allocation16 + $0xdf0] sm:$0xf]  ;;  %v1330_v30 = vld [vmem:[%s9087_s19 + $0x1a0] sm:$0xff] }
 0x228   :  { %v7293_v28 = vor.u32 %v7921_v50, %v7292_v10  ;;  %v1301_v62 = vld [vmem:[%s9087_s19 + $0xb8] sm:$0xff]  ;;  %v7901_v9 = vld [vmem:[#allocation16 + $0xd54] sm:$0xf0]  ;;  %v7204_v10 = vld [vmem:[#allocation16 + $0xd40] sm:$0xf] }
 0x229   :  { %4440 = vmatpush.bf16.msra.mxu2 %v6805_v0  ;;  %4454 = vmatpush.bf16.msra.mxu3 %v6869_v1  ;;  %v8818_v0 = vpack.c.bf16 %v1327_v48, %v1298_v42  ;;  %v8820_v1 = vpack.c.bf16 %v1328_v55, %v1299_v59  ;;  %v7903_v42 = vld [vmem:[#allocation16 + $0xd64] sm:$0xf0]  ;;  %v7140_v48 = vld [vmem:[#allocation16 + $0xcc0] sm:$0xf]  ;;  %v8838_v55 = vpack.c.bf16 %v1330_v30, %v1301_v62  ;;  %v7212_v21 = vld [vmem:[#allocation16 + $0xd50] sm:$0xf] }
 0x22a   :  { %4482 = vmatpush.bf16.msrb.mxu1 %v6997_v45  ;;  %v7284_v45 = vld [vmem:[#allocation16 + $0xde0] sm:$0xf]  ;;  %v7883_v59 = vld [vmem:[#allocation16 + $0xcc4] sm:$0xf0]  ;;  %v7276_v43 = vld [vmem:[#allocation16 + $0xdd0] sm:$0xf]  ;;  %v7213_v4 = vor.u32 %v7901_v9, %v7212_v21 }
 0x22b   :  { %4468 = vmatpush.bf16.msrb.mxu0 %v6933_v41  ;;  %v7220_v41 = vld [vmem:[#allocation16 + $0xd60] sm:$0xf]  ;;  %v7917_v61 = vld [vmem:[#allocation16 + $0xdd4] sm:$0xf0]  ;;  %v7132_v2 = vld [vmem:[#allocation16 + $0xcb0] sm:$0xf] }
 0x22c   :  { %v7881_v3 = vld [vmem:[#allocation16 + $0xcb4] sm:$0xf0]  ;;  %v7277_v5 = vor.u32 %v7917_v61, %v7276_v43  ;;  %v7899_v50 = vld [vmem:[#allocation16 + $0xd44] sm:$0xf0]  ;;  %v7260_v62 = vld [vmem:[#allocation16 + $0xdb0] sm:$0xf] }
 0x22d   :  { %4441 = vmatpush.bf16.msra.mxu2 %v6797_v19  ;;  %4455 = vmatpush.bf16.msra.mxu3 %v6861_v20  ;;  %v7885_v19 = vld [vmem:[#allocation16 + $0xcd4] sm:$0xf0]  ;;  %v6917_v20 = vor.u32 %v7827_v52, %v6916_v49  ;;  %v7068_v49 = vld [vmem:[#allocation16 + $0xc30] sm:$0xf]  ;;  %v7133_v17 = vor.u32 %v7881_v3, %v7132_v2  ;;  %v7911_v21 = vld [vmem:[#allocation16 + $0xda4] sm:$0xf0] }
 0x22e   :  { %4483 = vmatpush.bf16.msrb.mxu1 %v6989_v12  ;;  %v7149_v34 = vor.u32 %v7885_v19, %v7148_v18  ;;  %v7141_v12 = vor.u32 %v7883_v59, %v7140_v48  ;;  %v7865_v52 = vld [vmem:[#allocation16 + $0xc34] sm:$0xf0]  ;;  %v7060_v18 = vld [vmem:[#allocation16 + $0xc20] sm:$0xf]  ;;  %v7863_v19 = vld [vmem:[#allocation16 + $0xc24] sm:$0xf0] }
 0x22f   :  { %4469 = vmatpush.bf16.msrb.mxu0 %v6925_v11  ;;  %v7069_v16 = vor.u32 %v7865_v52, %v7068_v49  ;;  %v7913_v30 = vld [vmem:[#allocation16 + $0xdb4] sm:$0xf0]  ;;  %v7188_v48 = vld [vmem:[#allocation16 + $0xd20] sm:$0xf]  ;;  %v7859_v61 = vld [vmem:[#allocation16 + $0xc04] sm:$0xf0] }
 0x230   :  { %v7044_v59 = vld [vmem:[#allocation16 + $0xc00] sm:$0xf]  ;;  %v7356_v49 = vld [vmem:[#allocation16 + $0xe70] sm:$0xf]  ;;  %v7937_v52 = vld [vmem:[#allocation16 + $0xe74] sm:$0xf0] }
 0x231   :  { %4442 = vmatpush.bf16.msra.mxu2 %v6789_v44  ;;  %4456 = vmatpush.bf16.msra.mxu3 %v6853_v47  ;;  %v8836_v44 = vpack.c.bf16 %v1329_v25, %v1300_v22  ;;  %v7867_v47 = vld [vmem:[#allocation16 + $0xc44] sm:$0xf0]  ;;  %v7205_v22 = vor.u32 %v7899_v50, %v7204_v10  ;;  %v7488_v2 = vld [vmem:[#allocation16 + $0x74] sm:$0xf]  ;;  %v5566_v3 = vld [vmem:[#allocation16 + $0x78] sm:$0xf0] }
 0x232   :  { %4484 = vmatpush.bf16.msrb.mxu1 %v6981_v63  ;;  %v7077_v11 = vor.u32 %v7867_v47, %v7076_v36  ;;  %v7879_v63 = vld [vmem:[#allocation16 + $0xca4] sm:$0xf0]  ;;  %v7261_v47 = vor.u32 %v7913_v30, %v7260_v62  ;;  %v7180_v50 = vld [vmem:[#allocation16 + $0xd10] sm:$0xf]  ;;  %v7486_v62 = vld [vmem:[#allocation16 + $0x64] sm:$0xf] }
 0x233   :  { %4470 = vmatpush.bf16.msrb.mxu0 %v6917_v20  ;;  %v7124_v20 = vld [vmem:[#allocation16 + $0xca0] sm:$0xf]  ;;  %v5558_v30 = vld [vmem:[#allocation16 + $0x68] sm:$0xf0] }
 0x234   :  { %4443 = vmatmul.bf16.vlgmr.msra.gmra.mxu2 %v8818_v0  ;;  %4457 = vmatmul.bf16.vlgmr.msra.gmra.mxu3 %v8820_v1 }
 0x235   :  { %4491 = vmatpush.bf16.msrb.mxu2 %v7101_v8  ;;  %4505 = vmatpush.bf16.msrb.mxu3 %v7165_v56  ;;  %v7221_v8 = vor.u32 %v7903_v42, %v7220_v41  ;;  %v7285_v56 = vor.u32 %v7919_v46, %v7284_v45  ;;  %v7061_v41 = vor.u32 %v7863_v19, %v7060_v18  ;;  %v7052_v45 = vld [vmem:[#allocation16 + $0xc10] sm:$0xf]  ;;  %v7861_v46 = vld [vmem:[#allocation16 + $0xc14] sm:$0xf0]  ;;  %v1331_v19 = vld [vmem:[%s9087_s19 + $0x1a8] sm:$0xff] }
 0x236   :  { %4533 = vmatpush.bf16.msra.mxu1 %v7293_v28  ;;  %4471 = vmatmul.bf16.vlgmr.msrb.gmra.mxu0 %v8836_v44  ;;  %v7897_v28 = vld [vmem:[#allocation16 + $0xd34] sm:$0xf0]  ;;  %v7125_v42 = vor.u32 %v7879_v63, %v7124_v20  ;;  %v7053_v9 = vor.u32 %v7861_v46, %v7052_v45  ;;  %v1303_v20 = vld [vmem:[%s9087_s19 + $0xc8] sm:$0xff]  ;;  %v1332_v63 = vld [vmem:[%s9087_s19 + $0x1b0] sm:$0xff] }
 0x237   :  { %4519 = vmatpush.bf16.msra.mxu0 %v7229_v27  ;;  %4485 = vmatmul.bf16.vlgmr.msrb.gmra.mxu1 %v8838_v55  ;;  %v7196_v27 = vld [vmem:[#allocation16 + $0xd30] sm:$0xf]  ;;  %v7172_v45 = vld [vmem:[#allocation16 + $0xd00] sm:$0xf]  ;;  %v7891_v46 = vld [vmem:[#allocation16 + $0xd04] sm:$0xf0] }
 0x238   :  { %v7197_v36 = vor.u32 %v7897_v28, %v7196_v27  ;;  %v7348_v27 = vld [vmem:[#allocation16 + $0xe60] sm:$0xf]  ;;  %v7935_v28 = vld [vmem:[#allocation16 + $0xe64] sm:$0xf0] }
 0x239   :  { %4492 = vmatpush.bf16.msrb.mxu2 %v7093_v51  ;;  %4506 = vmatpush.bf16.msrb.mxu3 %v7157_v13  ;;  %v7268_v51 = vld [vmem:[#allocation16 + $0xdc0] sm:$0xf]  ;;  %v7915_v13 = vld [vmem:[#allocation16 + $0xdc4] sm:$0xf0] }
 0x23a   :  { %4534 = vmatpush.bf16.msra.mxu1 %v7285_v56  ;;  %v7269_v25 = vor.u32 %v7915_v13, %v7268_v51  ;;  %v7252_v56 = vld [vmem:[#allocation16 + $0xda0] sm:$0xf]  ;;  %v7893_v51 = vld [vmem:[#allocation16 + $0xd14] sm:$0xf0]  ;;  %v7244_v13 = vld [vmem:[#allocation16 + $0xd90] sm:$0xf] }
 0x23b   :  { %4520 = vmatpush.bf16.msra.mxu0 %v7221_v8  ;;  %v7895_v8 = vld [vmem:[#allocation16 + $0xd24] sm:$0xf0]  ;;  %v7253_v10 = vor.u32 %v7911_v21, %v7252_v56  ;;  %v5694_v56 = vld [vmem:[#allocation16 + $0x178] sm:$0xf0]  ;;  %v7349_v21 = vor.u32 %v7935_v28, %v7348_v27  ;;  %v5542_v27 = vld [vmem:[#allocation16 + $0x48] sm:$0xf0] }
 0x23d   :  { %4493 = vmatpush.bf16.msrb.mxu2 %v7085_v35  ;;  %4507 = vmatpush.bf16.msrb.mxu3 %v7149_v34  ;;  %v7116_v35 = vld [vmem:[#allocation16 + $0xc90] sm:$0xf]  ;;  %v7877_v34 = vld [vmem:[#allocation16 + $0xc94] sm:$0xf0] }
 0x23e   :  { %4535 = vmatpush.bf16.msra.mxu1 %v7277_v5  ;;  %v7117_v43 = vor.u32 %v7877_v34, %v7116_v35  ;;  %v1302_v5 = vld [vmem:[%s9087_s19 + $0xc0] sm:$0xff]  ;;  %v8856_v34 = vpack.c.bf16 %v1332_v63, %v1303_v20  ;;  %v7332_v20 = vld [vmem:[#allocation16 + $0xe40] sm:$0xf] }
 0x23f   :  { %4521 = vmatpush.bf16.msra.mxu0 %v7213_v4  ;;  %v7189_v4 = vor.u32 %v7895_v8, %v7188_v48  ;;  %v8854_v35 = vpack.c.bf16 %v1331_v19, %v1302_v5  ;;  %v7907_v48 = vld [vmem:[#allocation16 + $0xd84] sm:$0xf0]  ;;  %v7520_v8 = vld [vmem:[#allocation16 + $0x174] sm:$0xf] }
 0x240   :  { %v5697_v5 = vor.u32 %v7520_v8, %v5694_v56  ;;  %v7480_v8 = vld [vmem:[#allocation16 + $0x34] sm:$0xf]  ;;  %v5534_v56 = vld [vmem:[#allocation16 + $0x38] sm:$0xf0] }
 0x241   :  { %4494 = vmatpush.bf16.msrb.mxu2 %v7077_v11  ;;  %4508 = vmatpush.bf16.msrb.mxu3 %v7141_v12  ;;  %v7108_v11 = vld [vmem:[#allocation16 + $0xc80] sm:$0xf]  ;;  %v7875_v12 = vld [vmem:[#allocation16 + $0xc84] sm:$0xf0] }
 0x242   :  { %4536 = vmatpush.bf16.msra.mxu1 %v7269_v25  ;;  %v7109_v18 = vor.u32 %v7875_v12, %v7108_v11  ;;  %v5569_v25 = vor.u32 %v7488_v2, %v5566_v3  ;;  %v7484_v11 = vld [vmem:[#allocation16 + $0x54] sm:$0xf]  ;;  %v5550_v12 = vld [vmem:[#allocation16 + $0x58] sm:$0xf0]  ;;  %v1304_v2 = vld [vmem:[%s9087_s19 + $0xd0] sm:$0xff] }
 0x243   :  { %4522 = vmatpush.bf16.msra.mxu0 %v7205_v22  ;;  %v7357_v22 = vor.u32 %v7937_v52, %v7356_v49  ;;  %v7173_v49 = vor.u32 %v7891_v46, %v7172_v45  ;;  %v1333_v3 = vld [vmem:[%s9087_s19 + $0x1b8] sm:$0xff]  ;;  %v5553_v19 = vor.u32 %v7484_v11, %v5550_v12  ;;  %v5678_v46 = vld [vmem:[#allocation16 + $0x158] sm:$0xf0]  ;;  %v7514_v11 = vld [vmem:[#allocation16 + $0x144] sm:$0xf] }
 0x244   :  { %v8872_v63 = vpack.c.bf16 %v1333_v3, %v1304_v2  ;;  %v7516_v45 = vld [vmem:[#allocation16 + $0x154] sm:$0xf]  ;;  %v5670_v12 = vld [vmem:[#allocation16 + $0x148] sm:$0xf0]  ;;  %v7316_v2 = vld [vmem:[#allocation16 + $0xe20] sm:$0xf] }
 0x245   :  { %4495 = vmatpush.bf16.msrb.mxu2 %v7069_v16  ;;  %4509 = vmatpush.bf16.msrb.mxu3 %v7133_v17  ;;  %v7909_v16 = vld [vmem:[#allocation16 + $0xd94] sm:$0xf0]  ;;  %v7045_v17 = vor.u32 %v7859_v61, %v7044_v59  ;;  %v5630_v59 = vld [vmem:[#allocation16 + $0xf8] sm:$0xf0]  ;;  %v7927_v3 = vld [vmem:[#allocation16 + $0xe24] sm:$0xf0] }
 0x246   :  { %4537 = vmatpush.bf16.msra.mxu1 %v7261_v47  ;;  %v7236_v47 = vld [vmem:[#allocation16 + $0xd80] sm:$0xf]  ;;  %v7933_v61 = vld [vmem:[#allocation16 + $0xe54] sm:$0xf0] }
 0x247   :  { %4523 = vmatpush.bf16.msra.mxu0 %v7197_v36  ;;  %v7504_v36 = vld [vmem:[#allocation16 + $0xf4] sm:$0xf]  ;;  %v7237_v52 = vor.u32 %v7907_v48, %v7236_v47  ;;  %v7324_v48 = vld [vmem:[#allocation16 + $0xe30] sm:$0xf] }
 0x249   :  { %4496 = vmatpush.bf16.msrb.mxu2 %v7061_v41  ;;  %4510 = vmatpush.bf16.msrb.mxu3 %v7125_v42  ;;  %v7181_v41 = vor.u32 %v7893_v51, %v7180_v50  ;;  %v7245_v42 = vor.u32 %v7909_v16, %v7244_v13  ;;  %v1334_v50 = vld [vmem:[%s9087_s19 + $0x1c0] sm:$0xff]  ;;  %v7502_v51 = vld [vmem:[#allocation16 + $0xe4] sm:$0xf]  ;;  %v5622_v13 = vld [vmem:[#allocation16 + $0xe8] sm:$0xf0] }
 0x24a   :  { %4538 = vmatpush.bf16.msra.mxu1 %v7253_v10  ;;  %v1305_v10 = vld [vmem:[%s9087_s19 + $0xd8] sm:$0xff]  ;;  %v7518_v16 = vld [vmem:[#allocation16 + $0x164] sm:$0xf] }
 0x24b   :  { %4524 = vmatpush.bf16.msra.mxu0 %v7189_v4  ;;  %v5633_v4 = vor.u32 %v7504_v36, %v5630_v59  ;;  %v8874_v28 = vpack.c.bf16 %v1334_v50, %v1305_v10  ;;  %v7929_v59 = vld [vmem:[#allocation16 + $0xe34] sm:$0xf0]  ;;  %v5673_v50 = vor.u32 %v7514_v11, %v5670_v12 }
 0x24d   :  { %4497 = vmatpush.bf16.msrb.mxu2 %v7053_v9  ;;  %4511 = vmatpush.bf16.msrb.mxu3 %v7117_v43  ;;  %v5561_v9 = vor.u32 %v7486_v62, %v5558_v30  ;;  %v7340_v43 = vld [vmem:[#allocation16 + $0xe50] sm:$0xf]  ;;  %v5625_v62 = vor.u32 %v7502_v51, %v5622_v13  ;;  %v7496_v51 = vld [vmem:[#allocation16 + $0xb4] sm:$0xf]  ;;  %v5598_v13 = vld [vmem:[#allocation16 + $0xb8] sm:$0xf0] }
 0x24e   :  { %4539 = vmatpush.bf16.msra.mxu1 %v7245_v42  ;;  %v5614_v42 = vld [vmem:[#allocation16 + $0xd8] sm:$0xf0] }
 0x24f   :  { %4525 = vmatpush.bf16.msra.mxu0 %v7181_v41  ;;  %v7500_v41 = vld [vmem:[#allocation16 + $0xd4] sm:$0xf] }
 0x251   :  { %4498 = vmatpush.bf16.msrb.mxu2 %v7045_v17  ;;  %4512 = vmatpush.bf16.msrb.mxu3 %v7109_v18  ;;  %v5686_v17 = vld [vmem:[#allocation16 + $0x168] sm:$0xf0]  ;;  %v7341_v18 = vor.u32 %v7933_v61, %v7340_v43  ;;  %v7498_v43 = vld [vmem:[#allocation16 + $0xc4] sm:$0xf] }
 0x252   :  { %4540 = vmatpush.bf16.msra.mxu1 %v7237_v52  ;;  %v5689_v30 = vor.u32 %v7518_v16, %v5686_v17  ;;  %v5606_v61 = vld [vmem:[#allocation16 + $0xc8] sm:$0xf0]  ;;  %v5537_v52 = vor.u32 %v7480_v8, %v5534_v56  ;;  %v7512_v16 = vld [vmem:[#allocation16 + $0x134] sm:$0xf]  ;;  %v5662_v17 = vld [vmem:[#allocation16 + $0x138] sm:$0xf0] }
 0x253   :  { %4526 = vmatpush.bf16.msra.mxu0 %v7173_v49  ;;  %v7325_v49 = vor.u32 %v7929_v59, %v7324_v48  ;;  %v5609_v10 = vor.u32 %v7498_v43, %v5606_v61  ;;  %v7300_v48 = vld [vmem:[#allocation16 + $0xe00] sm:$0xf]  ;;  %v7923_v59 = vld [vmem:[#allocation16 + $0xe04] sm:$0xf0]  ;;  %v7474_v8 = vld [vmem:[#allocation16 + $0x4] sm:$0xf] }
 0x254   :  { %4499 = vmatmul.bf16.vlgmr.msrb.gmra.mxu2 %v8854_v35  ;;  %4513 = vmatmul.bf16.vlgmr.msrb.gmra.mxu3 %v8856_v34  ;;  %v5510_v56 = vld [vmem:[#allocation16 + $0x8] sm:$0xf0]  ;;  %v7552_v43 = vld [vmem:[#allocation16 + $0x274] sm:$0xf]  ;;  %v5822_v61 = vld [vmem:[#allocation16 + $0x278] sm:$0xf0] }
 0x255   :  { %4547 = vmatpush.bf16.msra.mxu2 %v7357_v22  ;;  %4561 = vmatpush.bf16.msra.mxu3 %v5569_v25  ;;  %v7931_v22 = vld [vmem:[#allocation16 + $0xe44] sm:$0xf0]  ;;  %v7482_v25 = vld [vmem:[#allocation16 + $0x44] sm:$0xf] }
 0x256   :  { %4589 = vmatpush.bf16.msrb.mxu1 %v5697_v5  ;;  %v7333_v36 = vor.u32 %v7931_v22, %v7332_v20  ;;  %v5545_v47 = vor.u32 %v7482_v25, %v5542_v27  ;;  %4527 = vmatmul.bf16.vlgmr.msra.gmra.mxu0 %v8872_v63  ;;  %v5526_v5 = vld [vmem:[#allocation16 + $0x28] sm:$0xf0]  ;;  %v7308_v20 = vld [vmem:[#allocation16 + $0xe10] sm:$0xf]  ;;  %v7925_v22 = vld [vmem:[#allocation16 + $0xe14] sm:$0xf0] }
 0x257   :  { %4575 = vmatpush.bf16.msrb.mxu0 %v5633_v4  ;;  %4541 = vmatmul.bf16.vlgmr.msra.gmra.mxu1 %v8874_v28  ;;  %v7478_v4 = vld [vmem:[#allocation16 + $0x24] sm:$0xf]  ;;  %v7476_v25 = vld [vmem:[#allocation16 + $0x14] sm:$0xf]  ;;  %v5518_v27 = vld [vmem:[#allocation16 + $0x18] sm:$0xf0] }
 0x259   :  { %4548 = vmatpush.bf16.msra.mxu2 %v7349_v21  ;;  %4562 = vmatpush.bf16.msra.mxu3 %v5561_v9  ;;  %v5617_v21 = vor.u32 %v7500_v41, %v5614_v42  ;;  %v5681_v9 = vor.u32 %v7516_v45, %v5678_v46  ;;  %v7494_v41 = vld [vmem:[#allocation16 + $0xa4] sm:$0xf]  ;;  %v5590_v42 = vld [vmem:[#allocation16 + $0xa8] sm:$0xf0] }
 0x25a   :  { %4590 = vmatpush.bf16.msrb.mxu1 %v5689_v30  ;;  %v5665_v30 = vor.u32 %v7512_v16, %v5662_v17  ;;  %v7510_v45 = vld [vmem:[#allocation16 + $0x124] sm:$0xf]  ;;  %v5654_v46 = vld [vmem:[#allocation16 + $0x128] sm:$0xf0]  ;;  %v5593_v11 = vor.u32 %v7494_v41, %v5590_v42 }
 0x25b   :  { %4576 = vmatpush.bf16.msrb.mxu0 %v5625_v62  ;;  %v5601_v62 = vor.u32 %v7496_v51, %v5598_v13  ;;  %v5657_v12 = vor.u32 %v7510_v45, %v5654_v46  ;;  %v5825_v13 = vor.u32 %v7552_v43, %v5822_v61  ;;  %v7534_v16 = vld [vmem:[#allocation16 + $0x1e4] sm:$0xf]  ;;  %v5750_v17 = vld [vmem:[#allocation16 + $0x1e8] sm:$0xf0]  ;;  %v5886_v45 = vld [vmem:[#allocation16 + $0x2f8] sm:$0xf0] }
 0x25c   :  { %v7506_v41 = vld [vmem:[#allocation16 + $0x104] sm:$0xf]  ;;  %v5638_v42 = vld [vmem:[#allocation16 + $0x108] sm:$0xf0]  ;;  %v7584_v46 = vld [vmem:[#allocation16 + $0x374] sm:$0xf] }
 0x25d   :  { %4549 = vmatpush.bf16.msra.mxu2 %v7341_v18  ;;  %4563 = vmatpush.bf16.msra.mxu3 %v5553_v19  ;;  %v7317_v18 = vor.u32 %v7927_v3, %v7316_v2  ;;  %v5529_v19 = vor.u32 %v7478_v4, %v5526_v5  ;;  %v7508_v2 = vld [vmem:[#allocation16 + $0x114] sm:$0xf]  ;;  %v5646_v3 = vld [vmem:[#allocation16 + $0x118] sm:$0xf0]  ;;  %v7301_v4 = vor.u32 %v7923_v59, %v7300_v48 }
 0x25e   :  { %4591 = vmatpush.bf16.msrb.mxu1 %v5681_v9  ;;  %v5758_v9 = vld [vmem:[#allocation16 + $0x1f8] sm:$0xf0]  ;;  %v5513_v5 = vor.u32 %v7474_v8, %v5510_v56  ;;  %v7532_v59 = vld [vmem:[#allocation16 + $0x1d4] sm:$0xf]  ;;  %v5641_v43 = vor.u32 %v7506_v41, %v5638_v42 }
 0x25f   :  { %4577 = vmatpush.bf16.msrb.mxu0 %v5617_v21  ;;  %v7536_v21 = vld [vmem:[#allocation16 + $0x1f4] sm:$0xf]  ;;  %v5742_v8 = vld [vmem:[#allocation16 + $0x1d8] sm:$0xf0] }
 0x260   :  { %v5761_v51 = vor.u32 %v7536_v21, %v5758_v9  ;;  %v7548_v56 = vld [vmem:[#allocation16 + $0x254] sm:$0xf]  ;;  %v5806_v21 = vld [vmem:[#allocation16 + $0x258] sm:$0xf0] }
 0x261   :  { %4550 = vmatpush.bf16.msra.mxu2 %v7333_v36  ;;  %4564 = vmatpush.bf16.msra.mxu3 %v5545_v47  ;;  %v7309_v36 = vor.u32 %v7925_v22, %v7308_v20  ;;  %v5521_v47 = vor.u32 %v7476_v25, %v5518_v27  ;;  %v5649_v22 = vor.u32 %v7508_v2, %v5646_v3  ;;  %v7490_v25 = vld [vmem:[#allocation16 + $0x84] sm:$0xf]  ;;  %v5574_v27 = vld [vmem:[#allocation16 + $0x88] sm:$0xf0]  ;;  %v5726_v41 = vld [vmem:[#allocation16 + $0x1b8] sm:$0xf0] }
 0x262   :  { %4592 = vmatpush.bf16.msrb.mxu1 %v5673_v50  ;;  %v1335_v50 = vld [vmem:[%s9087_s19 + $0x1c8] sm:$0xff]  ;;  %v5577_v9 = vor.u32 %v7490_v25, %v5574_v27  ;;  %v5942_v2 = vld [vmem:[#allocation16 + $0x368] sm:$0xf0]  ;;  %v5745_v3 = vor.u32 %v7532_v59, %v5742_v8  ;;  %v7528_v27 = vld [vmem:[#allocation16 + $0x1b4] sm:$0xf] }
 0x263   :  { %4578 = vmatpush.bf16.msrb.mxu0 %v5609_v10  ;;  %v1306_v10 = vld [vmem:[%s9087_s19 + $0xe0] sm:$0xff]  ;;  %v7578_v59 = vld [vmem:[#allocation16 + $0x344] sm:$0xf]  ;;  %v5926_v8 = vld [vmem:[#allocation16 + $0x348] sm:$0xf0] }
 0x264   :  { %v7544_v42 = vld [vmem:[#allocation16 + $0x234] sm:$0xf] }
 0x265   :  { %4551 = vmatpush.bf16.msra.mxu2 %v7325_v49  ;;  %4565 = vmatpush.bf16.msra.mxu3 %v5537_v52  ;;  %v7492_v49 = vld [vmem:[#allocation16 + $0x94] sm:$0xf]  ;;  %v5582_v52 = vld [vmem:[#allocation16 + $0x98] sm:$0xf0] }
 0x266   :  { %4593 = vmatpush.bf16.msrb.mxu1 %v5665_v30  ;;  %v5585_v20 = vor.u32 %v7492_v49, %v5582_v52  ;;  %v7568_v30 = vld [vmem:[#allocation16 + $0x2f4] sm:$0xf]  ;;  %v5878_v49 = vld [vmem:[#allocation16 + $0x2e8] sm:$0xf0]  ;;  %v7582_v52 = vld [vmem:[#allocation16 + $0x364] sm:$0xf] }
 0x267   :  { %4579 = vmatpush.bf16.msrb.mxu0 %v5601_v62  ;;  %v8884_v62 = vpack.c.bf16 %v1335_v50, %v1306_v10  ;;  %v5889_v61 = vor.u32 %v7568_v30, %v5886_v45  ;;  %v8888_v10 = vpop.f32.mrf.mxu2  ;;  %v5734_v50 = vld [vmem:[#allocation16 + $0x1c8] sm:$0xf0]  ;;  %v8890_v30 = vpop.f32.mrf.mxu3  ;;  %v5790_v45 = vld [vmem:[#allocation16 + $0x238] sm:$0xf0] }
 0x269   :  { %4552 = vmatpush.bf16.msra.mxu2 %v7317_v18  ;;  %4566 = vmatpush.bf16.msra.mxu3 %v5529_v19  ;;  %v7550_v18 = vld [vmem:[#allocation16 + $0x264] sm:$0xf]  ;;  %v5814_v19 = vld [vmem:[#allocation16 + $0x268] sm:$0xf0]  ;;  %9088 = vst [vmem:[#allocation29_spill] sm:$0xff] %v8884_v62 }
 0x26a   :  { %4594 = vmatpush.bf16.msrb.mxu1 %v5657_v12  ;;  %v5817_v48 = vor.u32 %v7550_v18, %v5814_v19  ;;  %v7566_v12 = vld [vmem:[#allocation16 + $0x2e4] sm:$0xf]  ;;  %v5870_v18 = vld [vmem:[#allocation16 + $0x2d8] sm:$0xf0]  ;;  %v7580_v19 = vld [vmem:[#allocation16 + $0x354] sm:$0xf] }
 0x26b   :  { %4580 = vmatpush.bf16.msrb.mxu0 %v5593_v11 }
 0x26d   :  { %4553 = vmatpush.bf16.msra.mxu2 %v7309_v36  ;;  %4567 = vmatpush.bf16.msra.mxu3 %v5521_v47  ;;  %v5950_v36 = vld [vmem:[#allocation16 + $0x378] sm:$0xf0]  ;;  %v5753_v47 = vor.u32 %v7534_v16, %v5750_v17  ;;  %v5881_v16 = vor.u32 %v7566_v12, %v5878_v49  ;;  %v5945_v17 = vor.u32 %v7582_v52, %v5942_v2  ;;  %v7560_v49 = vld [vmem:[#allocation16 + $0x2b4] sm:$0xf] }
 0x26e   :  { %4595 = vmatpush.bf16.msrb.mxu1 %v5649_v22  ;;  %v5953_v11 = vor.u32 %v7584_v46, %v5950_v36  ;;  %v5929_v12 = vor.u32 %v7578_v59, %v5926_v8  ;;  %v5854_v2 = vld [vmem:[#allocation16 + $0x2b8] sm:$0xf0]  ;;  %v7600_v59 = vld [vmem:[#allocation16 + $0x3f4] sm:$0xf] }
 0x26f   :  { %4581 = vmatpush.bf16.msrb.mxu0 %v5585_v20  ;;  %v5934_v20 = vld [vmem:[#allocation16 + $0x358] sm:$0xf0]  ;;  %v8896_v52 = vpop.f32.mrf.mxu2 }
 0x270   :  { %v5937_v36 = vor.u32 %v7580_v19, %v5934_v20  ;;  %v7558_v20 = vld [vmem:[#allocation16 + $0x2a4] sm:$0xf]  ;;  %v6014_v8 = vld [vmem:[#allocation16 + $0x3f8] sm:$0xf0] }
 0x271   :  { %4554 = vmatpush.bf16.msra.mxu2 %v7301_v4  ;;  %4568 = vmatpush.bf16.msra.mxu3 %v5513_v5  ;;  %v5809_v4 = vor.u32 %v7548_v56, %v5806_v21  ;;  %v7530_v5 = vld [vmem:[#allocation16 + $0x1c4] sm:$0xf]  ;;  %v5729_v56 = vor.u32 %v7528_v27, %v5726_v41  ;;  %v5793_v21 = vor.u32 %v7544_v42, %v5790_v45  ;;  %v5910_v41 = vld [vmem:[#allocation16 + $0x328] sm:$0xf0] }
 0x272   :  { %4596 = vmatpush.bf16.msrb.mxu1 %v5641_v43  ;;  %v5737_v22 = vor.u32 %v7530_v5, %v5734_v50  ;;  %v8894_v43 = vpop.f32.mrf.mxu0  ;;  %v7574_v27 = vld [vmem:[#allocation16 + $0x324] sm:$0xf] }
 0x273   :  { %4582 = vmatpush.bf16.msrb.mxu0 %v5577_v9  ;;  %v7526_v9 = vld [vmem:[#allocation16 + $0x1a4] sm:$0xf] }
 0x274   :  { %4555 = vmatmul.bf16.vlgmr.msra.gmra.mxu2 %v8884_v62  ;;  %4569 = vmatmul.bf16.vlgmr.msra.gmra.mxu3 %v8520_v29  ;;  %v7564_v29 = vld [vmem:[#allocation16 + $0x2d4] sm:$0xf]  ;;  %v6134_v62 = vld [vmem:[#allocation16 + $0x4e8] sm:$0xf0] }
 0x275   :  { %4603 = vmatpush.bf16.msrb.mxu2 %v5761_v51  ;;  %4617 = vmatpush.bf16.msrb.mxu3 %v5825_v13  ;;  %v7546_v51 = vld [vmem:[#allocation16 + $0x244] sm:$0xf]  ;;  %v5798_v13 = vld [vmem:[#allocation16 + $0x248] sm:$0xf0]  ;;  %v5873_v46 = vor.u32 %v7564_v29, %v5870_v18  ;;  %v5774_v29 = vld [vmem:[#allocation16 + $0x218] sm:$0xf0]  ;;  %v5857_v18 = vor.u32 %v7560_v49, %v5854_v2 }
 0x276   :  { %4645 = vmatpush.bf16.msra.mxu1 %v5953_v11  ;;  %v5801_v25 = vor.u32 %v7546_v51, %v5798_v13  ;;  %4583 = vmatmul.bf16.vlgmr.msrb.gmra.mxu0 %v8522_v32  ;;  %v7542_v11 = vld [vmem:[#allocation16 + $0x224] sm:$0xf]  ;;  %v5782_v32 = vld [vmem:[#allocation16 + $0x228] sm:$0xf0]  ;;  %v7524_v51 = vld [vmem:[#allocation16 + $0x194] sm:$0xf]  ;;  %v8898_v13 = vpop.f32.mrf.mxu1 }
 0x277   :  { %4631 = vmatpush.bf16.msra.mxu0 %v5889_v61  ;;  %4597 = vmatmul.bf16.vlgmr.msrb.gmra.mxu1 %v8524_v39  ;;  %v5718_v61 = vld [vmem:[#allocation16 + $0x1a8] sm:$0xf0]  ;;  %v5785_v50 = vor.u32 %v7542_v11, %v5782_v32  ;;  %v7556_v11 = vld [vmem:[#allocation16 + $0x294] sm:$0xf]  ;;  %v5902_v49 = vld [vmem:[#allocation16 + $0x318] sm:$0xf0] }
 0x278   :  { %v5721_v5 = vor.u32 %v7526_v9, %v5718_v61  ;;  %v5913_v61 = vor.u32 %v7574_v27, %v5910_v41  ;;  %v8904_v2 = vld [vmem:[#allocation18] sm:$0x3]  ;;  %v5830_v27 = vld [vmem:[#allocation16 + $0x288] sm:$0xf0] }
 0x279   :  { %4604 = vmatpush.bf16.msrb.mxu2 %v5753_v47  ;;  %4618 = vmatpush.bf16.msrb.mxu3 %v5817_v48  ;;  %v7562_v47 = vld [vmem:[#allocation16 + $0x2c4] sm:$0xf]  ;;  %v5862_v48 = vld [vmem:[#allocation16 + $0x2c8] sm:$0xf0] }
 0x27a   :  { %4646 = vmatpush.bf16.msra.mxu1 %v5945_v17  ;;  %v5865_v39 = vor.u32 %v7562_v47, %v5862_v48  ;;  %v7540_v17 = vld [vmem:[#allocation16 + $0x214] sm:$0xf]  ;;  %v7538_v47 = vld [vmem:[#allocation16 + $0x204] sm:$0xf]  ;;  %v5766_v48 = vld [vmem:[#allocation16 + $0x208] sm:$0xf0]  ;;  %v8902_v32 = vpop.f32.mrf.mxu0 }
 0x27b   :  { %4632 = vmatpush.bf16.msra.mxu0 %v5881_v16  ;;  %v5710_v16 = vld [vmem:[#allocation16 + $0x198] sm:$0xf0]  ;;  %v5777_v45 = vor.u32 %v7540_v17, %v5774_v29  ;;  %v6006_v17 = vld [vmem:[#allocation16 + $0x3e8] sm:$0xf0]  ;;  %v7614_v29 = vld [vmem:[#allocation16 + $0x464] sm:$0xf] }
 0x27c   :  { %v5713_v42 = vor.u32 %v7524_v51, %v5710_v16  ;;  %v7598_v16 = vld [vmem:[#allocation16 + $0x3e4] sm:$0xf] }
 0x27d   :  { %4605 = vmatpush.bf16.msrb.mxu2 %v5745_v3  ;;  %4619 = vmatpush.bf16.msrb.mxu3 %v5809_v4  ;;  %v7576_v3 = vld [vmem:[#allocation16 + $0x334] sm:$0xf]  ;;  %v5918_v4 = vld [vmem:[#allocation16 + $0x338] sm:$0xf0] }
 0x27e   :  { %4647 = vmatpush.bf16.msra.mxu1 %v5937_v36  ;;  %v5921_v19 = vor.u32 %v7576_v3, %v5918_v4  ;;  %v5702_v36 = vld [vmem:[#allocation16 + $0x188] sm:$0xf0]  ;;  %v5769_v4 = vor.u32 %v7538_v47, %v5766_v48  ;;  %v8908_v41 = vpop.f32.mrf.mxu1  ;;  %v7648_v47 = vld [vmem:[#allocation16 + $0x574] sm:$0xf]  ;;  %v6206_v48 = vld [vmem:[#allocation16 + $0x578] sm:$0xf0] }
 0x27f   :  { %4633 = vmatpush.bf16.msra.mxu0 %v5873_v46  ;;  %v7522_v46 = vld [vmem:[#allocation16 + $0x184] sm:$0xf] }
 0x280   :  { %v5705_v3 = vor.u32 %v7522_v46, %v5702_v36  ;;  %v5894_v46 = vld [vmem:[#allocation16 + $0x308] sm:$0xf0]  ;;  %v6142_v36 = vld [vmem:[#allocation16 + $0x4f8] sm:$0xf0] }
 0x281   :  { %4606 = vmatpush.bf16.msrb.mxu2 %v5737_v22  ;;  %4620 = vmatpush.bf16.msrb.mxu3 %v5801_v25  ;;  %v8900_v22 = vpop.f32.mrf.mxu3  ;;  %v5846_v25 = vld [vmem:[#allocation16 + $0x2a8] sm:$0xf0] }
 0x282   :  { %4648 = vmatpush.bf16.msra.mxu1 %v5929_v12  ;;  %v5849_v9 = vor.u32 %v7558_v20, %v5846_v25  ;;  %v7572_v12 = vld [vmem:[#allocation16 + $0x314] sm:$0xf]  ;;  %v7554_v25 = vld [vmem:[#allocation16 + $0x284] sm:$0xf] }
 0x283   :  { %4634 = vmatpush.bf16.msra.mxu0 %v5865_v39  ;;  %v5838_v39 = vld [vmem:[#allocation16 + $0x298] sm:$0xf0]  ;;  %v5905_v20 = vor.u32 %v7572_v12, %v5902_v49  ;;  %v5833_v12 = vor.u32 %v7554_v25, %v5830_v27  ;;  %v6054_v25 = vld [vmem:[#allocation16 + $0x448] sm:$0xf0] }
 0x285   :  { %4607 = vmatpush.bf16.msrb.mxu2 %v5729_v56  ;;  %4621 = vmatpush.bf16.msrb.mxu3 %v5793_v21  ;;  %v7616_v56 = vld [vmem:[#allocation16 + $0x474] sm:$0xf]  ;;  %v6078_v21 = vld [vmem:[#allocation16 + $0x478] sm:$0xf0] }
 0x286   :  { %4649 = vmatpush.bf16.msra.mxu1 %v5921_v19  ;;  %v6081_v51 = vor.u32 %v7616_v56, %v6078_v21  ;;  %v5841_v19 = vor.u32 %v7556_v11, %v5838_v39  ;;  %v6009_v56 = vor.u32 %v7598_v16, %v6006_v17  ;;  %v7612_v11 = vld [vmem:[#allocation16 + $0x454] sm:$0xf]  ;;  %v6062_v39 = vld [vmem:[#allocation16 + $0x458] sm:$0xf0]  ;;  %v9089_v16 = vperm.slane %v8904_v2, 0 }
 0x287   :  { %4635 = vmatpush.bf16.msra.mxu0 %v5857_v18  ;;  %v6070_v18 = vld [vmem:[#allocation16 + $0x468] sm:$0xf0] }
 0x288   :  { %v6073_v21 = vor.u32 %v7614_v29, %v6070_v18  ;;  %v4165_v17 = vadd.f32 %v8888_v10, %v9089_v16  ;;  %v8918_v29 = vpop.f32.mrf.mxu0  ;;  %v6126_v10 = vld [vmem:[#allocation16 + $0x4d8] sm:$0xf0] }
 0x289   :  { %4608 = vmatpush.bf16.msrb.mxu2 %v5721_v5  ;;  %4622 = vmatpush.bf16.msrb.mxu3 %v5785_v50  ;;  %v8906_v5 = vpop.f32.mrf.mxu2  ;;  %v6017_v50 = vor.u32 %v7600_v59, %v6014_v8  ;;  %v8911_v8 = vpop.f32.mrf.mxu3  ;;  %v7630_v59 = vld [vmem:[#allocation16 + $0x4e4] sm:$0xf] }
 0x28a   :  { %4650 = vmatpush.bf16.msra.mxu1 %v5913_v61  ;;  %v5998_v61 = vld [vmem:[#allocation16 + $0x3d8] sm:$0xf0] }
 0x28b   :  { %4636 = vmatpush.bf16.msra.mxu0 %v5849_v9  ;;  %v7596_v9 = vld [vmem:[#allocation16 + $0x3d4] sm:$0xf] }
 0x28c   :  { %v6001_v18 = vor.u32 %v7596_v9, %v5998_v61  ;;  %v7592_v61 = vld [vmem:[#allocation16 + $0x3b4] sm:$0xf] }
 0x28d   :  { %4609 = vmatpush.bf16.msrb.mxu2 %v5713_v42  ;;  %4623 = vmatpush.bf16.msrb.mxu3 %v5777_v45  ;;  %v7632_v42 = vld [vmem:[#allocation16 + $0x4f4] sm:$0xf]  ;;  %v7570_v45 = vld [vmem:[#allocation16 + $0x304] sm:$0xf] }
 0x28e   :  { %4651 = vmatpush.bf16.msra.mxu1 %v5905_v20  ;;  %v5897_v49 = vor.u32 %v7570_v45, %v5894_v46  ;;  %v7594_v20 = vld [vmem:[#allocation16 + $0x3c4] sm:$0xf]  ;;  %v7628_v46 = vld [vmem:[#allocation16 + $0x4d4] sm:$0xf] }
 0x28f   :  { %4637 = vmatpush.bf16.msra.mxu0 %v5841_v19  ;;  %v6065_v19 = vor.u32 %v7612_v11, %v6062_v39  ;;  %v5982_v11 = vld [vmem:[#allocation16 + $0x3b8] sm:$0xf0] }
 0x291   :  { %4610 = vmatpush.bf16.msrb.mxu2 %v5705_v3  ;;  %4624 = vmatpush.bf16.msrb.mxu3 %v5769_v4  ;;  %v6145_v3 = vor.u32 %v7632_v42, %v6142_v36  ;;  %v6209_v4 = vor.u32 %v7648_v47, %v6206_v48  ;;  %v8920_v27 = vpop.f32.mrf.mxu2  ;;  %v6137_v42 = vor.u32 %v7630_v59, %v6134_v62  ;;  %v7644_v36 = vld [vmem:[#allocation16 + $0x554] sm:$0xf]  ;;  %v6190_v47 = vld [vmem:[#allocation16 + $0x558] sm:$0xf0]  ;;  %v8927_v39 = vpop.f32.mrf.mxu3 }
 0x292   :  { %4652 = vmatpush.bf16.msra.mxu1 %v5897_v49  ;;  %v4179_v48 = vadd.f32 %v8890_v30, %v4165_v17  ;;  %v7608_v62 = vld [vmem:[#allocation16 + $0x434] sm:$0xf]  ;;  %v6046_v59 = vld [vmem:[#allocation16 + $0x438] sm:$0xf0]  ;;  %v6193_v30 = vor.u32 %v7644_v36, %v6190_v47  ;;  %v7626_v49 = vld [vmem:[#allocation16 + $0x4c4] sm:$0xf] }
 0x293   :  { %4638 = vmatpush.bf16.msra.mxu0 %v5833_v12  ;;  %v6129_v12 = vor.u32 %v7628_v46, %v6126_v10  ;;  %v6049_v16 = vor.u32 %v7608_v62, %v6046_v59  ;;  %v5974_v17 = vld [vmem:[#allocation16 + $0x3a8] sm:$0xf0]  ;;  %v6110_v46 = vld [vmem:[#allocation16 + $0x4b8] sm:$0xf0]  ;;  %v7640_v10 = vld [vmem:[#allocation16 + $0x534] sm:$0xf] }
 0x294   :  { %4611 = vmatmul.bf16.vlgmr.msrb.gmra.mxu2 %v8526_v40  ;;  %4625 = vmatmul.bf16.vlgmr.msrb.gmra.mxu3 %v8547_v6  ;;  %v5990_v40 = vld [vmem:[#allocation16 + $0x3c8] sm:$0xf0]  ;;  %v7610_v6 = vld [vmem:[#allocation16 + $0x444] sm:$0xf]  ;;  %v6174_v36 = vld [vmem:[#allocation16 + $0x538] sm:$0xf0] }
 0x295   :  { %4659 = vmatpush.bf16.msra.mxu2 %v6017_v50  ;;  %4673 = vmatpush.bf16.msra.mxu3 %v6081_v51  ;;  %v7646_v50 = vld [vmem:[#allocation16 + $0x564] sm:$0xf]  ;;  %v6198_v51 = vld [vmem:[#allocation16 + $0x568] sm:$0xf0]  ;;  %v6057_v9 = vor.u32 %v7610_v6, %v6054_v25  ;;  %v6030_v62 = vld [vmem:[#allocation16 + $0x418] sm:$0xf0] }
 0x296   :  { %4701 = vmatpush.bf16.msrb.mxu1 %v6209_v4  ;;  %v6201_v45 = vor.u32 %v7646_v50, %v6198_v51  ;;  %4639 = vmatmul.bf16.vlgmr.msra.gmra.mxu0 %v8549_v7  ;;  %v7642_v4 = vld [vmem:[#allocation16 + $0x544] sm:$0xf]  ;;  %v6182_v50 = vld [vmem:[#allocation16 + $0x548] sm:$0xf0]  ;;  %v4193_v51 = vadd.f32 %v8894_v43, %v4179_v48  ;;  %v5985_v7 = vor.u32 %v7592_v61, %v5982_v11  ;;  %v5966_v61 = vld [vmem:[#allocation16 + $0x398] sm:$0xf0] }
 0x297   :  { %4687 = vmatpush.bf16.msrb.mxu0 %v6145_v3  ;;  %4653 = vmatmul.bf16.vlgmr.msra.gmra.mxu1 %v8560_v23  ;;  %v6118_v3 = vld [vmem:[#allocation16 + $0x4c8] sm:$0xf0]  ;;  %v7590_v23 = vld [vmem:[#allocation16 + $0x3a4] sm:$0xf]  ;;  %v6185_v25 = vor.u32 %v7642_v4, %v6182_v50  ;;  %v7604_v11 = vld [vmem:[#allocation16 + $0x414] sm:$0xf] }
 0x298   :  { %v6121_v6 = vor.u32 %v7626_v49, %v6118_v3  ;;  %v4207_v47 = vadd.f32 %v8898_v13, %v4193_v51  ;;  %v5977_v48 = vor.u32 %v7590_v23, %v5974_v17  ;;  %v6102_v13 = vld [vmem:[#allocation16 + $0x4a8] sm:$0xf0]  ;;  %v7638_v3 = vld [vmem:[#allocation16 + $0x524] sm:$0xf] }
 0x299   :  { %4660 = vmatpush.bf16.msra.mxu2 %v6009_v56  ;;  %4674 = vmatpush.bf16.msra.mxu3 %v6073_v21  ;;  %v8923_v56 = vpop.f32.mrf.mxu1  ;;  %v5993_v21 = vor.u32 %v7594_v20, %v5990_v40  ;;  %v8930_v20 = vpop.f32.mrf.mxu0  ;;  %v6166_v4 = vld [vmem:[#allocation16 + $0x528] sm:$0xf0]  ;;  %v7602_v17 = vld [vmem:[#allocation16 + $0x404] sm:$0xf] }
 0x29a   :  { %4702 = vmatpush.bf16.msrb.mxu1 %v6201_v45  ;;  %v8932_v40 = vpop.f32.mrf.mxu2  ;;  %v9090_v45 = vperm.slane %v8904_v2, 0  ;;  %v6177_v2 = vor.u32 %v7640_v10, %v6174_v36  ;;  %v4221_v50 = vadd.f32 %v8906_v5, %v4207_v47  ;;  %v5958_v23 = vld [vmem:[#allocation16 + $0x388] sm:$0xf0]  ;;  %v6094_v10 = vld [vmem:[#allocation16 + $0x498] sm:$0xf0] }
 0x29b   :  { %4688 = vmatpush.bf16.msrb.mxu0 %v6137_v42  ;;  %v7624_v42 = vld [vmem:[#allocation16 + $0x4b4] sm:$0xf]  ;;  %v6158_v47 = vld [vmem:[#allocation16 + $0x518] sm:$0xf0] }
 0x29c   :  { %v4167_v43 = vadd.f32 %v8896_v52, %v9090_v45  ;;  %v6113_v52 = vor.u32 %v7624_v42, %v6110_v46  ;;  %v6334_v42 = vld [vmem:[#allocation16 + $0x678] sm:$0xf0]  ;;  %v7620_v46 = vld [vmem:[#allocation16 + $0x494] sm:$0xf] }
 0x29d   :  { %4661 = vmatpush.bf16.msra.mxu2 %v6001_v18  ;;  %4675 = vmatpush.bf16.msra.mxu3 %v6065_v19  ;;  %v7606_v18 = vld [vmem:[#allocation16 + $0x424] sm:$0xf]  ;;  %v6038_v19 = vld [vmem:[#allocation16 + $0x428] sm:$0xf0]  ;;  %v7636_v36 = vld [vmem:[#allocation16 + $0x514] sm:$0xf] }
 0x29e   :  { %4703 = vmatpush.bf16.msrb.mxu1 %v6193_v30  ;;  %v7622_v30 = vld [vmem:[#allocation16 + $0x4a4] sm:$0xf]  ;;  %v4181_v49 = vadd.f32 %v8900_v22, %v4167_v43  ;;  %v7680_v22 = vld [vmem:[#allocation16 + $0x674] sm:$0xf]  ;;  %v6169_v43 = vor.u32 %v7638_v3, %v6166_v4  ;;  %v6161_v3 = vor.u32 %v7636_v36, %v6158_v47 }
 0x29f   :  { %4689 = vmatpush.bf16.msrb.mxu0 %v6129_v12  ;;  %v8940_v12 = vpop.f32.mrf.mxu3  ;;  %v6105_v45 = vor.u32 %v7622_v30, %v6102_v13  ;;  %v7678_v30 = vld [vmem:[#allocation16 + $0x664] sm:$0xf] }
 0x2a0   :  { %v4195_v5 = vadd.f32 %v8902_v32, %v4181_v49  ;;  %v6326_v32 = vld [vmem:[#allocation16 + $0x668] sm:$0xf0]  ;;  %v6097_v49 = vor.u32 %v7620_v46, %v6094_v10  ;;  %v7618_v4 = vld [vmem:[#allocation16 + $0x484] sm:$0xf]  ;;  %v7676_v46 = vld [vmem:[#allocation16 + $0x654] sm:$0xf] }
 0x2a1   :  { %4662 = vmatpush.bf16.msra.mxu2 %v5993_v21  ;;  %4676 = vmatpush.bf16.msra.mxu3 %v6057_v9  ;;  %v6041_v21 = vor.u32 %v7606_v18, %v6038_v19  ;;  %v7588_v9 = vld [vmem:[#allocation16 + $0x394] sm:$0xf]  ;;  %v8938_v59 = vpop.f32.mrf.mxu1  ;;  %v6022_v18 = vld [vmem:[#allocation16 + $0x408] sm:$0xf0] }
 0x2a2   :  { %4704 = vmatpush.bf16.msrb.mxu1 %v6185_v25  ;;  %v5969_v51 = vor.u32 %v7588_v9, %v5966_v61  ;;  %v7664_v19 = vld [vmem:[#allocation16 + $0x5f4] sm:$0xf]  ;;  %v8944_v25 = vpop.f32.mrf.mxu0  ;;  %v6025_v61 = vor.u32 %v7602_v17, %v6022_v18  ;;  %v6398_v18 = vld [vmem:[#allocation16 + $0x6f8] sm:$0xf0] }
 0x2a3   :  { %4690 = vmatpush.bf16.msrb.mxu0 %v6121_v6  ;;  %v6270_v6 = vld [vmem:[#allocation16 + $0x5f8] sm:$0xf0] }
 0x2a5   :  { %4663 = vmatpush.bf16.msra.mxu2 %v5985_v7  ;;  %4677 = vmatpush.bf16.msra.mxu3 %v6049_v16  ;;  %v6033_v7 = vor.u32 %v7604_v11, %v6030_v62  ;;  %v7586_v16 = vld [vmem:[#allocation16 + $0x384] sm:$0xf]  ;;  %v6273_v11 = vor.u32 %v7664_v19, %v6270_v6  ;;  %v6337_v62 = vor.u32 %v7680_v22, %v6334_v42  ;;  %v7712_v19 = vld [vmem:[#allocation16 + $0x774] sm:$0xf]  ;;  %v6462_v6 = vld [vmem:[#allocation16 + $0x778] sm:$0xf0] }
 0x2a6   :  { %4705 = vmatpush.bf16.msrb.mxu1 %v6177_v2  ;;  %v5961_v9 = vor.u32 %v7586_v16, %v5958_v23  ;;  %v6262_v2 = vld [vmem:[#allocation16 + $0x5e8] sm:$0xf0]  ;;  %v6465_v47 = vor.u32 %v7712_v19, %v6462_v6  ;;  %v7656_v6 = vld [vmem:[#allocation16 + $0x5b4] sm:$0xf] }
 0x2a7   :  { %4691 = vmatpush.bf16.msrb.mxu0 %v6113_v52  ;;  %v7662_v52 = vld [vmem:[#allocation16 + $0x5e4] sm:$0xf]  ;;  %v6150_v16 = vld [vmem:[#allocation16 + $0x508] sm:$0xf0]  ;;  %v8954_v17 = vpop.f32.mrf.mxu3 }
 0x2a8   :  { %v6265_v42 = vor.u32 %v7662_v52, %v6262_v2  ;;  %v6454_v52 = vld [vmem:[#allocation16 + $0x768] sm:$0xf0] }
 0x2a9   :  { %4664 = vmatpush.bf16.msra.mxu2 %v5977_v48  ;;  %4678 = vmatpush.bf16.msra.mxu3 %v6041_v21  ;;  %v4235_v48 = vadd.f32 %v8911_v8, %v4221_v50  ;;  %v8948_v21 = vpop.f32.mrf.mxu2  ;;  %v8950_v13 = vpop.f32.mrf.mxu1  ;;  %v6086_v8 = vld [vmem:[#allocation16 + $0x488] sm:$0xf0]  ;;  %v4209_v50 = vadd.f32 %v8908_v41, %v4195_v5  ;;  %v6254_v41 = vld [vmem:[#allocation16 + $0x5d8] sm:$0xf0] }
 0x2aa   :  { %4706 = vmatpush.bf16.msrb.mxu1 %v6169_v43  ;;  %v7660_v43 = vld [vmem:[#allocation16 + $0x5d4] sm:$0xf]  ;;  %v6318_v5 = vld [vmem:[#allocation16 + $0x658] sm:$0xf0] }
 0x2ab   :  { %4692 = vmatpush.bf16.msrb.mxu0 %v6105_v45  ;;  %v4249_v23 = vadd.f32 %v8918_v29, %v4235_v48  ;;  %v4223_v22 = vadd.f32 %v8920_v27, %v4209_v50  ;;  %v6329_v45 = vor.u32 %v7678_v30, %v6326_v32  ;;  %v6089_v29 = vor.u32 %v7618_v4, %v6086_v8  ;;  %v7694_v48 = vld [vmem:[#allocation16 + $0x6e4] sm:$0xf]  ;;  %v7692_v50 = vld [vmem:[#allocation16 + $0x6d4] sm:$0xf] }
 0x2ac   :  { %v6257_v30 = vor.u32 %v7660_v43, %v6254_v41  ;;  %v7658_v32 = vld [vmem:[#allocation16 + $0x5c4] sm:$0xf]  ;;  %v6302_v43 = vld [vmem:[#allocation16 + $0x638] sm:$0xf0] }
 0x2ad   :  { %4665 = vmatpush.bf16.msra.mxu2 %v5969_v51  ;;  %4679 = vmatpush.bf16.msra.mxu3 %v6033_v7  ;;  %v7696_v51 = vld [vmem:[#allocation16 + $0x6f4] sm:$0xf]  ;;  %v7634_v7 = vld [vmem:[#allocation16 + $0x504] sm:$0xf]  ;;  %v4263_v27 = vadd.f32 %v8923_v56, %v4249_v23  ;;  %v4237_v2 = vadd.f32 %v8927_v39, %v4223_v22  ;;  %v6446_v23 = vld [vmem:[#allocation16 + $0x758] sm:$0xf0] }
 0x2ae   :  { %4707 = vmatpush.bf16.msrb.mxu1 %v6161_v3  ;;  %v6153_v10 = vor.u32 %v7634_v7, %v6150_v16  ;;  %v6401_v36 = vor.u32 %v7696_v51, %v6398_v18  ;;  %v7674_v56 = vld [vmem:[#allocation16 + $0x644] sm:$0xf]  ;;  %v6310_v3 = vld [vmem:[#allocation16 + $0x648] sm:$0xf0]  ;;  %v6382_v7 = vld [vmem:[#allocation16 + $0x6d8] sm:$0xf0] }
 0x2af   :  { %4693 = vmatpush.bf16.msrb.mxu0 %v6097_v49  ;;  %v6246_v49 = vld [vmem:[#allocation16 + $0x5c8] sm:$0xf0]  ;;  %v8968_v39 = vpop.f32.mrf.mxu3  ;;  %v7708_v16 = vld [vmem:[#allocation16 + $0x754] sm:$0xf]  ;;  %v4251_v18 = vadd.f32 %v8930_v20, %v4237_v2  ;;  %v6313_v19 = vor.u32 %v7674_v56, %v6310_v3  ;;  %v6385_v41 = vor.u32 %v7692_v50, %v6382_v7  ;;  %v6430_v56 = vld [vmem:[#allocation16 + $0x738] sm:$0xf0] }
 0x2b0   :  { %v7668_v7 = vld [vmem:[#allocation16 + $0x614] sm:$0xf] }
 0x2b1   :  { %4666 = vmatpush.bf16.msra.mxu2 %v5961_v9  ;;  %4680 = vmatpush.bf16.msra.mxu3 %v6025_v61  ;;  %v8960_v9 = vpop.f32.mrf.mxu0  ;;  %v8962_v61 = vpop.f32.mrf.mxu2 }
 0x2b2   :  { %4708 = vmatpush.bf16.msrb.mxu1 %v6153_v10  ;;  %v8966_v51 = vpop.f32.mrf.mxu1  ;;  %v7706_v10 = vld [vmem:[#allocation16 + $0x744] sm:$0xf] }
 0x2b3   :  { %4694 = vmatpush.bf16.msrb.mxu0 %v6089_v29  ;;  %v6374_v29 = vld [vmem:[#allocation16 + $0x6c8] sm:$0xf0] }
 0x2b4   :  { %4667 = vmatmul.bf16.vlgmr.msra.gmra.mxu2 %v8562_v24  ;;  %4681 = vmatmul.bf16.vlgmr.msra.gmra.mxu3 %v8580_v57  ;;  %v6321_v24 = vor.u32 %v7676_v46, %v6318_v5  ;;  %v4277_v57 = vadd.f32 %v8932_v40, %v4263_v27  ;;  %v6249_v40 = vor.u32 %v7658_v32, %v6246_v49  ;;  %v7690_v5 = vld [vmem:[#allocation16 + $0x6c4] sm:$0xf]  ;;  %v7688_v32 = vld [vmem:[#allocation16 + $0x6b4] sm:$0xf] }
 0x2b5   :  { %4715 = vmatpush.bf16.msrb.mxu2 %v6273_v11  ;;  %4729 = vmatpush.bf16.msrb.mxu3 %v6337_v62  ;;  %v6390_v11 = vld [vmem:[#allocation16 + $0x6e8] sm:$0xf0]  ;;  %v7710_v62 = vld [vmem:[#allocation16 + $0x764] sm:$0xf]  ;;  %v6449_v46 = vor.u32 %v7708_v16, %v6446_v23  ;;  %v7704_v49 = vld [vmem:[#allocation16 + $0x734] sm:$0xf] }
 0x2b6   :  { %4757 = vmatpush.bf16.msra.mxu1 %v6465_v47  ;;  %v6393_v4 = vor.u32 %v7694_v48, %v6390_v11  ;;  %v6457_v8 = vor.u32 %v7710_v62, %v6454_v52  ;;  %v4291_v22 = vadd.f32 %v8940_v12, %v4277_v57  ;;  %4695 = vmatmul.bf16.vlgmr.msrb.gmra.mxu0 %v8582_v58  ;;  %v6230_v11 = vld [vmem:[#allocation16 + $0x5a8] sm:$0xf0]  ;;  %v7670_v62 = vld [vmem:[#allocation16 + $0x624] sm:$0xf]  ;;  %v6366_v57 = vld [vmem:[#allocation16 + $0x6b8] sm:$0xf0] }
 0x2b7   :  { %4743 = vmatpush.bf16.msra.mxu0 %v6401_v36  ;;  %4709 = vmatmul.bf16.vlgmr.msrb.gmra.mxu1 %v8598_v14  ;;  %v6438_v36 = vld [vmem:[#allocation16 + $0x748] sm:$0xf0]  ;;  %v4265_v47 = vadd.f32 %v8938_v59, %v4251_v18  ;;  %v7654_v14 = vld [vmem:[#allocation16 + $0x5a4] sm:$0xf]  ;;  %v8984_v50 = vpop.f32.mrf.mxu3  ;;  %v6286_v16 = vld [vmem:[#allocation16 + $0x618] sm:$0xf0]  ;;  %v6369_v18 = vor.u32 %v7688_v32, %v6366_v57 }
 0x2b8   :  { %v4305_v48 = vadd.f32 %v8944_v25, %v4291_v22  ;;  %v6294_v52 = vld [vmem:[#allocation16 + $0x628] sm:$0xf0]  ;;  %v6233_v25 = vor.u32 %v7654_v14, %v6230_v11  ;;  %v7684_v11 = vld [vmem:[#allocation16 + $0x694] sm:$0xf] }
 0x2b9   :  { %4716 = vmatpush.bf16.msrb.mxu2 %v6265_v42  ;;  %4730 = vmatpush.bf16.msrb.mxu3 %v6329_v45  ;;  %v6238_v42 = vld [vmem:[#allocation16 + $0x5b8] sm:$0xf0]  ;;  %v7672_v45 = vld [vmem:[#allocation16 + $0x634] sm:$0xf]  ;;  %v8974_v20 = vpop.f32.mrf.mxu0  ;;  %v8978_v27 = vpop.f32.mrf.mxu2  ;;  %v4279_v2 = vadd.f32 %v8948_v21, %v4265_v47  ;;  %v6297_v3 = vor.u32 %v7670_v62, %v6294_v52  ;;  %v6358_v22 = vld [vmem:[#allocation16 + $0x6a8] sm:$0xf0] }
 0x2ba   :  { %4758 = vmatpush.bf16.msra.mxu1 %v6457_v8  ;;  %v6241_v58 = vor.u32 %v7656_v6, %v6238_v42  ;;  %v6305_v12 = vor.u32 %v7672_v45, %v6302_v43  ;;  %v8981_v59 = vpop.f32.mrf.mxu1  ;;  %v4319_v8 = vadd.f32 %v8950_v13, %v4305_v48  ;;  %v6222_v21 = vld [vmem:[#allocation16 + $0x598] sm:$0xf0]  ;;  %v7702_v42 = vld [vmem:[#allocation16 + $0x724] sm:$0xf]  ;;  %v6422_v45 = vld [vmem:[#allocation16 + $0x728] sm:$0xf0]  ;;  %v6289_v43 = vor.u32 %v7668_v7, %v6286_v16 }
 0x2bb   :  { %4744 = vmatpush.bf16.msra.mxu0 %v6393_v4  ;;  %v7652_v4 = vld [vmem:[#allocation16 + $0x594] sm:$0xf]  ;;  %v4293_v23 = vadd.f32 %v8954_v17, %v4279_v2  ;;  %v6526_v47 = vld [vmem:[#allocation16 + $0x7f8] sm:$0xf0]  ;;  %v6425_v48 = vor.u32 %v7702_v42, %v6422_v45  ;;  %v7682_v16 = vld [vmem:[#allocation16 + $0x684] sm:$0xf] }
 0x2bc   :  { %v4333_v6 = vadd.f32 %v8962_v61, %v4319_v8  ;;  %v6225_v13 = vor.u32 %v7652_v4, %v6222_v21  ;;  %v7744_v61 = vld [vmem:[#allocation16 + $0x874] sm:$0xf]  ;;  %v6350_v52 = vld [vmem:[#allocation16 + $0x698] sm:$0xf0]  ;;  %v7742_v4 = vld [vmem:[#allocation16 + $0x864] sm:$0xf] }
 0x2bd   :  { %4717 = vmatpush.bf16.msrb.mxu2 %v6257_v30  ;;  %4731 = vmatpush.bf16.msrb.mxu3 %v6321_v24  ;;  %v6377_v30 = vor.u32 %v7690_v5, %v6374_v29  ;;  %v6441_v24 = vor.u32 %v7706_v10, %v6438_v36  ;;  %v7666_v5 = vld [vmem:[#allocation16 + $0x604] sm:$0xf]  ;;  %v6278_v10 = vld [vmem:[#allocation16 + $0x608] sm:$0xf0]  ;;  %v7728_v36 = vld [vmem:[#allocation16 + $0x7f4] sm:$0xf]  ;;  %v6353_v21 = vor.u32 %v7684_v11, %v6350_v52 }
 0x2be   :  { %4759 = vmatpush.bf16.msra.mxu1 %v6449_v46  ;;  %v6214_v46 = vld [vmem:[#allocation16 + $0x588] sm:$0xf0]  ;;  %v4347_v62 = vadd.f32 %v8968_v39, %v4333_v6  ;;  %v7700_v2 = vld [vmem:[#allocation16 + $0x714] sm:$0xf]  ;;  %v6281_v32 = vor.u32 %v7666_v5, %v6278_v10  ;;  %v6654_v42 = vld [vmem:[#allocation16 + $0x8f8] sm:$0xf0] }
 0x2bf   :  { %4745 = vmatpush.bf16.msra.mxu0 %v6385_v41  ;;  %v7650_v41 = vld [vmem:[#allocation16 + $0x584] sm:$0xf]  ;;  %v6582_v39 = vld [vmem:[#allocation16 + $0x868] sm:$0xf0]  ;;  %v7776_v45 = vld [vmem:[#allocation16 + $0x974] sm:$0xf] }
 0x2c0   :  { %v6406_v6 = vld [vmem:[#allocation16 + $0x708] sm:$0xf0]  ;;  %v7740_v5 = vld [vmem:[#allocation16 + $0x854] sm:$0xf]  ;;  %v6574_v10 = vld [vmem:[#allocation16 + $0x858] sm:$0xf0] }
 0x2c1   :  { %4718 = vmatpush.bf16.msrb.mxu2 %v6249_v40  ;;  %4732 = vmatpush.bf16.msrb.mxu3 %v6313_v19  ;;  %v6433_v40 = vor.u32 %v7704_v49, %v6430_v56  ;;  %v7686_v19 = vld [vmem:[#allocation16 + $0x6a4] sm:$0xf]  ;;  %v8988_v29 = vpop.f32.mrf.mxu0  ;;  %v8990_v17 = vpop.f32.mrf.mxu2  ;;  %v6646_v11 = vld [vmem:[#allocation16 + $0x8e8] sm:$0xf0] }
 0x2c2   :  { %4760 = vmatpush.bf16.msra.mxu1 %v6441_v24  ;;  %v6361_v14 = vor.u32 %v7686_v19, %v6358_v22  ;;  %v6217_v24 = vor.u32 %v7650_v41, %v6214_v46  ;;  %v8994_v57 = vpop.f32.mrf.mxu1  ;;  %v8996_v49 = vpop.f32.mrf.mxu3  ;;  %v7698_v19 = vld [vmem:[#allocation16 + $0x704] sm:$0xf]  ;;  %v6585_v41 = vor.u32 %v7742_v4, %v6582_v39  ;;  %v7724_v46 = vld [vmem:[#allocation16 + $0x7d4] sm:$0xf]  ;;  %v6710_v52 = vld [vmem:[#allocation16 + $0x968] sm:$0xf0] }
 0x2c3   :  { %4746 = vmatpush.bf16.msra.mxu0 %v6377_v30  ;;  %v6414_v30 = vld [vmem:[#allocation16 + $0x718] sm:$0xf0] }
 0x2c4   :  { %v6417_v7 = vor.u32 %v7700_v2, %v6414_v30  ;;  %v6638_v4 = vld [vmem:[#allocation16 + $0x8d8] sm:$0xf0] }
 0x2c5   :  { %4719 = vmatpush.bf16.msrb.mxu2 %v6241_v58  ;;  %4733 = vmatpush.bf16.msrb.mxu3 %v6305_v12  ;;  %v4307_v58 = vadd.f32 %v8960_v9, %v4293_v23  ;;  %v6590_v12 = vld [vmem:[#allocation16 + $0x878] sm:$0xf0]  ;;  %v6529_v9 = vor.u32 %v7728_v36, %v6526_v47  ;;  %v6342_v23 = vld [vmem:[#allocation16 + $0x688] sm:$0xf0]  ;;  %v6409_v47 = vor.u32 %v7698_v19, %v6406_v6 }
 0x2c6   :  { %4761 = vmatpush.bf16.msra.mxu1 %v6433_v40  ;;  %v6593_v56 = vor.u32 %v7744_v61, %v6590_v12  ;;  %v7760_v40 = vld [vmem:[#allocation16 + $0x8f4] sm:$0xf]  ;;  %v6345_v36 = vor.u32 %v7682_v16, %v6342_v23  ;;  %v6702_v39 = vld [vmem:[#allocation16 + $0x958] sm:$0xf0] }
 0x2c7   :  { %4747 = vmatpush.bf16.msra.mxu0 %v6369_v18  ;;  %v4321_v8 = vadd.f32 %v8966_v51, %v4307_v58  ;;  %v4361_v18 = vadd.f32 %v8974_v20, %v4347_v62  ;;  %v6510_v20 = vld [vmem:[#allocation16 + $0x7d8] sm:$0xf0]  ;;  %v6657_v61 = vor.u32 %v7760_v40, %v6654_v42  ;;  %v7774_v62 = vld [vmem:[#allocation16 + $0x964] sm:$0xf]  ;;  %v7720_v23 = vld [vmem:[#allocation16 + $0x7b4] sm:$0xf] }
 0x2c8   :  { %v7736_v40 = vld [vmem:[#allocation16 + $0x834] sm:$0xf]  ;;  %v6558_v19 = vld [vmem:[#allocation16 + $0x838] sm:$0xf0] }
 0x2c9   :  { %4720 = vmatpush.bf16.msrb.mxu2 %v6233_v25  ;;  %4734 = vmatpush.bf16.msrb.mxu3 %v6297_v3  ;;  %v7726_v25 = vld [vmem:[#allocation16 + $0x7e4] sm:$0xf]  ;;  %v6518_v3 = vld [vmem:[#allocation16 + $0x7e8] sm:$0xf0]  ;;  %v4335_v22 = vadd.f32 %v8978_v27, %v4321_v8  ;;  %v9001_v51 = vpop.f32.mrf.mxu0  ;;  %v4375_v27 = vadd.f32 %v8981_v59, %v4361_v18  ;;  %v4390_v58 = vpop.f32.mrf.mxu2  ;;  %v6513_v59 = vor.u32 %v7724_v46, %v6510_v20  ;;  %v7772_v8 = vld [vmem:[#allocation16 + $0x954] sm:$0xf] }
 0x2ca   :  { %4762 = vmatpush.bf16.msra.mxu1 %v6425_v48  ;;  %v9008_v30 = vpop.f32.mrf.mxu1  ;;  %v6494_v18 = vld [vmem:[#allocation16 + $0x7b8] sm:$0xf0]  ;;  %v6705_v42 = vor.u32 %v7772_v8, %v6702_v39  ;;  %v7718_v20 = vld [vmem:[#allocation16 + $0x7a4] sm:$0xf]  ;;  %v6678_v8 = vld [vmem:[#allocation16 + $0x928] sm:$0xf0] }
 0x2cb   :  { %4748 = vmatpush.bf16.msra.mxu0 %v6361_v14  ;;  %v7758_v14 = vld [vmem:[#allocation16 + $0x8e4] sm:$0xf]  ;;  %v4349_v48 = vadd.f32 %v8984_v50, %v4335_v22  ;;  %v4389_v2 = vadd.f32 %v8990_v17, %v4375_v27 }
 0x2cc   :  { %v6649_v50 = vor.u32 %v7758_v14, %v6646_v11  ;;  %v7752_v14 = vld [vmem:[#allocation16 + $0x8b4] sm:$0xf] }
 0x2cd   :  { %4721 = vmatpush.bf16.msrb.mxu2 %v6225_v13  ;;  %4735 = vmatpush.bf16.msrb.mxu3 %v6289_v43  ;;  %v6718_v13 = vld [vmem:[#allocation16 + $0x978] sm:$0xf0]  ;;  %v6521_v43 = vor.u32 %v7726_v25, %v6518_v3  ;;  %v6713_v25 = vor.u32 %v7774_v62, %v6710_v52  ;;  %v7756_v3 = vld [vmem:[#allocation16 + $0x8d4] sm:$0xf]  ;;  %v4363_v17 = vadd.f32 %v8988_v29, %v4349_v48 }
 0x2ce   :  { %4763 = vmatpush.bf16.msra.mxu1 %v6417_v7  ;;  %v6721_v12 = vor.u32 %v7776_v45, %v6718_v13  ;;  %v6641_v29 = vor.u32 %v7756_v3, %v6638_v4  ;;  %v7754_v45 = vld [vmem:[#allocation16 + $0x8c4] sm:$0xf]  ;;  %v6630_v13 = vld [vmem:[#allocation16 + $0x8c8] sm:$0xf0]  ;;  %v6622_v48 = vld [vmem:[#allocation16 + $0x8b8] sm:$0xf0] }
 0x2cf   :  { %4749 = vmatpush.bf16.msra.mxu0 %v6353_v21  ;;  %v4403_v21 = vadd.f32 %v8996_v49, %v4389_v2  ;;  %v4377_v49 = vadd.f32 %v8994_v57, %v4363_v17  ;;  %v7768_v11 = vld [vmem:[#allocation16 + $0x934] sm:$0xf]  ;;  %v6686_v62 = vld [vmem:[#allocation16 + $0x938] sm:$0xf0]  ;;  %v7750_v3 = vld [vmem:[#allocation16 + $0x8a4] sm:$0xf] }
 0x2d0   :  { %v6614_v17 = vld [vmem:[#allocation16 + $0x8a8] sm:$0xf0]  ;;  %v7766_v4 = vld [vmem:[#allocation16 + $0x924] sm:$0xf] }
 0x2d1   :  { %4722 = vmatpush.bf16.msrb.mxu2 %v6217_v24  ;;  %4736 = vmatpush.bf16.msrb.mxu3 %v6281_v32  ;;  %v6577_v24 = vor.u32 %v7740_v5, %v6574_v10  ;;  %v7722_v32 = vld [vmem:[#allocation16 + $0x7c4] sm:$0xf]  ;;  %v4418_v6 = vpop.f32.mrf.mxu0  ;;  %v4444_v22 = vpop.f32.mrf.mxu2  ;;  %v4417_v46 = vadd.f32 %v9001_v51, %v4403_v21  ;;  %v4391_v5 = vadd.f32 %v4390_v58, %v4377_v49  ;;  %v6486_v10 = vld [vmem:[#allocation16 + $0x7a8] sm:$0xf0]  ;;  %v7716_v58 = vld [vmem:[#allocation16 + $0x794] sm:$0xf] }
 0x2d2   :  { %4764 = vmatpush.bf16.msra.mxu1 %v6409_v47  ;;  %v6550_v47 = vld [vmem:[#allocation16 + $0x828] sm:$0xf0]  ;;  %v4432_v27 = vpop.f32.mrf.mxu1  ;;  %v6489_v52 = vor.u32 %v7718_v20, %v6486_v10  ;;  %v6617_v49 = vor.u32 %v7750_v3, %v6614_v17  ;;  %v6766_v17 = vld [vmem:[#allocation16 + $0x9d8] sm:$0xf0] }
 0x2d3   :  { %4750 = vmatpush.bf16.msra.mxu0 %v6345_v36  ;;  %v7734_v36 = vld [vmem:[#allocation16 + $0x824] sm:$0xf]  ;;  %v4431_v51 = vadd.f32 %v9008_v30, %v4417_v46  ;;  %v7764_v46 = vld [vmem:[#allocation16 + $0x914] sm:$0xf] }
 0x2d4   :  { %4723 = vmatmul.bf16.vlgmr.msrb.gmra.mxu2 %v8600_v15  ;;  %4737 = vmatmul.bf16.vlgmr.msrb.gmra.mxu3 %v8616_v53  ;;  %v6502_v15 = vld [vmem:[#allocation16 + $0x7c8] sm:$0xf0]  ;;  %v7738_v53 = vld [vmem:[#allocation16 + $0x844] sm:$0xf]  ;;  %v6553_v2 = vor.u32 %v7734_v36, %v6550_v47 }
 0x2d5   :  { %4771 = vmatpush.bf16.msra.mxu2 %v6529_v9  ;;  %4785 = vmatpush.bf16.msra.mxu3 %v6593_v56  ;;  %v6566_v9 = vld [vmem:[#allocation16 + $0x848] sm:$0xf0]  ;;  %v4404_v56 = vpop.f32.mrf.mxu3  ;;  %v6505_v7 = vor.u32 %v7722_v32, %v6502_v15  ;;  %v7732_v32 = vld [vmem:[#allocation16 + $0x814] sm:$0xf]  ;;  %v6542_v15 = vld [vmem:[#allocation16 + $0x818] sm:$0xf0] }
 0x2d6   :  { %4813 = vmatpush.bf16.msrb.mxu1 %v6721_v12  ;;  %v6569_v16 = vor.u32 %v7738_v53, %v6566_v9  ;;  %4751 = vmatmul.bf16.vlgmr.msra.gmra.mxu0 %v8618_v54  ;;  %v6497_v54 = vor.u32 %v7720_v23, %v6494_v18  ;;  %v6633_v12 = vor.u32 %v7754_v45, %v6630_v13  ;;  %v6534_v18 = vld [vmem:[#allocation16 + $0x808] sm:$0xf0]  ;;  %v6846_v45 = vld [vmem:[#allocation16 + $0xa78] sm:$0xf0]  ;;  %v7790_v47 = vld [vmem:[#allocation16 + $0x9e4] sm:$0xf] }
 0x2d7   :  { %4799 = vmatpush.bf16.msrb.mxu0 %v6657_v61  ;;  %4765 = vmatmul.bf16.vlgmr.msra.gmra.mxu1 %v8634_v26  ;;  %v6561_v26 = vor.u32 %v7736_v40, %v6558_v19  ;;  %v4445_v53 = vadd.f32 %v4444_v22, %v4431_v51  ;;  %v6545_v21 = vor.u32 %v7732_v32, %v6542_v15  ;;  %v7792_v40 = vld [vmem:[#allocation16 + $0x9f4] sm:$0xf]  ;;  %v6782_v19 = vld [vmem:[#allocation16 + $0x9f8] sm:$0xf0]  ;;  %v6598_v51 = vld [vmem:[#allocation16 + $0x888] sm:$0xf0] }
 0x2d8   :  { %v6681_v13 = vor.u32 %v7766_v4, %v6678_v8  ;;  %v6785_v10 = vor.u32 %v7792_v40, %v6782_v19  ;;  %v7840_v15 = vld [vmem:[#allocation16 + $0xb74] sm:$0xf]  ;;  %v6830_v8 = vld [vmem:[#allocation16 + $0xa58] sm:$0xf0]  ;;  %v6902_v40 = vld [vmem:[#allocation16 + $0xae8] sm:$0xf0] }
 0x2d9   :  { %4772 = vmatpush.bf16.msra.mxu2 %v6521_v43  ;;  %4786 = vmatpush.bf16.msra.mxu3 %v6585_v41  ;;  %v7770_v43 = vld [vmem:[#allocation16 + $0x944] sm:$0xf]  ;;  %v6694_v41 = vld [vmem:[#allocation16 + $0x948] sm:$0xf0]  ;;  %v4472_v9 = vpop.f32.mrf.mxu0  ;;  %v4446_v30 = vpop.f32.mrf.mxu2  ;;  %v7804_v4 = vld [vmem:[#allocation16 + $0xa54] sm:$0xf] }
 0x2da   :  { %4814 = vmatpush.bf16.msrb.mxu1 %v6713_v25  ;;  %v6697_v57 = vor.u32 %v7770_v43, %v6694_v41  ;;  %v6689_v25 = vor.u32 %v7768_v11, %v6686_v62  ;;  %v7748_v43 = vld [vmem:[#allocation16 + $0x894] sm:$0xf]  ;;  %v6606_v41 = vld [vmem:[#allocation16 + $0x898] sm:$0xf0]  ;;  %v7746_v62 = vld [vmem:[#allocation16 + $0x884] sm:$0xf] }
 0x2db   :  { %4800 = vmatpush.bf16.msrb.mxu0 %v6649_v50  ;;  %v6625_v50 = vor.u32 %v7752_v14, %v6622_v48  ;;  %v6838_v14 = vld [vmem:[#allocation16 + $0xa68] sm:$0xf0]  ;;  %v6609_v48 = vor.u32 %v7748_v43, %v6606_v41  ;;  %v7838_v19 = vld [vmem:[#allocation16 + $0xb64] sm:$0xf] }
 0x2dc   :  { %v6822_v43 = vld [vmem:[#allocation16 + $0xa48] sm:$0xf0] }
 0x2dd   :  { %4773 = vmatpush.bf16.msra.mxu2 %v6513_v59  ;;  %4787 = vmatpush.bf16.msra.mxu3 %v6577_v24  ;;  %v4458_v61 = vpop.f32.mrf.mxu3  ;;  %v4405_v59 = vadd.f32 %v4404_v56, %v4391_v5  ;;  %v6478_v24 = vld [vmem:[#allocation16 + $0x798] sm:$0xf0]  ;;  %v6470_v56 = vld [vmem:[#allocation16 + $0x788] sm:$0xf0] }
 0x2de   :  { %4815 = vmatpush.bf16.msrb.mxu1 %v6705_v42  ;;  %v6481_v39 = vor.u32 %v7716_v58, %v6478_v24  ;;  %v4459_v22 = vadd.f32 %v4458_v61, %v4445_v53  ;;  %v7808_v42 = vld [vmem:[#allocation16 + $0xa74] sm:$0xf]  ;;  %v6774_v61 = vld [vmem:[#allocation16 + $0x9e8] sm:$0xf0]  ;;  %v7762_v58 = vld [vmem:[#allocation16 + $0x904] sm:$0xf] }
 0x2df   :  { %4801 = vmatpush.bf16.msrb.mxu0 %v6641_v29  ;;  %v4419_v23 = vadd.f32 %v4418_v6, %v4405_v59  ;;  %v4486_v29 = vpop.f32.mrf.mxu1  ;;  %v6849_v36 = vor.u32 %v7808_v42, %v6846_v45  ;;  %v6662_v59 = vld [vmem:[#allocation16 + $0x908] sm:$0xf0]  ;;  %v6974_v53 = vld [vmem:[#allocation16 + $0xb78] sm:$0xf0]  ;;  %v6833_v45 = vor.u32 %v7804_v4, %v6830_v8  ;;  %v7816_v4 = vld [vmem:[#allocation16 + $0xab4] sm:$0xf] }
 0x2e1   :  { %4774 = vmatpush.bf16.msra.mxu2 %v6505_v7  ;;  %4788 = vmatpush.bf16.msra.mxu3 %v6569_v16  ;;  %v7714_v7 = vld [vmem:[#allocation16 + $0x784] sm:$0xf]  ;;  %v4433_v5 = vadd.f32 %v4432_v27, %v4419_v23  ;;  %v4474_v24 = vpop.f32.mrf.mxu0  ;;  %v4500_v32 = vpop.f32.mrf.mxu2  ;;  %v6910_v27 = vld [vmem:[#allocation16 + $0xaf8] sm:$0xf0] }
 0x2e2   :  { %4816 = vmatpush.bf16.msrb.mxu1 %v6697_v57  ;;  %v7730_v16 = vld [vmem:[#allocation16 + $0x804] sm:$0xf]  ;;  %v6473_v20 = vor.u32 %v7714_v7, %v6470_v56  ;;  %v4473_v57 = vadd.f32 %v4472_v9, %v4459_v22  ;;  %v6777_v9 = vor.u32 %v7790_v47, %v6774_v61  ;;  %v6977_v56 = vor.u32 %v7840_v15, %v6974_v53  ;;  %v6966_v22 = vld [vmem:[#allocation16 + $0xb68] sm:$0xf0]  ;;  %v7784_v61 = vld [vmem:[#allocation16 + $0x9b4] sm:$0xf] }
 0x2e3   :  { %4802 = vmatpush.bf16.msrb.mxu0 %v6633_v12  ;;  %v6537_v6 = vor.u32 %v7730_v16, %v6534_v18  ;;  %v7806_v12 = vld [vmem:[#allocation16 + $0xa64] sm:$0xf] }
 0x2e4   :  { %v4487_v3 = vadd.f32 %v4486_v29, %v4473_v57  ;;  %v7822_v16 = vld [vmem:[#allocation16 + $0xae4] sm:$0xf] }
 0x2e5   :  { %4775 = vmatpush.bf16.msra.mxu2 %v6497_v54  ;;  %4789 = vmatpush.bf16.msra.mxu3 %v6561_v26  ;;  %v6670_v54 = vld [vmem:[#allocation16 + $0x918] sm:$0xf0]  ;;  %v4460_v26 = vpop.f32.mrf.mxu3  ;;  %v6905_v41 = vor.u32 %v7822_v16, %v6902_v40  ;;  %v7782_v53 = vld [vmem:[#allocation16 + $0x9a4] sm:$0xf] }
 0x2e6   :  { %4817 = vmatpush.bf16.msrb.mxu1 %v6689_v25  ;;  %v6673_v11 = vor.u32 %v7764_v46, %v6670_v54  ;;  %v7788_v25 = vld [vmem:[#allocation16 + $0x9d4] sm:$0xf]  ;;  %v4501_v29 = vadd.f32 %v4500_v32, %v4487_v3  ;;  %v6969_v46 = vor.u32 %v7838_v19, %v6966_v22  ;;  %v6950_v32 = vld [vmem:[#allocation16 + $0xb48] sm:$0xf0]  ;;  %v6734_v19 = vld [vmem:[#allocation16 + $0x998] sm:$0xf0] }
 0x2e7   :  { %4803 = vmatpush.bf16.msrb.mxu0 %v6625_v50  ;;  %v6841_v50 = vor.u32 %v7806_v12, %v6838_v14  ;;  %v4488_v23 = vpop.f32.mrf.mxu1  ;;  %v6769_v42 = vor.u32 %v7788_v25, %v6766_v17  ;;  %v7820_v54 = vld [vmem:[#allocation16 + $0xad4] sm:$0xf]  ;;  %v6750_v12 = vld [vmem:[#allocation16 + $0x9b8] sm:$0xf0]  ;;  %v6806_v25 = vld [vmem:[#allocation16 + $0xa28] sm:$0xf0] }
 0x2e8   :  { %v7800_v14 = vld [vmem:[#allocation16 + $0xa34] sm:$0xf] }
 0x2e9   :  { %4776 = vmatpush.bf16.msra.mxu2 %v6489_v52  ;;  %4790 = vmatpush.bf16.msra.mxu3 %v6553_v2  ;;  %v4447_v52 = vadd.f32 %v4446_v30, %v4433_v5  ;;  %v7824_v2 = vld [vmem:[#allocation16 + $0xaf4] sm:$0xf]  ;;  %v6601_v30 = vor.u32 %v7746_v62, %v6598_v51  ;;  %v6958_v5 = vld [vmem:[#allocation16 + $0xb58] sm:$0xf0]  ;;  %v4502_v57 = vpop.f32.mrf.mxu2 }
 0x2ea   :  { %4818 = vmatpush.bf16.msrb.mxu1 %v6681_v13  ;;  %v6913_v7 = vor.u32 %v7824_v2, %v6910_v27  ;;  %v6758_v13 = vld [vmem:[#allocation16 + $0x9c8] sm:$0xf0]  ;;  %v7796_v22 = vld [vmem:[#allocation16 + $0xa14] sm:$0xf] }
 0x2eb   :  { %4804 = vmatpush.bf16.msrb.mxu0 %v6617_v49  ;;  %v7786_v49 = vld [vmem:[#allocation16 + $0x9c4] sm:$0xf] }
 0x2ed   :  { %4777 = vmatpush.bf16.msra.mxu2 %v6481_v39  ;;  %4791 = vmatpush.bf16.msra.mxu3 %v6545_v21  ;;  %v6665_v39 = vor.u32 %v7762_v58, %v6662_v59  ;;  %v4461_v21 = vadd.f32 %v4460_v26, %v4447_v52  ;;  %v4514_v18 = vpop.f32.mrf.mxu3  ;;  %v4528_v26 = vpop.f32.mrf.mxu0  ;;  %v7818_v52 = vld [vmem:[#allocation16 + $0xac4] sm:$0xf]  ;;  %v6753_v58 = vor.u32 %v7784_v61, %v6750_v12  ;;  %v6886_v59 = vld [vmem:[#allocation16 + $0xac8] sm:$0xf0]  ;;  %v7872_v61 = vld [vmem:[#allocation16 + $0xc74] sm:$0xf] }
 0x2ee   :  { %4819 = vmatpush.bf16.msrb.mxu1 %v6673_v11  ;;  %v6889_v3 = vor.u32 %v7818_v52, %v6886_v59  ;;  %v7102_v12 = vld [vmem:[#allocation16 + $0xc78] sm:$0xf0]  ;;  %v7854_v59 = vld [vmem:[#allocation16 + $0xbe4] sm:$0xf] }
 0x2ef   :  { %4805 = vmatpush.bf16.msrb.mxu0 %v6609_v48  ;;  %v6814_v48 = vld [vmem:[#allocation16 + $0xa38] sm:$0xf0]  ;;  %v4542_v2 = vpop.f32.mrf.mxu1 }
 0x2f1   :  { %4778 = vmatpush.bf16.msra.mxu2 %v6473_v20  ;;  %4792 = vmatpush.bf16.msra.mxu3 %v6537_v6  ;;  %v6894_v20 = vld [vmem:[#allocation16 + $0xad8] sm:$0xf0]  ;;  %v7836_v6 = vld [vmem:[#allocation16 + $0xb54] sm:$0xf] }
 0x2f2   :  { %4820 = vmatpush.bf16.msrb.mxu1 %v6665_v39  ;;  %v6897_v62 = vor.u32 %v7820_v54, %v6894_v20  ;;  %v6961_v51 = vor.u32 %v7836_v6, %v6958_v5  ;;  %v7832_v39 = vld [vmem:[#allocation16 + $0xb34] sm:$0xf]  ;;  %v6726_v20 = vld [vmem:[#allocation16 + $0x988] sm:$0xf0]  ;;  %v7794_v6 = vld [vmem:[#allocation16 + $0xa04] sm:$0xf] }
 0x2f3   :  { %4806 = vmatpush.bf16.msrb.mxu0 %v6601_v30  ;;  %v6878_v30 = vld [vmem:[#allocation16 + $0xab8] sm:$0xf0] }
 0x2f4   :  { %4779 = vmatmul.bf16.vlgmr.msra.gmra.mxu2 %v8636_v31  ;;  %4793 = vmatmul.bf16.vlgmr.msra.gmra.mxu3 %v8702_v37  ;;  %v7802_v31 = vld [vmem:[#allocation16 + $0xa44] sm:$0xf]  ;;  %v4475_v37 = vadd.f32 %v4474_v24, %v4461_v21  ;;  %v6942_v21 = vld [vmem:[#allocation16 + $0xb38] sm:$0xf0] }
 0x2f5   :  { %4827 = vmatpush.bf16.msrb.mxu2 %v6785_v10  ;;  %4841 = vmatpush.bf16.msrb.mxu3 %v6849_v36  ;;  %v4515_v10 = vadd.f32 %v4514_v18, %v4501_v29  ;;  %v6761_v36 = vor.u32 %v7786_v49, %v6758_v13  ;;  %v6825_v47 = vor.u32 %v7802_v31, %v6822_v43  ;;  %v7834_v24 = vld [vmem:[#allocation16 + $0xb44] sm:$0xf]  ;;  %v4530_v18 = vpop.f32.mrf.mxu0  ;;  %v6798_v29 = vld [vmem:[#allocation16 + $0xa18] sm:$0xf0]  ;;  %v6870_v31 = vld [vmem:[#allocation16 + $0xaa8] sm:$0xf0] }
 0x2f6   :  { %4869 = vmatpush.bf16.msra.mxu1 %v6977_v56  ;;  %4807 = vmatmul.bf16.vlgmr.msrb.gmra.mxu0 %v8704_v38  ;;  %v4489_v11 = vadd.f32 %v4488_v23, %v4475_v37  ;;  %v6817_v38 = vor.u32 %v7800_v14, %v6814_v48  ;;  %v6953_v17 = vor.u32 %v7834_v24, %v6950_v32  ;;  %v7780_v23 = vld [vmem:[#allocation16 + $0x994] sm:$0xf]  ;;  %v7814_v13 = vld [vmem:[#allocation16 + $0xaa4] sm:$0xf]  ;;  %v6934_v37 = vld [vmem:[#allocation16 + $0xb28] sm:$0xf0] }
 0x2f7   :  { %4855 = vmatpush.bf16.msra.mxu0 %v6913_v7  ;;  %4821 = vmatmul.bf16.vlgmr.msrb.gmra.mxu1 %v8752_v33  ;;  %v4529_v27 = vadd.f32 %v4528_v26, %v4515_v10  ;;  %v6742_v33 = vld [vmem:[#allocation16 + $0x9a8] sm:$0xf0]  ;;  %v4556_v40 = vpop.f32.mrf.mxu2  ;;  %v6945_v49 = vor.u32 %v7832_v39, %v6942_v21  ;;  %v7830_v43 = vld [vmem:[#allocation16 + $0xb24] sm:$0xf]  ;;  %v6801_v54 = vor.u32 %v7796_v22, %v6798_v29  ;;  %v4544_v5 = vpop.f32.mrf.mxu1  ;;  %v7812_v48 = vld [vmem:[#allocation16 + $0xa94] sm:$0xf] }
 0x2f8   :  { %v4503_v15 = vadd.f32 %v4502_v57, %v4489_v11  ;;  %v6745_v8 = vor.u32 %v7782_v53, %v6742_v33  ;;  %v7778_v26 = vld [vmem:[#allocation16 + $0x984] sm:$0xf]  ;;  %v6790_v10 = vld [vmem:[#allocation16 + $0xa08] sm:$0xf0]  ;;  %v6873_v57 = vor.u32 %v7814_v13, %v6870_v31  ;;  %v6937_v14 = vor.u32 %v7830_v43, %v6934_v37  ;;  %v6862_v11 = vld [vmem:[#allocation16 + $0xa98] sm:$0xf0] }
 0x2f9   :  { %4828 = vmatpush.bf16.msrb.mxu2 %v6777_v9  ;;  %4842 = vmatpush.bf16.msrb.mxu3 %v6841_v50  ;;  %v4516_v9 = vpop.f32.mrf.mxu3  ;;  %v7798_v50 = vld [vmem:[#allocation16 + $0xa24] sm:$0xf]  ;;  %v4543_v7 = vadd.f32 %v4542_v2, %v4529_v27  ;;  %v6729_v2 = vor.u32 %v7778_v26, %v6726_v20  ;;  %v7105_v27 = vor.u32 %v7872_v61, %v7102_v12  ;;  %v7094_v53 = vld [vmem:[#allocation16 + $0xc68] sm:$0xf0]  ;;  %v7904_v39 = vld [vmem:[#allocation16 + $0xd74] sm:$0xf] }
 0x2fa   :  { %4870 = vmatpush.bf16.msra.mxu1 %v6969_v46  ;;  %v4517_v56 = vadd.f32 %v4516_v9, %v4503_v15  ;;  %v6809_v16 = vor.u32 %v7798_v50, %v6806_v25  ;;  %v6737_v46 = vor.u32 %v7780_v23, %v6734_v19  ;;  %v7030_v15 = vld [vmem:[#allocation16 + $0xbe8] sm:$0xf0]  ;;  %v6865_v9 = vor.u32 %v7812_v48, %v6862_v11  ;;  %v7810_v25 = vld [vmem:[#allocation16 + $0xa84] sm:$0xf]  ;;  %v7230_v21 = vld [vmem:[#allocation16 + $0xd78] sm:$0xf0] }
 0x2fb   :  { %4856 = vmatpush.bf16.msra.mxu0 %v6905_v41  ;;  %v7022_v23 = vld [vmem:[#allocation16 + $0xbd8] sm:$0xf0]  ;;  %v7158_v13 = vld [vmem:[#allocation16 + $0xce8] sm:$0xf0]  ;;  %v7902_v31 = vld [vmem:[#allocation16 + $0xd64] sm:$0xf] }
 0x2fc   :  { %v4531_v41 = vadd.f32 %v4530_v18, %v4517_v56  ;;  %v7868_v18 = vld [vmem:[#allocation16 + $0xc54] sm:$0xf]  ;;  %v7222_v43 = vld [vmem:[#allocation16 + $0xd68] sm:$0xf0]  ;;  %v7866_v26 = vld [vmem:[#allocation16 + $0xc44] sm:$0xf] }
 0x2fd   :  { %4829 = vmatpush.bf16.msrb.mxu2 %v6769_v42  ;;  %4843 = vmatpush.bf16.msrb.mxu3 %v6833_v45  ;;  %v9021_v42 = vadd.f32 %v4556_v40, %v4543_v7  ;;  %v6881_v45 = vor.u32 %v7816_v4, %v6878_v30  ;;  %v7166_v4 = vld [vmem:[#allocation16 + $0xcf8] sm:$0xf0]  ;;  %v6918_v30 = vld [vmem:[#allocation16 + $0xb08] sm:$0xf0]  ;;  %v7033_v7 = vor.u32 %v7854_v59, %v7030_v15  ;;  %v7848_v12 = vld [vmem:[#allocation16 + $0xbb4] sm:$0xf] }
 0x2fe   :  { %4871 = vmatpush.bf16.msra.mxu1 %v6961_v51  ;;  %v6926_v51 = vld [vmem:[#allocation16 + $0xb18] sm:$0xf0]  ;;  %v4545_v52 = vadd.f32 %v4544_v5, %v4531_v41  ;;  %v7078_v20 = vld [vmem:[#allocation16 + $0xc48] sm:$0xf0] }
 0x2ff   :  { %4857 = vmatpush.bf16.msra.mxu0 %v6897_v62  ;;  %4967 = vst [vmem:[%s9076_s17] sm:$0xff] %v9021_v42  ;;  %v7828_v62 = vld [vmem:[#allocation16 + $0xb14] sm:$0xf]  ;;  %v4558_v24 = vpop.f32.mrf.mxu2  ;;  %v7086_v40 = vld [vmem:[#allocation16 + $0xc58] sm:$0xf0]  ;;  %v7081_v61 = vor.u32 %v7866_v26, %v7078_v20  ;;  %v7062_v15 = vld [vmem:[#allocation16 + $0xc28] sm:$0xf0] }
 0x300   :  { %v9027_v33 = vadd.f32 %v4558_v24, %v4545_v52  ;;  %v6929_v50 = vor.u32 %v7828_v62, %v6926_v51  ;;  %v7089_v41 = vor.u32 %v7868_v18, %v7086_v40  ;;  %v7150_v5 = vld [vmem:[#allocation16 + $0xcd8] sm:$0xf0]  ;;  %v7882_v51 = vld [vmem:[#allocation16 + $0xcc4] sm:$0xf]  ;;  %v7142_v52 = vld [vmem:[#allocation16 + $0xcc8] sm:$0xf0] }
 0x301   :  { %4830 = vmatpush.bf16.msrb.mxu2 %v6761_v36  ;;  %4844 = vmatpush.bf16.msrb.mxu3 %v6825_v47  ;;  %v7856_v36 = vld [vmem:[#allocation16 + $0xbf4] sm:$0xf]  ;;  %v7038_v47 = vld [vmem:[#allocation16 + $0xbf8] sm:$0xf0]  ;;  %v7190_v18 = vld [vmem:[#allocation16 + $0xd28] sm:$0xf0] }
 0x302   :  { %4872 = vmatpush.bf16.msra.mxu1 %v6953_v17  ;;  %v7041_v32 = vor.u32 %v7856_v36, %v7038_v47  ;;  %v7888_v17 = vld [vmem:[#allocation16 + $0xcf4] sm:$0xf]  ;;  %4969 = vst [vmem:[%s9076_s17 + $0x10] sm:$0xff] %v9027_v33  ;;  %v7214_v36 = vld [vmem:[#allocation16 + $0xd58] sm:$0xf0] }
 0x303   :  { %4858 = vmatpush.bf16.msra.mxu0 %v6889_v3  ;;  %v6854_v3 = vld [vmem:[#allocation16 + $0xa88] sm:$0xf0]  ;;  %v7169_v29 = vor.u32 %v7888_v17, %v7166_v4  ;;  %v7070_v48 = vld [vmem:[#allocation16 + $0xc38] sm:$0xf0]  ;;  %v7844_v4 = vld [vmem:[#allocation16 + $0xb94] sm:$0xf] }
 0x304   :  { %v6857_v19 = vor.u32 %v7810_v25, %v6854_v3  ;;  %v7198_v25 = vld [vmem:[#allocation16 + $0xd38] sm:$0xf0]  ;;  %v7892_v20 = vld [vmem:[#allocation16 + $0xd14] sm:$0xf] }
 0x305   :  { %4831 = vmatpush.bf16.msrb.mxu2 %v6753_v58  ;;  %4845 = vmatpush.bf16.msrb.mxu3 %v6817_v38  ;;  %v6793_v58 = vor.u32 %v7794_v6, %v6790_v10  ;;  %v7870_v38 = vld [vmem:[#allocation16 + $0xc64] sm:$0xf]  ;;  %v7884_v6 = vld [vmem:[#allocation16 + $0xcd4] sm:$0xf]  ;;  %v7118_v26 = vld [vmem:[#allocation16 + $0xc98] sm:$0xf0] }
 0x306   :  { %4873 = vmatpush.bf16.msra.mxu1 %v6945_v49  ;;  %v7097_v56 = vor.u32 %v7870_v38, %v7094_v53  ;;  %v7886_v49 = vld [vmem:[#allocation16 + $0xce4] sm:$0xf]  ;;  %v7900_v10 = vld [vmem:[#allocation16 + $0xd54] sm:$0xf]  ;;  %v7153_v11 = vor.u32 %v7884_v6, %v7150_v5 }
 0x307   :  { %4859 = vmatpush.bf16.msra.mxu0 %v6881_v45  ;;  %v7233_v45 = vor.u32 %v7904_v39, %v7230_v21  ;;  %v7217_v62 = vor.u32 %v7900_v10, %v7214_v36  ;;  %v7880_v53 = vld [vmem:[#allocation16 + $0xcb4] sm:$0xf]  ;;  %v7054_v39 = vld [vmem:[#allocation16 + $0xc18] sm:$0xf0]  ;;  %v7918_v36 = vld [vmem:[#allocation16 + $0xde4] sm:$0xf] }
 0x309   :  { %4832 = vmatpush.bf16.msrb.mxu2 %v6745_v8  ;;  %4846 = vmatpush.bf16.msrb.mxu3 %v6809_v16  ;;  %v7826_v8 = vld [vmem:[#allocation16 + $0xb04] sm:$0xf]  ;;  %v7852_v16 = vld [vmem:[#allocation16 + $0xbd4] sm:$0xf] }
 0x30a   :  { %4874 = vmatpush.bf16.msra.mxu1 %v6937_v14  ;;  %v6921_v22 = vor.u32 %v7826_v8, %v6918_v30  ;;  %v7025_v37 = vor.u32 %v7852_v16, %v7022_v23  ;;  %v7864_v14 = vld [vmem:[#allocation16 + $0xc34] sm:$0xf]  ;;  %v6990_v8 = vld [vmem:[#allocation16 + $0xb98] sm:$0xf0]  ;;  %v7126_v16 = vld [vmem:[#allocation16 + $0xca8] sm:$0xf0] }
 0x30b   :  { %4860 = vmatpush.bf16.msra.mxu0 %v6873_v57  ;;  %v7006_v57 = vld [vmem:[#allocation16 + $0xbb8] sm:$0xf0]  ;;  %v7073_v24 = vor.u32 %v7864_v14, %v7070_v48  ;;  %v7860_v30 = vld [vmem:[#allocation16 + $0xc14] sm:$0xf]  ;;  %v7894_v23 = vld [vmem:[#allocation16 + $0xd24] sm:$0xf]  ;;  %v6993_v40 = vor.u32 %v7844_v4, %v6990_v8 }
 0x30c   :  { %v7009_v59 = vor.u32 %v7848_v12, %v7006_v57  ;;  %v7350_v12 = vld [vmem:[#allocation16 + $0xe68] sm:$0xf0]  ;;  %v7874_v48 = vld [vmem:[#allocation16 + $0xc84] sm:$0xf]  ;;  %v7326_v4 = vld [vmem:[#allocation16 + $0xe38] sm:$0xf0] }
 0x30d   :  { %4833 = vmatpush.bf16.msrb.mxu2 %v6737_v46  ;;  %4847 = vmatpush.bf16.msrb.mxu3 %v6801_v54  ;;  %v7850_v46 = vld [vmem:[#allocation16 + $0xbc4] sm:$0xf]  ;;  %v7014_v54 = vld [vmem:[#allocation16 + $0xbc8] sm:$0xf0] }
 0x30e   :  { %4875 = vmatpush.bf16.msra.mxu1 %v6929_v50  ;;  %v7017_v47 = vor.u32 %v7850_v46, %v7014_v54  ;;  %v7896_v50 = vld [vmem:[#allocation16 + $0xd34] sm:$0xf]  ;;  %v7193_v46 = vor.u32 %v7894_v23, %v7190_v18 }
 0x30f   :  { %4861 = vmatpush.bf16.msra.mxu0 %v6865_v9  ;;  %v7134_v9 = vld [vmem:[#allocation16 + $0xcb8] sm:$0xf0]  ;;  %v7876_v54 = vld [vmem:[#allocation16 + $0xc94] sm:$0xf] }
 0x310   :  { %v7137_v21 = vor.u32 %v7880_v53, %v7134_v9  ;;  %v7121_v57 = vor.u32 %v7876_v54, %v7118_v26  ;;  %v7270_v53 = vld [vmem:[#allocation16 + $0xdc8] sm:$0xf0]  ;;  %v7930_v9 = vld [vmem:[#allocation16 + $0xe44] sm:$0xf]  ;;  %v7908_v18 = vld [vmem:[#allocation16 + $0xd94] sm:$0xf]  ;;  %v4598_v26 = vpop.f32.mrf.mxu1 }
 0x311   :  { %4834 = vmatpush.bf16.msrb.mxu2 %v6729_v2  ;;  %4848 = vmatpush.bf16.msrb.mxu3 %v6793_v58  ;;  %v7898_v2 = vld [vmem:[#allocation16 + $0xd44] sm:$0xf]  ;;  %v7206_v58 = vld [vmem:[#allocation16 + $0xd48] sm:$0xf0] }
 0x312   :  { %4876 = vmatpush.bf16.msra.mxu1 %v6921_v22  ;;  %v7209_v38 = vor.u32 %v7898_v2, %v7206_v58  ;;  %v7842_v22 = vld [vmem:[#allocation16 + $0xb84] sm:$0xf]  ;;  %v7916_v58 = vld [vmem:[#allocation16 + $0xdd4] sm:$0xf] }
 0x313   :  { %4862 = vmatpush.bf16.msra.mxu0 %v6857_v19  ;;  %v7057_v19 = vor.u32 %v7860_v30, %v7054_v39  ;;  %v7910_v39 = vld [vmem:[#allocation16 + $0xda4] sm:$0xf] }
 0x314   :  { %4835 = vmatmul.bf16.vlgmr.msrb.gmra.mxu2 %v8756_v60  ;;  %4849 = vmatmul.bf16.vlgmr.msrb.gmra.mxu3 %v8818_v0  ;;  %v7161_v60 = vor.u32 %v7886_v49, %v7158_v13  ;;  %v7225_v0 = vor.u32 %v7902_v31, %v7222_v43  ;;  %v7046_v49 = vld [vmem:[#allocation16 + $0xc08] sm:$0xf0]  ;;  %v7920_v13 = vld [vmem:[#allocation16 + $0xdf4] sm:$0xf]  ;;  %v7294_v31 = vld [vmem:[#allocation16 + $0xdf8] sm:$0xf0] }
 0x315   :  { %4883 = vmatpush.bf16.msra.mxu2 %v7041_v32  ;;  %4897 = vmatpush.bf16.msra.mxu3 %v7105_v27  ;;  %v7846_v32 = vld [vmem:[#allocation16 + $0xba4] sm:$0xf]  ;;  %v6998_v27 = vld [vmem:[#allocation16 + $0xba8] sm:$0xf0]  ;;  %v7936_v43 = vld [vmem:[#allocation16 + $0xe74] sm:$0xf]  ;;  %v7297_v5 = vor.u32 %v7920_v13, %v7294_v31 }
 0x316   :  { %4925 = vmatpush.bf16.msrb.mxu1 %v7233_v45  ;;  %4863 = vmatmul.bf16.vlgmr.msra.gmra.mxu0 %v8820_v1  ;;  %v7862_v1 = vld [vmem:[#allocation16 + $0xc24] sm:$0xf]  ;;  %v7001_v3 = vor.u32 %v7846_v32, %v6998_v27  ;;  %v7342_v32 = vld [vmem:[#allocation16 + $0xe58] sm:$0xf0]  ;;  %v7302_v13 = vld [vmem:[#allocation16 + $0xe08] sm:$0xf0] }
 0x317   :  { %4911 = vmatpush.bf16.msrb.mxu0 %v7169_v29  ;;  %4877 = vmatmul.bf16.vlgmr.msra.gmra.mxu1 %v8836_v44  ;;  %v7145_v44 = vor.u32 %v7882_v51, %v7142_v52  ;;  %v7065_v17 = vor.u32 %v7862_v1, %v7062_v15  ;;  %v6982_v29 = vld [vmem:[#allocation16 + $0xb88] sm:$0xf0]  ;;  %v7858_v45 = vld [vmem:[#allocation16 + $0xc04] sm:$0xf] }
 0x318   :  { %v7049_v6 = vor.u32 %v7858_v45, %v7046_v49  ;;  %v7174_v51 = vld [vmem:[#allocation16 + $0xd08] sm:$0xf0]  ;;  %v7922_v49 = vld [vmem:[#allocation16 + $0xe04] sm:$0xf] }
 0x319   :  { %4884 = vmatpush.bf16.msra.mxu2 %v7033_v7  ;;  %4898 = vmatpush.bf16.msra.mxu3 %v7097_v56  ;;  %v7201_v7 = vor.u32 %v7896_v50, %v7198_v25  ;;  %v7878_v56 = vld [vmem:[#allocation16 + $0xca4] sm:$0xf]  ;;  %v7334_v50 = vld [vmem:[#allocation16 + $0xe48] sm:$0xf0] }
 0x31a   :  { %4926 = vmatpush.bf16.msrb.mxu1 %v7225_v0  ;;  %v6985_v0 = vor.u32 %v7842_v22, %v6982_v29  ;;  %v7906_v29 = vld [vmem:[#allocation16 + $0xd84] sm:$0xf]  ;;  %v7238_v45 = vld [vmem:[#allocation16 + $0xd88] sm:$0xf0] }
 0x31b   :  { %4912 = vmatpush.bf16.msrb.mxu0 %v7161_v60  ;;  %v7182_v60 = vld [vmem:[#allocation16 + $0xd18] sm:$0xf0]  ;;  %v7241_v31 = vor.u32 %v7906_v29, %v7238_v45 }
 0x31c   :  { %v7185_v14 = vor.u32 %v7892_v20, %v7182_v60  ;;  %v4612_v60 = vpop.f32.mrf.mxu2 }
 0x31d   :  { %4885 = vmatpush.bf16.msra.mxu2 %v7025_v37  ;;  %4899 = vmatpush.bf16.msra.mxu3 %v7089_v41  ;;  %v7358_v37 = vld [vmem:[#allocation16 + $0xe78] sm:$0xf0]  ;;  %v7129_v41 = vor.u32 %v7878_v56, %v7126_v16  ;;  %v7318_v56 = vld [vmem:[#allocation16 + $0xe28] sm:$0xf0] }
 0x31e   :  { %4927 = vmatpush.bf16.msrb.mxu1 %v7217_v62  ;;  %v7361_v10 = vor.u32 %v7936_v43, %v7358_v37  ;;  %v7890_v62 = vld [vmem:[#allocation16 + $0xd04] sm:$0xf]  ;;  %v7305_v43 = vor.u32 %v7922_v49, %v7302_v13 }
 0x31f   :  { %4913 = vmatpush.bf16.msrb.mxu0 %v7153_v11  ;;  %v7110_v11 = vld [vmem:[#allocation16 + $0xc88] sm:$0xf0]  ;;  %v7177_v1 = vor.u32 %v7890_v62, %v7174_v51 }
 0x320   :  { %v7113_v27 = vor.u32 %v7874_v48, %v7110_v11  ;;  %v9091_v37 = vld [vmem:[#allocation29_spill] sm:$0xff] }
 0x321   :  { %4886 = vmatpush.bf16.msra.mxu2 %v7017_v47  ;;  %4900 = vmatpush.bf16.msra.mxu3 %v7081_v61  ;;  %v7286_v47 = vld [vmem:[#allocation16 + $0xde8] sm:$0xf0]  ;;  %v7934_v61 = vld [vmem:[#allocation16 + $0xe64] sm:$0xf] }
 0x322   :  { %4928 = vmatpush.bf16.msrb.mxu1 %v7209_v38  ;;  %v7289_v52 = vor.u32 %v7918_v36, %v7286_v47  ;;  %v7353_v2 = vor.u32 %v7934_v61, %v7350_v12  ;;  %v7914_v38 = vld [vmem:[#allocation16 + $0xdc4] sm:$0xf] }
 0x323   :  { %4914 = vmatpush.bf16.msrb.mxu0 %v7145_v44  ;;  %v7273_v25 = vor.u32 %v7914_v38, %v7270_v53 }
 0x324   :  { %v4614_v47 = vpop.f32.mrf.mxu2 }
 0x325   :  { %4887 = vmatpush.bf16.msra.mxu2 %v7009_v59  ;;  %4901 = vmatpush.bf16.msra.mxu3 %v7073_v24  ;;  %v7278_v59 = vld [vmem:[#allocation16 + $0xdd8] sm:$0xf0]  ;;  %v7932_v24 = vld [vmem:[#allocation16 + $0xe54] sm:$0xf] }
 0x326   :  { %4929 = vmatpush.bf16.msrb.mxu1 %v7201_v7  ;;  %v7281_v15 = vor.u32 %v7916_v58, %v7278_v59  ;;  %v7345_v44 = vor.u32 %v7932_v24, %v7342_v32  ;;  %v7926_v7 = vld [vmem:[#allocation16 + $0xe24] sm:$0xf] }
 0x327   :  { %4915 = vmatpush.bf16.msrb.mxu0 %v7137_v21  ;;  %v7254_v21 = vld [vmem:[#allocation16 + $0xda8] sm:$0xf0]  ;;  %v7321_v23 = vor.u32 %v7926_v7, %v7318_v56 }
 0x328   :  { %v7257_v16 = vor.u32 %v7910_v39, %v7254_v21 }
 0x329   :  { %4888 = vmatpush.bf16.msra.mxu2 %v7001_v3  ;;  %4902 = vmatpush.bf16.msra.mxu3 %v7065_v17  ;;  %v7337_v3 = vor.u32 %v7930_v9, %v7334_v50  ;;  %v7912_v17 = vld [vmem:[#allocation16 + $0xdb4] sm:$0xf] }
 0x32a   :  { %4930 = vmatpush.bf16.msrb.mxu1 %v7193_v46  ;;  %v4584_v46 = vpop.f32.mrf.mxu0 }
 0x32b   :  { %4916 = vmatpush.bf16.msrb.mxu0 %v7129_v41  ;;  %v4570_v41 = vpop.f32.mrf.mxu3 }
 0x32d   :  { %4889 = vmatpush.bf16.msra.mxu2 %v6993_v40  ;;  %4903 = vmatpush.bf16.msra.mxu3 %v7057_v19  ;;  %v7246_v40 = vld [vmem:[#allocation16 + $0xd98] sm:$0xf0] }
 0x32e   :  { %4931 = vmatpush.bf16.msrb.mxu1 %v7185_v14  ;;  %v7310_v19 = vld [vmem:[#allocation16 + $0xe18] sm:$0xf0] }
 0x32f   :  { %4917 = vmatpush.bf16.msrb.mxu0 %v7121_v57 }
 0x331   :  { %4890 = vmatpush.bf16.msra.mxu2 %v6985_v0  ;;  %4904 = vmatpush.bf16.msra.mxu3 %v7049_v6  ;;  %v4600_v6 = vpop.f32.mrf.mxu1 }
 0x332   :  { %4932 = vmatpush.bf16.msrb.mxu1 %v7177_v1  ;;  %v4586_v20 = vpop.f32.mrf.mxu0 }
 0x333   :  { %4918 = vmatpush.bf16.msrb.mxu0 %v7113_v27  ;;  %v4572_v54 = vpop.f32.mrf.mxu3 }
 0x334   :  { %4891 = vmatmul.bf16.vlgmr.msra.gmra.mxu2 %v8838_v55  ;;  %4905 = vmatmul.bf16.vlgmr.msra.gmra.mxu3 %v8854_v35  ;;  %v7262_v55 = vld [vmem:[#allocation16 + $0xdb8] sm:$0xf0]  ;;  %v7928_v35 = vld [vmem:[#allocation16 + $0xe34] sm:$0xf] }
 0x335   :  { %4939 = vmatpush.bf16.msrb.mxu2 %v7297_v5  ;;  %4953 = vmatpush.bf16.msrb.mxu3 %v7361_v10  ;;  %v7265_v8 = vor.u32 %v7912_v17, %v7262_v55  ;;  %v7329_v30 = vor.u32 %v7928_v35, %v7326_v4  ;;  %v7980_v10 = vld [vmem:[#allocation18] sm:$0x3] }
 0x336   :  { %4919 = vmatmul.bf16.vlgmr.msrb.gmra.mxu0 %v8856_v34  ;;  %4933 = vmatmul.bf16.vlgmr.msrb.gmra.mxu1 %v8872_v63  ;;  %v7924_v34 = vld [vmem:[#allocation16 + $0xe14] sm:$0xf]  ;;  %v7249_v63 = vor.u32 %v7908_v18, %v7246_v40  ;;  %v1832_v36 = vperm.slane %v7980_v10, 1 }
 0x337   :  { %v7313_v22 = vor.u32 %v7924_v34, %v7310_v19 }
 0x338   :  { %v4571_v57 = vadd.f32 %v4570_v41, %v1832_v36 }
 0x339   :  { %4940 = vmatpush.bf16.msrb.mxu2 %v7289_v52  ;;  %4954 = vmatpush.bf16.msrb.mxu3 %v7353_v2  ;;  %v4654_v12 = vpop.f32.mrf.mxu1  ;;  %v4573_v52 = vadd.f32 %v4572_v54, %v1832_v36 }
 0x33a   :  { %v4640_v5 = vpop.f32.mrf.mxu0  ;;  %v4585_v14 = vadd.f32 %v4584_v46, %v4571_v57 }
 0x33b   :  { %v4626_v0 = vpop.f32.mrf.mxu3  ;;  %v4587_v59 = vadd.f32 %v4586_v20, %v4573_v52 }
 0x33c   :  { %v4599_v62 = vadd.f32 %v4598_v26, %v4585_v14 }
 0x33d   :  { %4941 = vmatpush.bf16.msrb.mxu2 %v7281_v15  ;;  %4955 = vmatpush.bf16.msrb.mxu3 %v7345_v44  ;;  %v4601_v15 = vadd.f32 %v4600_v6, %v4587_v59 }
 0x33e   :  { %v4613_v2 = vadd.f32 %v4612_v60, %v4599_v62 }
 0x33f   :  { %v4615_v38 = vadd.f32 %v4614_v47, %v4601_v15 }
 0x340   :  { %v4627_v27 = vadd.f32 %v4626_v0, %v4613_v2 }
 0x341   :  { %4942 = vmatpush.bf16.msrb.mxu2 %v7273_v25  ;;  %4956 = vmatpush.bf16.msrb.mxu3 %v7337_v3  ;;  %v4656_v51 = vpop.f32.mrf.mxu1 }
 0x342   :  { %v4642_v48 = vpop.f32.mrf.mxu0  ;;  %v4641_v44 = vadd.f32 %v4640_v5, %v4627_v27 }
 0x343   :  { %v4628_v61 = vpop.f32.mrf.mxu3 }
 0x344   :  { %v4655_v25 = vadd.f32 %v4654_v12, %v4641_v44  ;;  %v4629_v3 = vadd.f32 %v4628_v61, %v4615_v38 }
 0x345   :  { %4943 = vmatpush.bf16.msrb.mxu2 %v7265_v8  ;;  %4957 = vmatpush.bf16.msrb.mxu3 %v7329_v30 }
 0x346   :  { %v4643_v35 = vadd.f32 %v4642_v48, %v4629_v3 }
 0x348   :  { %v4657_v30 = vadd.f32 %v4656_v51, %v4643_v35 }
 0x349   :  { %4944 = vmatpush.bf16.msrb.mxu2 %v7257_v16  ;;  %4958 = vmatpush.bf16.msrb.mxu3 %v7321_v23  ;;  %v4710_v1 = vpop.f32.mrf.mxu1 }
 0x34a   :  { %v4696_v58 = vpop.f32.mrf.mxu0 }
 0x34b   :  { %v4682_v11 = vpop.f32.mrf.mxu3 }
 0x34d   :  { %4945 = vmatpush.bf16.msrb.mxu2 %v7249_v63  ;;  %4959 = vmatpush.bf16.msrb.mxu3 %v7313_v22 }
 0x351   :  { %4946 = vmatpush.bf16.msrb.mxu2 %v7241_v31  ;;  %4960 = vmatpush.bf16.msrb.mxu3 %v7305_v43  ;;  %v4712_v55 = vpop.f32.mrf.mxu1 }
 0x352   :  { %v4698_v53 = vpop.f32.mrf.mxu0 }
 0x353   :  { %v4684_v32 = vpop.f32.mrf.mxu3 }
 0x354   :  { %4947 = vmatmul.bf16.vlgmr.msrb.gmra.mxu2 %v8874_v28  ;;  %4961 = vmatmul.bf16.vlgmr.msrb.gmra.mxu3 %v9091_v37  ;;  %v4668_v28 = vpop.f32.mrf.mxu2 }
 0x355   :  { %v4669_v17 = vadd.f32 %v4668_v28, %v4655_v25 }
 0x357   :  { %v4683_v4 = vadd.f32 %v4682_v11, %v4669_v17 }
 0x359   :  { %v4697_v7 = vadd.f32 %v4696_v58, %v4683_v4  ;;  %v4766_v16 = vpop.f32.mrf.mxu1 }
 0x35a   :  { %v4752_v8 = vpop.f32.mrf.mxu0 }
 0x35b   :  { %v4738_v50 = vpop.f32.mrf.mxu3  ;;  %v4711_v23 = vadd.f32 %v4710_v1, %v4697_v7 }
 0x35c   :  { %v4670_v24 = vpop.f32.mrf.mxu2 }
 0x35d   :  { %v4671_v56 = vadd.f32 %v4670_v24, %v4657_v30  ;;  %v4987_v30 = vld [vmem:[#allocation21] sm:$0x3] }
 0x35f   :  { %v4685_v18 = vadd.f32 %v4684_v32, %v4671_v56 }
 0x361   :  { %v4699_v22 = vadd.f32 %v4698_v53, %v4685_v18  ;;  %v4768_v45 = vpop.f32.mrf.mxu1  ;;  %v4989_v18 = vperm.slane %v4987_v30, 0 }
 0x362   :  { %v4754_v34 = vpop.f32.mrf.mxu0 }
 0x363   :  { %v4740_v21 = vpop.f32.mrf.mxu3  ;;  %v4713_v49 = vadd.f32 %v4712_v55, %v4699_v22 }
 0x364   :  { %v4724_v9 = vpop.f32.mrf.mxu2 }
 0x365   :  { %v4725_v40 = vadd.f32 %v4724_v9, %v4711_v23 }
 0x367   :  { %v4739_v29 = vadd.f32 %v4738_v50, %v4725_v40 }
 0x369   :  { %v4753_v13 = vadd.f32 %v4752_v8, %v4739_v29 }
 0x36b   :  { %v4767_v46 = vadd.f32 %v4766_v16, %v4753_v13 }
 0x36c   :  { %v4726_v39 = vpop.f32.mrf.mxu2 }
 0x36d   :  { %v4727_v31 = vadd.f32 %v4726_v39, %v4713_v49  ;;  %v4971_v39 = vld [vmem:[#allocation19] sm:$0x3]  ;;  %v4993_v49 = vmul.f32 %v4989_v18, %v9021_v42 }
 0x36f   :  { %v4741_v54 = vadd.f32 %v4740_v21, %v4727_v31 }
 0x371   :  { %v4755_v60 = vadd.f32 %v4754_v34, %v4741_v54  ;;  %v4990_v34 = vperm.slane %v4987_v30, 1 }
 0x373   :  { %v4808_v43 = vpop.f32.mrf.mxu0  ;;  %v4769_v36 = vadd.f32 %v4768_v45, %v4755_v60 }
 0x374   :  { %v4822_v26 = vpop.f32.mrf.mxu1 }
 0x377   :  { %v4780_v19 = vpop.f32.mrf.mxu2  ;;  %v4794_v63 = vpop.f32.mrf.mxu3 }
 0x378   :  { %v4781_v20 = vadd.f32 %v4780_v19, %v4767_v46  ;;  %v4973_v19 = vperm.slane %v4971_v39, 0 }
 0x37a   :  { %v4795_v0 = vadd.f32 %v4794_v63, %v4781_v20  ;;  %v4974_v63 = vperm.slane %v4971_v39, 1  ;;  %v4977_v31 = vmul.f32 %v4973_v19, %v9021_v42 }
 0x37b   :  { %v4810_v6 = vpop.f32.mrf.mxu0 }
 0x37c   :  { %v4809_v47 = vadd.f32 %v4808_v43, %v4795_v0  ;;  %v4824_v12 = vpop.f32.mrf.mxu1  ;;  %v4995_v0 = vmul.f32 %v4989_v18, %v9027_v33 }
 0x37e   :  { %v4823_v57 = vadd.f32 %v4822_v26, %v4809_v47 }
 0x37f   :  { %v4782_v37 = vpop.f32.mrf.mxu2  ;;  %v4796_v41 = vpop.f32.mrf.mxu3 }
 0x380   :  { %v4783_v61 = vadd.f32 %v4782_v37, %v4769_v36 }
 0x382   :  { %v4797_v14 = vadd.f32 %v4796_v41, %v4783_v61 }
 0x384   :  { %v4811_v51 = vadd.f32 %v4810_v6, %v4797_v14 }
 0x386   :  { %v4825_v58 = vadd.f32 %v4824_v12, %v4811_v51 }
 0x393   :  { %v4864_v48 = vpop.f32.mrf.mxu0 }
 0x394   :  { %v4878_v52 = vpop.f32.mrf.mxu1 }
 0x397   :  { %v4836_v5 = vpop.f32.mrf.mxu2  ;;  %v4850_v10 = vpop.f32.mrf.mxu3 }
 0x398   :  { %v4837_v28 = vadd.f32 %v4836_v5, %v4823_v57  ;;  %v4979_v5 = vmul.f32 %v4973_v19, %v9027_v33 }
 0x39a   :  { %v4851_v2 = vadd.f32 %v4850_v10, %v4837_v28 }
 0x39b   :  { %v4866_v32 = vpop.f32.mrf.mxu0 }
 0x39c   :  { %v4865_v59 = vadd.f32 %v4864_v48, %v4851_v2  ;;  %v4880_v38 = vpop.f32.mrf.mxu1 }
 0x39e   :  { %v4879_v15 = vadd.f32 %v4878_v52, %v4865_v59 }
 0x39f   :  { %v4838_v11 = vpop.f32.mrf.mxu2  ;;  %v4852_v62 = vpop.f32.mrf.mxu3 }
 0x3a0   :  { %v4839_v24 = vadd.f32 %v4838_v11, %v4825_v58 }
 0x3a2   :  { %v4853_v44 = vadd.f32 %v4852_v62, %v4839_v24 }
 0x3a4   :  { %v4867_v9 = vadd.f32 %v4866_v32, %v4853_v44 }
 0x3a6   :  { %v4881_v55 = vadd.f32 %v4880_v38, %v4867_v9 }
 0x3b3   :  { %v4920_v50 = vpop.f32.mrf.mxu0  ;;  %v4934_v35 = vpop.f32.mrf.mxu1 }
 0x3b7   :  { %v4892_v27 = vpop.f32.mrf.mxu2  ;;  %v4906_v1 = vpop.f32.mrf.mxu3 }
 0x3b8   :  { %v4893_v53 = vadd.f32 %v4892_v27, %v4879_v15  ;;  %v5029_v27 = vlaneseq }
 0x3ba   :  { %v4907_v25 = vadd.f32 %v4906_v1, %v4893_v53  ;;  %v5030_v38 = vand.u32 127, %v5029_v27 }
 0x3bb   :  { %v4922_v56 = vpop.f32.mrf.mxu0  ;;  %v4936_v45 = vpop.f32.mrf.mxu1 }
 0x3bc   :  { %v4921_v4 = vadd.f32 %v4920_v50, %v4907_v25  ;;  %vm5032_vm0 = vcmp.eq.s32.totalorder %v5030_v38, 1  ;;  %vm5031_vm1 = vcmp.eq.s32.totalorder %v5030_v38, 0 }
 0x3be   :  { %v4935_v21 = vadd.f32 %v4934_v35, %v4921_v4 }
 0x3bf   :  { %v4894_v3 = vpop.f32.mrf.mxu2  ;;  %v4908_v17 = vpop.f32.mrf.mxu3 }
 0x3c0   :  { %v4895_v8 = vadd.f32 %v4894_v3, %v4881_v55 }
 0x3c2   :  { %v4909_v7 = vadd.f32 %v4908_v17, %v4895_v8 }
 0x3c4   :  { %v4923_v22 = vadd.f32 %v4922_v56, %v4909_v7 }
 0x3c6   :  { %v4937_v37 = vadd.f32 %v4936_v45, %v4923_v22 }
 0x3d7   :  { %v4948_v16 = vpop.f32.mrf.mxu2  ;;  %v4962_v23 = vpop.f32.mrf.mxu3 }
 0x3d8   :  { %v4949_v40 = vadd.f32 %v4948_v16, %v4935_v21 }
 0x3da   :  { %v4963_v29 = vadd.f32 %v4962_v23, %v4949_v40 }
 0x3dc   :  { %4968 = vst [vmem:[%s9076_s17 + $0x8] sm:$0xff] %v4963_v29  ;;  %v4994_v13 = vmul.f32 %v4990_v34, %v4963_v29  ;;  %v4978_v43 = vmul.f32 %v4974_v63, %v4963_v29 }
 0x3de   :  { %v4997_v41 = vadd.f32 %v4994_v13, %v4993_v49  ;;  %v4981_v46 = vadd.f32 %v4978_v43, %v4977_v31 }
 0x3df   :  { %v4950_v54 = vpop.f32.mrf.mxu2  ;;  %v4964_v20 = vpop.f32.mrf.mxu3 }
 0x3e0   :  { %v4951_v26 = vadd.f32 %v4950_v54, %v4937_v37  ;;  %4998 = vadd.xlane.f32.xlu1 %v4997_v41  ;;  %4982 = vadd.xlane.f32.xlu0 %v4981_v46 }
 0x3e2   :  { %v4965_v60 = vadd.f32 %v4964_v20, %v4951_v26 }
 0x3e4   :  { %4970 = vst [vmem:[%s9076_s17 + $0x18] sm:$0xff] %v4965_v60  ;;  %v4996_v6 = vmul.f32 %v4990_v34, %v4965_v60  ;;  %v4980_v42 = vmul.f32 %v4974_v63, %v4965_v60 }
 0x3e6   :  { %v5000_v10 = vadd.f32 %v4996_v6, %v4995_v0  ;;  %v4984_v36 = vadd.f32 %v4980_v42, %v4979_v5 }
 0x3e8   :  { %5001 = vadd.xlane.f32.xlu1 %v5000_v10  ;;  %4985 = vadd.xlane.f32.xlu0 %v4984_v36 }
 0x453   :  { %v4999_v47 = vpop.xlane.xlu1 %4998  ;;  %v4983_v61 = vpop.xlane.xlu0 %4982 }
 0x454   :  { %v5003_v12 = vmax.f32 %v4983_v61, %v4999_v47 }
 0x456   :  { %v5005_v57 = vsub.f32 %v4983_v61, %v5003_v12  ;;  %v5011_v14 = vsub.f32 %v4999_v47, %v5003_v12 }
 0x458   :  { %v5007_v48 = vmul.f32 1.442695, %v5005_v57  ;;  %v5013_v28 = vmul.f32 1.442695, %v5011_v14 }
 0x45a   :  { %7960 = vpow2.f32 %v5007_v48 }
 0x45b   :  { %7962 = vpow2.f32 %v5013_v28  ;;  %v5002_v11 = vpop.xlane.xlu1 %5001  ;;  %v4986_v62 = vpop.xlane.xlu0 %4985 }
 0x45c   :  { %v5004_v51 = vmax.f32 %v4986_v62, %v5002_v11 }
 0x45e   :  { %v5006_v52 = vsub.f32 %v4986_v62, %v5004_v51  ;;  %v5012_v2 = vsub.f32 %v5002_v11, %v5004_v51 }
 0x460   :  { %v7961_v33 = vpop.eup %7960  ;;  %v5009_v58 = vmul.f32 1.442695, %v5006_v52  ;;  %v5015_v59 = vmul.f32 1.442695, %v5012_v2 }
 0x461   :  { %v7963_v24 = vpop.eup %7962 }
 0x462   :  { %v5017_v32 = vadd.f32 %v7963_v24, %v7961_v33  ;;  %7964 = vpow2.f32 %v5009_v58 }
 0x463   :  { %7966 = vpow2.f32 %v5015_v59 }
 0x464   :  { %7968 = vlog2.f32 %v5017_v32 }
 0x468   :  { %v7965_v1 = vpop.eup %7964 }
 0x469   :  { %v7967_v15 = vpop.eup %7966 }
 0x46a   :  { %v7969_v44 = vpop.eup %7968  ;;  %v5018_v53 = vadd.f32 %v7967_v15, %v7965_v1 }
 0x46b   :  { %v5020_v9 = vmul.f32 0.6931472, %v7969_v44 }
 0x46c   :  { %7970 = vlog2.f32 %v5018_v53 }
 0x46d   :  { %v5023_v50 = vadd.f32 %v5020_v9, %v5003_v12 }
 0x46f   :  { %v5025_v25 = vsub.f32 %v4983_v61, %v5023_v50  ;;  %v5027_v3 = vsub.f32 %v4999_v47, %v5023_v50 }
 0x471   :  { %v5033_v17 = vsel %vm5032_vm0, %v5027_v3, 0.0 }
 0x472   :  { %v7971_v55 = vpop.eup %7970  ;;  %v5035_v35 = vsel %vm5031_vm1, %v5025_v25, %v5033_v17 }
 0x473   :  { %5037 = vst [vmem:[%s9077_s18] sm:$0xff] %v5035_v35  ;;  %v5022_v4 = vmul.f32 0.6931472, %v7971_v55 }
 0x475   :  { %v5024_v8 = vadd.f32 %v5022_v4, %v5004_v51 }
 0x477   :  { %v5026_v30 = vsub.f32 %v4986_v62, %v5024_v8  ;;  %v5028_v39 = vsub.f32 %v5002_v11, %v5024_v8 }
 0x479   :  { %v5034_v21 = vsel %vm5032_vm0, %v5028_v39, 0.0 }
 0x47a   :  { %v5036_v7 = vsel %vm5031_vm1, %v5026_v30, %v5034_v21 }
 0x47b   :  { %5038 = vst [vmem:[%s9077_s18 + $0x8] sm:$0xff] %v5036_v7 }
 0x47c   :  { %5051 = vsyncpa [#allocation3], 1 }
 0x47d   :  { %5052 = vsyncpa [#allocation5], 1 }
 0x47e   :  { %5053 = vsyncpa [#allocation8], 1 }
 0x47f   :  { %5054 = vsyncpa [#allocation11], 1 }
 0x480   :  { %5055 = vsyncpa [#allocation14], 1 }
 0x481   :  { %5056 = vsyncpa [#allocation17], 1 }
 0x482   :  { %5057 = vsyncpa [#allocation20], 1 }

</bundles_post_ra>
